<compile_context>
chip_gen: v5e
topology: v5e:2x2
jax: 0.10.0
libtpu: 0.0.40
codegen_flags: <defaults>
</compile_context>

<pallas_src>
import math
import jax
import jax.numpy as jnp
from jax.experimental import pallas as pl
from jax.experimental.pallas import tpu as pltpu


_LANE = 128
# ReLU after every layer except encoder-last (idx 3) and decoder-last (idx 7).
_RELU = (True, True, True, False, True, True, True, False)


def _layer_dims(feature_size: int):
    """Mirror the nn.Sequential dims of the PyTorch module."""
    f = feature_size
    enc = [f, int(f * 0.75), int(f * 0.5), int(f * 0.25), int(f * 0.1)]
    dec = [int(f * 0.1), int(f * 0.25), int(f * 0.5), int(f * 0.75), f]
    return list(zip(enc[:-1], enc[1:])) + list(zip(dec[:-1], dec[1:]))


def _pad_lane(n: int) -> int:
    """Round up to a multiple of 128 (at least 128)."""
    return max(_LANE, ((n + _LANE - 1) // _LANE) * _LANE)


def _round_up(n: int, m: int) -> int:
    return ((n + m - 1) // m) * m


def init_params(feature_size: int, key):
    """PyTorch-style init: U(-1/sqrt(fan_in), 1/sqrt(fan_in)), logical (unpadded) f32."""
    params = []
    for fan_in, fan_out in _layer_dims(feature_size):
        key, kw, kb = jax.random.split(key, 3)
        bound = 1.0 / math.sqrt(fan_in)
        w = jax.random.uniform(kw, (fan_in, fan_out), jnp.float32, -bound, bound)
        b = jax.random.uniform(kb, (fan_out,), jnp.float32, -bound, bound)
        params.append((w, b))
    return params


def prepare_params(feature_size: int, params):
    """One-time preprocessing, hoisted out of the forward pass:
    zero-pad hidden/output widths to multiples of 128 (lane-dense stores),
    store weights pre-transposed [in, out] in bf16 (so y = x @ W + b matches
    PyTorch's y = x @ W_pt.T + b), and concatenate all 8 biases into one
    (1, sum_out) f32 buffer (single DMA, static 128-aligned slices in-kernel)."""
    dims = _layer_dims(feature_size)
    assert len(dims) == len(params) == 8
    padded_outs = [_pad_lane(o) for _, o in dims]
    padded_ins = [feature_size] + padded_outs[:-1]

    w_padded, b_chunks = [], []
    for (fi, fo), pi, po, (w, b) in zip(dims, padded_ins, padded_outs, params):
        wp = jnp.zeros((pi, po), jnp.float32).at[:fi, :fo].set(w).astype(jnp.bfloat16)
        bp = jnp.zeros((po,), jnp.float32).at[:fo].set(b)
        w_padded.append(wp)
        b_chunks.append(bp)
    b_all = jnp.concatenate(b_chunks)[None, :]

    bias_offs, off = [], 0
    for po in padded_outs:
        bias_offs.append(off)
        off += po

    return {
        "feature_size": feature_size,
        "padded_ins": tuple(padded_ins),
        "padded_outs": tuple(padded_outs),
        "bias_offs": tuple(bias_offs),
        "weights": tuple(w_padded),
        "bias": b_all,
    }


def _make_kernel(n_layers, padded_outs, bias_offs, relu_flags):
    def kernel(x_ref, *refs):
        w_refs = refs[:n_layers]
        b_ref = refs[n_layers]              # (1, sum(padded_outs)) f32
        out_ref = refs[n_layers + 1]

        # bf16 activations between layers (halves activation VMEM/vreg pressure);
        # the MXU accumulates in f32, bias add + ReLU run in f32, then one cast.
        h = x_ref[...].astype(jnp.bfloat16)
        for k in range(n_layers):
            po = padded_outs[k]
            off = bias_offs[k]              # static, multiple of 128 -> aligned slice
            y = jnp.dot(h, w_refs[k][...], preferred_element_type=jnp.float32)
            y = y + b_ref[:, off:off + po]  # f32 bias add (broadcast over rows)
            if relu_flags[k]:
                y = jnp.maximum(y, 0.0)
            if k + 1 < n_layers:
                h = y.astype(jnp.bfloat16)
            else:
                out_ref[...] = y            # lane-dense f32 store
    return kernel


def _vmem_cap_bytes():
    """Generation-aware VMEM request cap: leave headroom for Mosaic internal
    scratch (~54 MiB on v7x's 64 MiB, ~108 MiB on v5e/v6e's 128 MiB)."""
    try:
        cap = int(pltpu.get_tpu_info().vmem_capacity_bytes)
        return max(32 << 20, min(int(cap * 0.85), cap - (8 << 20)))
    except Exception:
        return 48 << 20   # conservative fallback, safe on every generation


def _const_spec(shape, single_buffer):
    # Constant block index => the block is DMA'd once and stays VMEM-resident;
    # single-buffering removes the wasted second copy of the weights.
    index_map = lambda i: (0,) * len(shape)
    if single_buffer:
        return pl.BlockSpec(shape, index_map, pipeline_mode=pl.Buffered(1))
    return pl.BlockSpec(shape, index_map)


def autoencoder_forward(x, prepared, *, tile_b=None):
    batch, f = x.shape
    assert f == prepared["feature_size"]
    padded_ins = prepared["padded_ins"]
    padded_outs = prepared["padded_outs"]
    bias_offs = prepared["bias_offs"]
    w_padded = prepared["weights"]
    b_all = prepared["bias"]
    n_layers = len(w_padded)
    out_f = padded_outs[-1]

    # Batch tile: one grid step when the whole batch fits, otherwise large
    # (up to 1024-row) tiles.  No wrapper-side jnp.pad: a ragged last tile is
    # handled by Pallas OOB masking -- the padded rows carry garbage through
    # the MLP, which is harmless because rows are independent and the OOB
    # output region is never written back / read.
    if tile_b is None:
        tile_b = min(1024, _round_up(max(batch, 8), 8))
    tile_b = max(8, _round_up(tile_b, 8))
    num_tiles = pl.cdiv(batch, tile_b)

    # VMEM budget: single-buffered weights/bias + double-buffered x/out tiles
    # + activation working set (f32 y + bf16 h + bf16 x copy).
    weight_bytes = sum(pi * po * 2 for pi, po in zip(padded_ins, padded_outs))
    bias_bytes = b_all.shape[1] * 4
    max_po = max(padded_outs)
    act_bytes = tile_b * (max_po * 6 + f * 2)
    io_bytes = 2 * tile_b * (f + out_f) * 4
    est = weight_bytes + bias_bytes + io_bytes + act_bytes
    vmem_limit = int(min(_vmem_cap_bytes(), max(32 << 20, 2 * est)))
    # TODO(synk): for feature_size large enough that full weight residency
    # exceeds the per-generation VMEM cap (F >~ 4000 on v7x), stream the two
    # largest F x 0.75F layers over a K grid axis (and/or hold them in
    # fp8/int8) instead of keeping them resident.

    kernel = _make_kernel(n_layers, padded_outs, bias_offs, _RELU)

    def run(single_buffer):
        in_specs = [pl.BlockSpec((tile_b, f), lambda i: (i, 0))]
        in_specs += [_const_spec((pi, po), single_buffer)
                     for pi, po in zip(padded_ins, padded_outs)]
        in_specs += [_const_spec((1, b_all.shape[1]), single_buffer)]
        out_specs = pl.BlockSpec((tile_b, out_f), lambda i: (i, 0))
        return pl.pallas_call(
            kernel,
            out_shape=jax.ShapeDtypeStruct((batch, out_f), jnp.float32),
            grid=(num_tiles,),
            in_specs=in_specs,
            out_specs=out_specs,
            compiler_params=pltpu.CompilerParams(
                dimension_semantics=("parallel",),
                vmem_limit_bytes=vmem_limit,
            ),
        )(x, *w_padded, b_all)

    try:
        out_padded = run(True)
    except Exception:
        # pl.Buffered(1) pipeline_mode unavailable on this jax build/backend:
        # fall back to default double-buffered constant blocks (correct, just
        # uses 2x the resident weight VMEM).
        out_padded = run(False)

    # Strip lane padding of the final layer (no-op copy avoided when f % 128 == 0;
    # callers that can consume the padded slab may skip this slice entirely).
    return out_padded if out_f == f else out_padded[:, :f]


def autoencoder_ref_f32(x, params):
    """Pure-f32 JAX reference (matches the PyTorch module exactly)."""
    h = x
    for k, (w, b) in enumerate(params):
        h = h @ w + b
        if _RELU[k]:
            h = jnp.maximum(h, 0.0)
    return h


def autoencoder_ref_bf16(x, params):
    """Reference emulating the kernel's dtype policy: bf16 matmul inputs,
    f32 accumulation, bias+ReLU in f32, bf16 activations between layers."""
    h = x.astype(jnp.bfloat16)
    for k, (w, b) in enumerate(params):
        y = jnp.dot(h, w.astype(jnp.bfloat16),
                    preferred_element_type=jnp.float32) + b
        if _RELU[k]:
            y = jnp.maximum(y, 0.0)
        h = y.astype(jnp.bfloat16) if k + 1 < len(params) else y
    return h


if __name__ == "__main__":
    feature_size = 64   # layer widths 64, 48, 32, 16, 6, 16, 32, 48, 64
    batch = 256         # whole batch in a single grid step (tile_b auto -> 256)

    key = jax.random.PRNGKey(0)
    key, kx = jax.random.split(key)
    x = jax.random.normal(kx, (batch, feature_size), jnp.float32)
    params = init_params(feature_size, key)
    prepared = prepare_params(feature_size, params)   # one-time param prep

    out = jax.block_until_ready(autoencoder_forward(x, prepared))
    assert out.shape == (batch, feature_size)

    # Tight check vs a reference that uses the same bf16/f32 policy as the kernel.
    ref_q = autoencoder_ref_bf16(x, params)
    assert jnp.allclose(out, ref_q, atol=5e-3, rtol=5e-3), "mismatch vs bf16-emulated reference"
    # Loose check vs the exact f32 PyTorch-equivalent forward.
    ref_f = autoencoder_ref_f32(x, params)
    assert jnp.allclose(out, ref_f, atol=5e-2, rtol=5e-2), "mismatch vs f32 reference"

    print("KERNEL_OK")
</pallas_src>

<mosaic_0001>
module attributes {stable_mosaic.version = 11 : i64} {
  func.func @kernel(%arg0: i32, %arg1: memref<256x64xf32, #tpu.memory_space<vmem>>, %arg2: memref<64x128xbf16, #tpu.memory_space<vmem>>, %arg3: memref<128x128xbf16, #tpu.memory_space<vmem>>, %arg4: memref<128x128xbf16, #tpu.memory_space<vmem>>, %arg5: memref<128x128xbf16, #tpu.memory_space<vmem>>, %arg6: memref<128x128xbf16, #tpu.memory_space<vmem>>, %arg7: memref<128x128xbf16, #tpu.memory_space<vmem>>, %arg8: memref<128x128xbf16, #tpu.memory_space<vmem>>, %arg9: memref<128x128xbf16, #tpu.memory_space<vmem>>, %arg10: memref<1x1024xf32, #tpu.memory_space<vmem>>, %arg11: memref<256x128xf32, #tpu.memory_space<vmem>>) attributes {dimension_semantics = [#tpu.dimension_semantics<parallel>], iteration_bounds = array<i64: 1>, scalar_prefetch = 0 : i64, scratch_operands = 0 : i64, tpu.core_type = #tpu.core_type<tc>, window_params = [{transform_indices = @transform_0, window_bounds = array<i64: 256, 64>}, {pipeline_mode = #tpu.pipeline_mode<synchronous>, transform_indices = @transform_1, window_bounds = array<i64: 64, 128>}, {pipeline_mode = #tpu.pipeline_mode<synchronous>, transform_indices = @transform_2, window_bounds = array<i64: 128, 128>}, {pipeline_mode = #tpu.pipeline_mode<synchronous>, transform_indices = @transform_3, window_bounds = array<i64: 128, 128>}, {pipeline_mode = #tpu.pipeline_mode<synchronous>, transform_indices = @transform_4, window_bounds = array<i64: 128, 128>}, {pipeline_mode = #tpu.pipeline_mode<synchronous>, transform_indices = @transform_5, window_bounds = array<i64: 128, 128>}, {pipeline_mode = #tpu.pipeline_mode<synchronous>, transform_indices = @transform_6, window_bounds = array<i64: 128, 128>}, {pipeline_mode = #tpu.pipeline_mode<synchronous>, transform_indices = @transform_7, window_bounds = array<i64: 128, 128>}, {pipeline_mode = #tpu.pipeline_mode<synchronous>, transform_indices = @transform_8, window_bounds = array<i64: 128, 128>}, {pipeline_mode = #tpu.pipeline_mode<synchronous>, transform_indices = @transform_9, window_bounds = array<i64: 1, 1024>}, {transform_indices = @transform_10, window_bounds = array<i64: 256, 128>}]} {
    %c0 = arith.constant 0 : index
    %c0_0 = arith.constant 0 : index
    %0 = vector.load %arg1[%c0, %c0_0] : memref<256x64xf32, #tpu.memory_space<vmem>>, vector<256x64xf32>
    %1 = arith.truncf %0 : vector<256x64xf32> to vector<256x64xbf16>
    %c0_1 = arith.constant 0 : index
    %c0_2 = arith.constant 0 : index
    %2 = vector.load %arg2[%c0_1, %c0_2] : memref<64x128xbf16, #tpu.memory_space<vmem>>, vector<64x128xbf16>
    %cst = arith.constant dense<0.000000e+00> : vector<256x128xf32>
    %3 = tpu.matmul %1, %2, %cst {dimension_numbers = #tpu.dot_dimension_numbers<[1], [0], [0], [1], [0, 0, 1, 1], [], []>} : vector<256x64xbf16>, vector<64x128xbf16>, vector<256x128xf32> -> vector<256x128xf32>
    %c0_3 = arith.constant 0 : index
    %c0_4 = arith.constant 0 : index
    %4 = vector.load %arg10[%c0_3, %c0_4] : memref<1x1024xf32, #tpu.memory_space<vmem>>, vector<1x128xf32>
    %5 = vector.broadcast %4 : vector<1x128xf32> to vector<256x128xf32>
    %6 = arith.addf %3, %5 : vector<256x128xf32>
    %cst_5 = arith.constant 0.000000e+00 : f32
    %7 = vector.broadcast %cst_5 : f32 to vector<256x128xf32>
    %8 = arith.maximumf %6, %7 : vector<256x128xf32>
    %9 = arith.truncf %8 : vector<256x128xf32> to vector<256x128xbf16>
    %c0_6 = arith.constant 0 : index
    %c0_7 = arith.constant 0 : index
    %10 = vector.load %arg3[%c0_6, %c0_7] : memref<128x128xbf16, #tpu.memory_space<vmem>>, vector<128x128xbf16>
    %cst_8 = arith.constant dense<0.000000e+00> : vector<256x128xf32>
    %11 = tpu.matmul %9, %10, %cst_8 {dimension_numbers = #tpu.dot_dimension_numbers<[1], [0], [0], [1], [0, 0, 1, 1], [], []>} : vector<256x128xbf16>, vector<128x128xbf16>, vector<256x128xf32> -> vector<256x128xf32>
    %c0_9 = arith.constant 0 : index
    %c128 = arith.constant 128 : index
    %12 = vector.load %arg10[%c0_9, %c128] : memref<1x1024xf32, #tpu.memory_space<vmem>>, vector<1x128xf32>
    %13 = vector.broadcast %12 : vector<1x128xf32> to vector<256x128xf32>
    %14 = arith.addf %11, %13 : vector<256x128xf32>
    %cst_10 = arith.constant 0.000000e+00 : f32
    %15 = vector.broadcast %cst_10 : f32 to vector<256x128xf32>
    %16 = arith.maximumf %14, %15 : vector<256x128xf32>
    %17 = arith.truncf %16 : vector<256x128xf32> to vector<256x128xbf16>
    %c0_11 = arith.constant 0 : index
    %c0_12 = arith.constant 0 : index
    %18 = vector.load %arg4[%c0_11, %c0_12] : memref<128x128xbf16, #tpu.memory_space<vmem>>, vector<128x128xbf16>
    %cst_13 = arith.constant dense<0.000000e+00> : vector<256x128xf32>
    %19 = tpu.matmul %17, %18, %cst_13 {dimension_numbers = #tpu.dot_dimension_numbers<[1], [0], [0], [1], [0, 0, 1, 1], [], []>} : vector<256x128xbf16>, vector<128x128xbf16>, vector<256x128xf32> -> vector<256x128xf32>
    %c0_14 = arith.constant 0 : index
    %c256 = arith.constant 256 : index
    %20 = vector.load %arg10[%c0_14, %c256] : memref<1x1024xf32, #tpu.memory_space<vmem>>, vector<1x128xf32>
    %21 = vector.broadcast %20 : vector<1x128xf32> to vector<256x128xf32>
    %22 = arith.addf %19, %21 : vector<256x128xf32>
    %cst_15 = arith.constant 0.000000e+00 : f32
    %23 = vector.broadcast %cst_15 : f32 to vector<256x128xf32>
    %24 = arith.maximumf %22, %23 : vector<256x128xf32>
    %25 = arith.truncf %24 : vector<256x128xf32> to vector<256x128xbf16>
    %c0_16 = arith.constant 0 : index
    %c0_17 = arith.constant 0 : index
    %26 = vector.load %arg5[%c0_16, %c0_17] : memref<128x128xbf16, #tpu.memory_space<vmem>>, vector<128x128xbf16>
    %cst_18 = arith.constant dense<0.000000e+00> : vector<256x128xf32>
    %27 = tpu.matmul %25, %26, %cst_18 {dimension_numbers = #tpu.dot_dimension_numbers<[1], [0], [0], [1], [0, 0, 1, 1], [], []>} : vector<256x128xbf16>, vector<128x128xbf16>, vector<256x128xf32> -> vector<256x128xf32>
    %c0_19 = arith.constant 0 : index
    %c384 = arith.constant 384 : index
    %28 = vector.load %arg10[%c0_19, %c384] : memref<1x1024xf32, #tpu.memory_space<vmem>>, vector<1x128xf32>
    %29 = vector.broadcast %28 : vector<1x128xf32> to vector<256x128xf32>
    %30 = arith.addf %27, %29 : vector<256x128xf32>
    %31 = arith.truncf %30 : vector<256x128xf32> to vector<256x128xbf16>
    %c0_20 = arith.constant 0 : index
    %c0_21 = arith.constant 0 : index
    %32 = vector.load %arg6[%c0_20, %c0_21] : memref<128x128xbf16, #tpu.memory_space<vmem>>, vector<128x128xbf16>
    %cst_22 = arith.constant dense<0.000000e+00> : vector<256x128xf32>
    %33 = tpu.matmul %31, %32, %cst_22 {dimension_numbers = #tpu.dot_dimension_numbers<[1], [0], [0], [1], [0, 0, 1, 1], [], []>} : vector<256x128xbf16>, vector<128x128xbf16>, vector<256x128xf32> -> vector<256x128xf32>
    %c0_23 = arith.constant 0 : index
    %c512 = arith.constant 512 : index
    %34 = vector.load %arg10[%c0_23, %c512] : memref<1x1024xf32, #tpu.memory_space<vmem>>, vector<1x128xf32>
    %35 = vector.broadcast %34 : vector<1x128xf32> to vector<256x128xf32>
    %36 = arith.addf %33, %35 : vector<256x128xf32>
    %cst_24 = arith.constant 0.000000e+00 : f32
    %37 = vector.broadcast %cst_24 : f32 to vector<256x128xf32>
    %38 = arith.maximumf %36, %37 : vector<256x128xf32>
    %39 = arith.truncf %38 : vector<256x128xf32> to vector<256x128xbf16>
    %c0_25 = arith.constant 0 : index
    %c0_26 = arith.constant 0 : index
    %40 = vector.load %arg7[%c0_25, %c0_26] : memref<128x128xbf16, #tpu.memory_space<vmem>>, vector<128x128xbf16>
    %cst_27 = arith.constant dense<0.000000e+00> : vector<256x128xf32>
    %41 = tpu.matmul %39, %40, %cst_27 {dimension_numbers = #tpu.dot_dimension_numbers<[1], [0], [0], [1], [0, 0, 1, 1], [], []>} : vector<256x128xbf16>, vector<128x128xbf16>, vector<256x128xf32> -> vector<256x128xf32>
    %c0_28 = arith.constant 0 : index
    %c640 = arith.constant 640 : index
    %42 = vector.load %arg10[%c0_28, %c640] : memref<1x1024xf32, #tpu.memory_space<vmem>>, vector<1x128xf32>
    %43 = vector.broadcast %42 : vector<1x128xf32> to vector<256x128xf32>
    %44 = arith.addf %41, %43 : vector<256x128xf32>
    %cst_29 = arith.constant 0.000000e+00 : f32
    %45 = vector.broadcast %cst_29 : f32 to vector<256x128xf32>
    %46 = arith.maximumf %44, %45 : vector<256x128xf32>
    %47 = arith.truncf %46 : vector<256x128xf32> to vector<256x128xbf16>
    %c0_30 = arith.constant 0 : index
    %c0_31 = arith.constant 0 : index
    %48 = vector.load %arg8[%c0_30, %c0_31] : memref<128x128xbf16, #tpu.memory_space<vmem>>, vector<128x128xbf16>
    %cst_32 = arith.constant dense<0.000000e+00> : vector<256x128xf32>
    %49 = tpu.matmul %47, %48, %cst_32 {dimension_numbers = #tpu.dot_dimension_numbers<[1], [0], [0], [1], [0, 0, 1, 1], [], []>} : vector<256x128xbf16>, vector<128x128xbf16>, vector<256x128xf32> -> vector<256x128xf32>
    %c0_33 = arith.constant 0 : index
    %c768 = arith.constant 768 : index
    %50 = vector.load %arg10[%c0_33, %c768] : memref<1x1024xf32, #tpu.memory_space<vmem>>, vector<1x128xf32>
    %51 = vector.broadcast %50 : vector<1x128xf32> to vector<256x128xf32>
    %52 = arith.addf %49, %51 : vector<256x128xf32>
    %cst_34 = arith.constant 0.000000e+00 : f32
    %53 = vector.broadcast %cst_34 : f32 to vector<256x128xf32>
    %54 = arith.maximumf %52, %53 : vector<256x128xf32>
    %55 = arith.truncf %54 : vector<256x128xf32> to vector<256x128xbf16>
    %c0_35 = arith.constant 0 : index
    %c0_36 = arith.constant 0 : index
    %56 = vector.load %arg9[%c0_35, %c0_36] : memref<128x128xbf16, #tpu.memory_space<vmem>>, vector<128x128xbf16>
    %cst_37 = arith.constant dense<0.000000e+00> : vector<256x128xf32>
    %57 = tpu.matmul %55, %56, %cst_37 {dimension_numbers = #tpu.dot_dimension_numbers<[1], [0], [0], [1], [0, 0, 1, 1], [], []>} : vector<256x128xbf16>, vector<128x128xbf16>, vector<256x128xf32> -> vector<256x128xf32>
    %c0_38 = arith.constant 0 : index
    %c896 = arith.constant 896 : index
    %58 = vector.load %arg10[%c0_38, %c896] : memref<1x1024xf32, #tpu.memory_space<vmem>>, vector<1x128xf32>
    %59 = vector.broadcast %58 : vector<1x128xf32> to vector<256x128xf32>
    %60 = arith.addf %57, %59 : vector<256x128xf32>
    %c0_39 = arith.constant 0 : index
    %c0_40 = arith.constant 0 : index
    %61 = vector.load %arg11[%c0_39, %c0_40] : memref<256x128xf32, #tpu.memory_space<vmem>>, vector<256x128xf32>
    tpu.vector_store %arg11[%c0_39, %c0_40], %60 {strides = array<i32>} : memref<256x128xf32, #tpu.memory_space<vmem>>, vector<256x128xf32>,
    return
  }
  func.func @transform_0(%arg0: i32) -> (i32, i32) {
    %c0_i32 = arith.constant 0 : i32
    %c0_i32_0 = arith.constant 0 : i32
    return %arg0, %c0_i32 : i32, i32
  }
  func.func @transform_1(%arg0: i32) -> (i32, i32) {
    %c0_i32 = arith.constant 0 : i32
    %c0_i32_0 = arith.constant 0 : i32
    %c0_i32_1 = arith.constant 0 : i32
    return %c0_i32, %c0_i32_0 : i32, i32
  }
  func.func @transform_2(%arg0: i32) -> (i32, i32) {
    %c0_i32 = arith.constant 0 : i32
    %c0_i32_0 = arith.constant 0 : i32
    %c0_i32_1 = arith.constant 0 : i32
    return %c0_i32, %c0_i32_0 : i32, i32
  }
  func.func @transform_3(%arg0: i32) -> (i32, i32) {
    %c0_i32 = arith.constant 0 : i32
    %c0_i32_0 = arith.constant 0 : i32
    %c0_i32_1 = arith.constant 0 : i32
    return %c0_i32, %c0_i32_0 : i32, i32
  }
  func.func @transform_4(%arg0: i32) -> (i32, i32) {
    %c0_i32 = arith.constant 0 : i32
    %c0_i32_0 = arith.constant 0 : i32
    %c0_i32_1 = arith.constant 0 : i32
    return %c0_i32, %c0_i32_0 : i32, i32
  }
  func.func @transform_5(%arg0: i32) -> (i32, i32) {
    %c0_i32 = arith.constant 0 : i32
    %c0_i32_0 = arith.constant 0 : i32
    %c0_i32_1 = arith.constant 0 : i32
    return %c0_i32, %c0_i32_0 : i32, i32
  }
  func.func @transform_6(%arg0: i32) -> (i32, i32) {
    %c0_i32 = arith.constant 0 : i32
    %c0_i32_0 = arith.constant 0 : i32
    %c0_i32_1 = arith.constant 0 : i32
    return %c0_i32, %c0_i32_0 : i32, i32
  }
  func.func @transform_7(%arg0: i32) -> (i32, i32) {
    %c0_i32 = arith.constant 0 : i32
    %c0_i32_0 = arith.constant 0 : i32
    %c0_i32_1 = arith.constant 0 : i32
    return %c0_i32, %c0_i32_0 : i32, i32
  }
  func.func @transform_8(%arg0: i32) -> (i32, i32) {
    %c0_i32 = arith.constant 0 : i32
    %c0_i32_0 = arith.constant 0 : i32
    %c0_i32_1 = arith.constant 0 : i32
    return %c0_i32, %c0_i32_0 : i32, i32
  }
  func.func @transform_9(%arg0: i32) -> (i32, i32) {
    %c0_i32 = arith.constant 0 : i32
    %c0_i32_0 = arith.constant 0 : i32
    %c0_i32_1 = arith.constant 0 : i32
    return %c0_i32, %c0_i32_0 : i32, i32
  }
  func.func @transform_10(%arg0: i32) -> (i32, i32) {
    %c0_i32 = arith.constant 0 : i32
    %c0_i32_0 = arith.constant 0 : i32
    return %arg0, %c0_i32 : i32, i32
  }
}

module attributes {stable_mosaic.version = 11 : i64} {
  func.func @kernel(%arg0: i32, %arg1: memref<256x64xf32, #tpu.memory_space<vmem>>, %arg2: memref<64x128xbf16, #tpu.memory_space<vmem>>, %arg3: memref<128x128xbf16, #tpu.memory_space<vmem>>, %arg4: memref<128x128xbf16, #tpu.memory_space<vmem>>, %arg5: memref<128x128xbf16, #tpu.memory_space<vmem>>, %arg6: memref<128x128xbf16, #tpu.memory_space<vmem>>, %arg7: memref<128x128xbf16, #tpu.memory_space<vmem>>, %arg8: memref<128x128xbf16, #tpu.memory_space<vmem>>, %arg9: memref<128x128xbf16, #tpu.memory_space<vmem>>, %arg10: memref<1x1024xf32, #tpu.memory_space<vmem>>, %arg11: memref<256x128xf32, #tpu.memory_space<vmem>>) attributes {dimension_semantics = [#tpu.dimension_semantics<parallel>], iteration_bounds = array<i64: 1>, scalar_prefetch = 0 : i64, scratch_operands = 0 : i64, tpu.core_type = #tpu.core_type<tc>, window_params = [{transform_indices = @transform_0, window_bounds = array<i64: 256, 64>}, {pipeline_mode = #tpu.pipeline_mode<synchronous>, transform_indices = @transform_1, window_bounds = array<i64: 64, 128>}, {pipeline_mode = #tpu.pipeline_mode<synchronous>, transform_indices = @transform_2, window_bounds = array<i64: 128, 128>}, {pipeline_mode = #tpu.pipeline_mode<synchronous>, transform_indices = @transform_3, window_bounds = array<i64: 128, 128>}, {pipeline_mode = #tpu.pipeline_mode<synchronous>, transform_indices = @transform_4, window_bounds = array<i64: 128, 128>}, {pipeline_mode = #tpu.pipeline_mode<synchronous>, transform_indices = @transform_5, window_bounds = array<i64: 128, 128>}, {pipeline_mode = #tpu.pipeline_mode<synchronous>, transform_indices = @transform_6, window_bounds = array<i64: 128, 128>}, {pipeline_mode = #tpu.pipeline_mode<synchronous>, transform_indices = @transform_7, window_bounds = array<i64: 128, 128>}, {pipeline_mode = #tpu.pipeline_mode<synchronous>, transform_indices = @transform_8, window_bounds = array<i64: 128, 128>}, {pipeline_mode = #tpu.pipeline_mode<synchronous>, transform_indices = @transform_9, window_bounds = array<i64: 1, 1024>}, {transform_indices = @transform_10, window_bounds = array<i64: 256, 128>}]} {
    %c0 = arith.constant 0 : index
    %c0_0 = arith.constant 0 : index
    %0 = vector.load %arg1[%c0, %c0_0] : memref<256x64xf32, #tpu.memory_space<vmem>>, vector<256x64xf32>
    %1 = arith.truncf %0 : vector<256x64xf32> to vector<256x64xbf16>
    %c0_1 = arith.constant 0 : index
    %c0_2 = arith.constant 0 : index
    %2 = vector.load %arg2[%c0_1, %c0_2] : memref<64x128xbf16, #tpu.memory_space<vmem>>, vector<64x128xbf16>
    %cst = arith.constant dense<0.000000e+00> : vector<256x128xf32>
    %3 = tpu.matmul %1, %2, %cst {dimension_numbers = #tpu.dot_dimension_numbers<[1], [0], [0], [1], [0, 0, 1, 1], [], []>} : vector<256x64xbf16>, vector<64x128xbf16>, vector<256x128xf32> -> vector<256x128xf32>
    %c0_3 = arith.constant 0 : index
    %c0_4 = arith.constant 0 : index
    %4 = vector.load %arg10[%c0_3, %c0_4] : memref<1x1024xf32, #tpu.memory_space<vmem>>, vector<1x128xf32>
    %5 = vector.broadcast %4 : vector<1x128xf32> to vector<256x128xf32>
    %6 = arith.addf %3, %5 : vector<256x128xf32>
    %cst_5 = arith.constant 0.000000e+00 : f32
    %7 = vector.broadcast %cst_5 : f32 to vector<256x128xf32>
    %8 = arith.maximumf %6, %7 : vector<256x128xf32>
    %9 = arith.truncf %8 : vector<256x128xf32> to vector<256x128xbf16>
    %c0_6 = arith.constant 0 : index
    %c0_7 = arith.constant 0 : index
    %10 = vector.load %arg3[%c0_6, %c0_7] : memref<128x128xbf16, #tpu.memory_space<vmem>>, vector<128x128xbf16>
    %cst_8 = arith.constant dense<0.000000e+00> : vector<256x128xf32>
    %11 = tpu.matmul %9, %10, %cst_8 {dimension_numbers = #tpu.dot_dimension_numbers<[1], [0], [0], [1], [0, 0, 1, 1], [], []>} : vector<256x128xbf16>, vector<128x128xbf16>, vector<256x128xf32> -> vector<256x128xf32>
    %c0_9 = arith.constant 0 : index
    %c128 = arith.constant 128 : index
    %12 = vector.load %arg10[%c0_9, %c128] : memref<1x1024xf32, #tpu.memory_space<vmem>>, vector<1x128xf32>
    %13 = vector.broadcast %12 : vector<1x128xf32> to vector<256x128xf32>
    %14 = arith.addf %11, %13 : vector<256x128xf32>
    %cst_10 = arith.constant 0.000000e+00 : f32
    %15 = vector.broadcast %cst_10 : f32 to vector<256x128xf32>
    %16 = arith.maximumf %14, %15 : vector<256x128xf32>
    %17 = arith.truncf %16 : vector<256x128xf32> to vector<256x128xbf16>
    %c0_11 = arith.constant 0 : index
    %c0_12 = arith.constant 0 : index
    %18 = vector.load %arg4[%c0_11, %c0_12] : memref<128x128xbf16, #tpu.memory_space<vmem>>, vector<128x128xbf16>
    %cst_13 = arith.constant dense<0.000000e+00> : vector<256x128xf32>
    %19 = tpu.matmul %17, %18, %cst_13 {dimension_numbers = #tpu.dot_dimension_numbers<[1], [0], [0], [1], [0, 0, 1, 1], [], []>} : vector<256x128xbf16>, vector<128x128xbf16>, vector<256x128xf32> -> vector<256x128xf32>
    %c0_14 = arith.constant 0 : index
    %c256 = arith.constant 256 : index
    %20 = vector.load %arg10[%c0_14, %c256] : memref<1x1024xf32, #tpu.memory_space<vmem>>, vector<1x128xf32>
    %21 = vector.broadcast %20 : vector<1x128xf32> to vector<256x128xf32>
    %22 = arith.addf %19, %21 : vector<256x128xf32>
    %cst_15 = arith.constant 0.000000e+00 : f32
    %23 = vector.broadcast %cst_15 : f32 to vector<256x128xf32>
    %24 = arith.maximumf %22, %23 : vector<256x128xf32>
    %25 = arith.truncf %24 : vector<256x128xf32> to vector<256x128xbf16>
    %c0_16 = arith.constant 0 : index
    %c0_17 = arith.constant 0 : index
    %26 = vector.load %arg5[%c0_16, %c0_17] : memref<128x128xbf16, #tpu.memory_space<vmem>>, vector<128x128xbf16>
    %cst_18 = arith.constant dense<0.000000e+00> : vector<256x128xf32>
    %27 = tpu.matmul %25, %26, %cst_18 {dimension_numbers = #tpu.dot_dimension_numbers<[1], [0], [0], [1], [0, 0, 1, 1], [], []>} : vector<256x128xbf16>, vector<128x128xbf16>, vector<256x128xf32> -> vector<256x128xf32>
    %c0_19 = arith.constant 0 : index
    %c384 = arith.constant 384 : index
    %28 = vector.load %arg10[%c0_19, %c384] : memref<1x1024xf32, #tpu.memory_space<vmem>>, vector<1x128xf32>
    %29 = vector.broadcast %28 : vector<1x128xf32> to vector<256x128xf32>
    %30 = arith.addf %27, %29 : vector<256x128xf32>
    %31 = arith.truncf %30 : vector<256x128xf32> to vector<256x128xbf16>
    %c0_20 = arith.constant 0 : index
    %c0_21 = arith.constant 0 : index
    %32 = vector.load %arg6[%c0_20, %c0_21] : memref<128x128xbf16, #tpu.memory_space<vmem>>, vector<128x128xbf16>
    %cst_22 = arith.constant dense<0.000000e+00> : vector<256x128xf32>
    %33 = tpu.matmul %31, %32, %cst_22 {dimension_numbers = #tpu.dot_dimension_numbers<[1], [0], [0], [1], [0, 0, 1, 1], [], []>} : vector<256x128xbf16>, vector<128x128xbf16>, vector<256x128xf32> -> vector<256x128xf32>
    %c0_23 = arith.constant 0 : index
    %c512 = arith.constant 512 : index
    %34 = vector.load %arg10[%c0_23, %c512] : memref<1x1024xf32, #tpu.memory_space<vmem>>, vector<1x128xf32>
    %35 = vector.broadcast %34 : vector<1x128xf32> to vector<256x128xf32>
    %36 = arith.addf %33, %35 : vector<256x128xf32>
    %cst_24 = arith.constant 0.000000e+00 : f32
    %37 = vector.broadcast %cst_24 : f32 to vector<256x128xf32>
    %38 = arith.maximumf %36, %37 : vector<256x128xf32>
    %39 = arith.truncf %38 : vector<256x128xf32> to vector<256x128xbf16>
    %c0_25 = arith.constant 0 : index
    %c0_26 = arith.constant 0 : index
    %40 = vector.load %arg7[%c0_25, %c0_26] : memref<128x128xbf16, #tpu.memory_space<vmem>>, vector<128x128xbf16>
    %cst_27 = arith.constant dense<0.000000e+00> : vector<256x128xf32>
    %41 = tpu.matmul %39, %40, %cst_27 {dimension_numbers = #tpu.dot_dimension_numbers<[1], [0], [0], [1], [0, 0, 1, 1], [], []>} : vector<256x128xbf16>, vector<128x128xbf16>, vector<256x128xf32> -> vector<256x128xf32>
    %c0_28 = arith.constant 0 : index
    %c640 = arith.constant 640 : index
    %42 = vector.load %arg10[%c0_28, %c640] : memref<1x1024xf32, #tpu.memory_space<vmem>>, vector<1x128xf32>
    %43 = vector.broadcast %42 : vector<1x128xf32> to vector<256x128xf32>
    %44 = arith.addf %41, %43 : vector<256x128xf32>
    %cst_29 = arith.constant 0.000000e+00 : f32
    %45 = vector.broadcast %cst_29 : f32 to vector<256x128xf32>
    %46 = arith.maximumf %44, %45 : vector<256x128xf32>
    %47 = arith.truncf %46 : vector<256x128xf32> to vector<256x128xbf16>
    %c0_30 = arith.constant 0 : index
    %c0_31 = arith.constant 0 : index
    %48 = vector.load %arg8[%c0_30, %c0_31] : memref<128x128xbf16, #tpu.memory_space<vmem>>, vector<128x128xbf16>
    %cst_32 = arith.constant dense<0.000000e+00> : vector<256x128xf32>
    %49 = tpu.matmul %47, %48, %cst_32 {dimension_numbers = #tpu.dot_dimension_numbers<[1], [0], [0], [1], [0, 0, 1, 1], [], []>} : vector<256x128xbf16>, vector<128x128xbf16>, vector<256x128xf32> -> vector<256x128xf32>
    %c0_33 = arith.constant 0 : index
    %c768 = arith.constant 768 : index
    %50 = vector.load %arg10[%c0_33, %c768] : memref<1x1024xf32, #tpu.memory_space<vmem>>, vector<1x128xf32>
    %51 = vector.broadcast %50 : vector<1x128xf32> to vector<256x128xf32>
    %52 = arith.addf %49, %51 : vector<256x128xf32>
    %cst_34 = arith.constant 0.000000e+00 : f32
    %53 = vector.broadcast %cst_34 : f32 to vector<256x128xf32>
    %54 = arith.maximumf %52, %53 : vector<256x128xf32>
    %55 = arith.truncf %54 : vector<256x128xf32> to vector<256x128xbf16>
    %c0_35 = arith.constant 0 : index
    %c0_36 = arith.constant 0 : index
    %56 = vector.load %arg9[%c0_35, %c0_36] : memref<128x128xbf16, #tpu.memory_space<vmem>>, vector<128x128xbf16>
    %cst_37 = arith.constant dense<0.000000e+00> : vector<256x128xf32>
    %57 = tpu.matmul %55, %56, %cst_37 {dimension_numbers = #tpu.dot_dimension_numbers<[1], [0], [0], [1], [0, 0, 1, 1], [], []>} : vector<256x128xbf16>, vector<128x128xbf16>, vector<256x128xf32> -> vector<256x128xf32>
    %c0_38 = arith.constant 0 : index
    %c896 = arith.constant 896 : index
    %58 = vector.load %arg10[%c0_38, %c896] : memref<1x1024xf32, #tpu.memory_space<vmem>>, vector<1x128xf32>
    %59 = vector.broadcast %58 : vector<1x128xf32> to vector<256x128xf32>
    %60 = arith.addf %57, %59 : vector<256x128xf32>
    %c0_39 = arith.constant 0 : index
    %c0_40 = arith.constant 0 : index
    %61 = vector.load %arg11[%c0_39, %c0_40] : memref<256x128xf32, #tpu.memory_space<vmem>>, vector<256x128xf32>
    tpu.vector_store %arg11[%c0_39, %c0_40], %60 {strides = array<i32>} : memref<256x128xf32, #tpu.memory_space<vmem>>, vector<256x128xf32>,
    return
  }
  func.func @transform_0(%arg0: i32) -> (i32, i32) {
    %c0_i32 = arith.constant 0 : i32
    %c0_i32_0 = arith.constant 0 : i32
    return %arg0, %c0_i32 : i32, i32
  }
  func.func @transform_1(%arg0: i32) -> (i32, i32) {
    %c0_i32 = arith.constant 0 : i32
    %c0_i32_0 = arith.constant 0 : i32
    %c0_i32_1 = arith.constant 0 : i32
    return %c0_i32, %c0_i32_0 : i32, i32
  }
  func.func @transform_2(%arg0: i32) -> (i32, i32) {
    %c0_i32 = arith.constant 0 : i32
    %c0_i32_0 = arith.constant 0 : i32
    %c0_i32_1 = arith.constant 0 : i32
    return %c0_i32, %c0_i32_0 : i32, i32
  }
  func.func @transform_3(%arg0: i32) -> (i32, i32) {
    %c0_i32 = arith.constant 0 : i32
    %c0_i32_0 = arith.constant 0 : i32
    %c0_i32_1 = arith.constant 0 : i32
    return %c0_i32, %c0_i32_0 : i32, i32
  }
  func.func @transform_4(%arg0: i32) -> (i32, i32) {
    %c0_i32 = arith.constant 0 : i32
    %c0_i32_0 = arith.constant 0 : i32
    %c0_i32_1 = arith.constant 0 : i32
    return %c0_i32, %c0_i32_0 : i32, i32
  }
  func.func @transform_5(%arg0: i32) -> (i32, i32) {
    %c0_i32 = arith.constant 0 : i32
    %c0_i32_0 = arith.constant 0 : i32
    %c0_i32_1 = arith.constant 0 : i32
    return %c0_i32, %c0_i32_0 : i32, i32
  }
  func.func @transform_6(%arg0: i32) -> (i32, i32) {
    %c0_i32 = arith.constant 0 : i32
    %c0_i32_0 = arith.constant 0 : i32
    %c0_i32_1 = arith.constant 0 : i32
    return %c0_i32, %c0_i32_0 : i32, i32
  }
  func.func @transform_7(%arg0: i32) -> (i32, i32) {
    %c0_i32 = arith.constant 0 : i32
    %c0_i32_0 = arith.constant 0 : i32
    %c0_i32_1 = arith.constant 0 : i32
    return %c0_i32, %c0_i32_0 : i32, i32
  }
  func.func @transform_8(%arg0: i32) -> (i32, i32) {
    %c0_i32 = arith.constant 0 : i32
    %c0_i32_0 = arith.constant 0 : i32
    %c0_i32_1 = arith.constant 0 : i32
    return %c0_i32, %c0_i32_0 : i32, i32
  }
  func.func @transform_9(%arg0: i32) -> (i32, i32) {
    %c0_i32 = arith.constant 0 : i32
    %c0_i32_0 = arith.constant 0 : i32
    %c0_i32_1 = arith.constant 0 : i32
    return %c0_i32, %c0_i32_0 : i32, i32
  }
  func.func @transform_10(%arg0: i32) -> (i32, i32) {
    %c0_i32 = arith.constant 0 : i32
    %c0_i32_0 = arith.constant 0 : i32
    return %arg0, %c0_i32 : i32, i32
  }
}

</mosaic_0001>

<bundles_post_ra>
// kernel: tpu_custom_call.1
= control target key start
LH: loop header
LB: loop body
LE: loop exit
PB: predicated region body
PF: predicated region fallthrough
CT: control target
= control target key end

     0   :  { %15 = vsyncpa [#allocation3], 0  ;;  %s2796_s0 = inlined_call_operand.vmem [shape: f32[256,64], index: 0, kind: input, shape index: {}]   ;;  %s2797_s1 = inlined_call_operand.hbm [shape: bf16[64,128], index: 1, kind: input, shape index: {}]   ;;  %s2798_s2 = inlined_call_operand.vmem [shape: bf16[128,128], index: 2, kind: input, shape index: {}]   ;;  %s2799_s3 = inlined_call_operand.vmem [shape: bf16[128,128], index: 3, kind: input, shape index: {}]   ;;  %s2800_s4 = inlined_call_operand.vmem [shape: bf16[128,128], index: 4, kind: input, shape index: {}]   ;;  %s2801_s5 = inlined_call_operand.vmem [shape: bf16[128,128], index: 5, kind: input, shape index: {}]   ;;  %s2802_s6 = inlined_call_operand.vmem [shape: bf16[128,128], index: 6, kind: input, shape index: {}]   ;;  %s2803_s7 = inlined_call_operand.vmem [shape: bf16[128,128], index: 7, kind: input, shape index: {}]   ;;  %s2804_s8 = inlined_call_operand.hbm [shape: bf16[128,128], index: 8, kind: input, shape index: {}]   ;;  %s2805_s9 = inlined_call_operand.hbm [shape: f32[1,1024], index: 9, kind: input, shape index: {}]   ;;  %s2806_s10 = inlined_call_operand.hbm [shape: f32[256,128], index: 10, kind: output, shape index: {}]  }
   0x1   :  { %16 = vsyncpa [#allocation6], 0 }
   0x2   :  { %17 = vsyncpa [#allocation4], 0  ;;  %s49_s15 = sshll.u32 %s2804_s8, 4  ;;  %s2193_s16 = smov [#allocation5]   ;;  %s50_s15 = int_to_ptr.hbm [resolvable:$true] %s49_s15 }
   0x3   :  { %s51_s17 = sshll.u32 %s2193_s16, 4  ;;  %s24_s20 = sshll.u32 %s2797_s1, 4  ;;  %s52_s17 = int_to_ptr.vmem [resolvable:$true] %s51_s17  ;;  %s25_s20 = int_to_ptr.hbm [resolvable:$true] %s24_s20 }
   0x4   :  { %s2194_s21 = smov 64   ;;  %s2195_s22 = smov 4  }
   0x5   :  { %57 = dma.hbm_to_vmem [thread:$0]  %s50_s15, 1024, %s52_s17, [#allocation6], %s2194_s21, %s2194_s21, %s2195_s22  }
   0x6   :  { %s2196_s23 = smov [#allocation2]   ;;  %s63_s27 = sshll.u32 %s2805_s9, 4  ;;  %s64_s27 = int_to_ptr.hbm [resolvable:$true] %s63_s27 }
   0x7   :  { %s26_s24 = sshll.u32 %s2196_s23, 4  ;;  %s2197_s8 = smov [#allocation7]   ;;  %s27_s24 = int_to_ptr.vmem [resolvable:$true] %s26_s24 }
   0x8   :  { %32 = dma.hbm_to_vmem [thread:$0]  %s25_s20, 512, %s27_s24, [#allocation3], %s2194_s21, %s2194_s21, %s2195_s22  }
   0x9   :  { %s65_s28 = sshll.u32 %s2197_s8, 4  ;;  %s66_s28 = int_to_ptr.vmem [resolvable:$true] %s65_s28 }
   0xa   :  { %68 = dma.hbm_to_vmem [thread:$0]  %s64_s27, 128, %s66_s28, [#allocation6]  }
   0xb   :  { %2187 = dma.done.wait [#allocation3], 512  }
   0xc   :  { %2188 = vsyncadd [#allocation3], 4294966784 }
   0xd   :  { %2189 = dma.done.wait [#allocation6], 1152  }
   0xe   :  { %2190 = vsyncadd [#allocation6], 4294966144  ;;  %v2018_v0 = vld [vmem:[#allocation2 + $0x18] sm:$0xff]  ;;  %v2017_v1 = vld [vmem:[#allocation2 + $0x10] sm:$0xff]  ;;  %vm166_vm0 = vcmask 523264   ;;  %s1745_s17 = sshll.u32 %s2806_s10, 4  ;;  %s1746_s17 = int_to_ptr.hbm [resolvable:$true] %s1745_s17 }
   0xf   :  { %219 = vmatpush.bf16.msra.mxu0 %v2018_v0  ;;  %v2016_v2 = vld [vmem:[#allocation2 + $0x8] sm:$0xff]  ;;  %v2015_v3 = vld [vmem:[#allocation2] sm:$0xff]  ;;  %v84_v7 = vld [vmem:[%s2796_s0 + $0x10] sm:$0xff]  ;;  %s2199_s18 = smov 128  }
  0x10   :  { %v82_v4 = vld [vmem:[%s2796_s0] sm:$0xff]  ;;  %v83_v5 = vld [vmem:[%s2796_s0 + $0x8] sm:$0xff]  ;;  %v85_v8 = vld [vmem:[%s2796_s0 + $0x18] sm:$0xff] }
  0x11   :  { %v114_v6 = vpack.c.bf16 %v83_v5, %v82_v4  ;;  %v115_v9 = vpack.c.bf16 %v85_v8, %v84_v7  ;;  %v86_v10 = vld [vmem:[%s2796_s0 + $0x20] sm:$0xff]  ;;  %v87_v11 = vld [vmem:[%s2796_s0 + $0x28] sm:$0xff]  ;;  %v88_v13 = vld [vmem:[%s2796_s0 + $0x30] sm:$0xff] }
  0x12   :  { %v116_v12 = vpack.c.bf16 %v87_v11, %v86_v10  ;;  %v89_v14 = vld [vmem:[%s2796_s0 + $0x38] sm:$0xff]  ;;  %v90_v16 = vld [vmem:[%s2796_s0 + $0x40] sm:$0xff]  ;;  %v91_v17 = vld [vmem:[%s2796_s0 + $0x48] sm:$0xff] }
  0x13   :  { %220 = vmatpush.bf16.msra.mxu0 %v2017_v1  ;;  %v117_v15 = vpack.c.bf16 %v89_v14, %v88_v13  ;;  %v118_v18 = vpack.c.bf16 %v91_v17, %v90_v16  ;;  %v2026_v19 = vld [vmem:[%s2798_s2 + $0x38] sm:$0xff]  ;;  %v92_v20 = vld [vmem:[%s2796_s0 + $0x50] sm:$0xff]  ;;  %v2024_v24 = vld [vmem:[%s2798_s2 + $0x28] sm:$0xff] }
  0x14   :  { %420 = vmatpush.bf16.msra.mxu1 %v2026_v19  ;;  %v93_v21 = vld [vmem:[%s2796_s0 + $0x58] sm:$0xff]  ;;  %v2025_v23 = vld [vmem:[%s2798_s2 + $0x30] sm:$0xff]  ;;  %v2023_v25 = vld [vmem:[%s2798_s2 + $0x20] sm:$0xff] }
  0x15   :  { %v119_v22 = vpack.c.bf16 %v93_v21, %v92_v20  ;;  %v94_v26 = vld [vmem:[%s2796_s0 + $0x60] sm:$0xff]  ;;  %v95_v27 = vld [vmem:[%s2796_s0 + $0x68] sm:$0xff]  ;;  %v2022_v28 = vld [vmem:[%s2798_s2 + $0x18] sm:$0xff] }
  0x16   :  { %v120_v29 = vpack.c.bf16 %v95_v27, %v94_v26  ;;  %v2021_v30 = vld [vmem:[%s2798_s2 + $0x10] sm:$0xff]  ;;  %v2020_v31 = vld [vmem:[%s2798_s2 + $0x8] sm:$0xff]  ;;  %v2019_v32 = vld [vmem:[%s2798_s2] sm:$0xff] }
  0x17   :  { %221 = vmatpush.bf16.msra.mxu0 %v2016_v2  ;;  %v96_v33 = vld [vmem:[%s2796_s0 + $0x70] sm:$0xff]  ;;  %v97_v34 = vld [vmem:[%s2796_s0 + $0x78] sm:$0xff]  ;;  %v98_v36 = vld [vmem:[%s2796_s0 + $0x80] sm:$0xff] }
  0x18   :  { %421 = vmatpush.bf16.msra.mxu1 %v2025_v23  ;;  %v121_v35 = vpack.c.bf16 %v97_v34, %v96_v33  ;;  %v99_v37 = vld [vmem:[%s2796_s0 + $0x88] sm:$0xff]  ;;  %v2351_v40 = vld [vmem:[#allocation7] ss:$0 sm:$0xff]  ;;  %v100_v46 = vld [vmem:[%s2796_s0 + $0x90] sm:$0xff] }
  0x19   :  { %v122_v38 = vpack.c.bf16 %v99_v37, %v98_v36  ;;  %v101_v47 = vld [vmem:[%s2796_s0 + $0x98] sm:$0xff]  ;;  %v102_v56 = vld [vmem:[%s2796_s0 + $0xa0] sm:$0xff]  ;;  %v103_v57 = vld [vmem:[%s2796_s0 + $0xa8] sm:$0xff] }
  0x1a   :  { %v123_v49 = vpack.c.bf16 %v101_v47, %v100_v46  ;;  %v124_v59 = vpack.c.bf16 %v103_v57, %v102_v56  ;;  %v104_v2 = vld [vmem:[%s2796_s0 + $0xb0] sm:$0xff]  ;;  %v107_v13 = vld [vmem:[%s2796_s0 + $0xc8] sm:$0xff]  ;;  %v109_v23 = vld [vmem:[%s2796_s0 + $0xd8] sm:$0xff] }
  0x1b   :  { %222 = vmatpush.bf16.msra.mxu0 %v2015_v3  ;;  %v105_v3 = vld [vmem:[%s2796_s0 + $0xb8] sm:$0xff]  ;;  %v110_v33 = vld [vmem:[%s2796_s0 + $0xe0] sm:$0xff]  ;;  %v111_v34 = vld [vmem:[%s2796_s0 + $0xe8] sm:$0xff] }
  0x1c   :  { %422 = vmatpush.bf16.msra.mxu1 %v2024_v24  ;;  %v125_v5 = vpack.c.bf16 %v105_v3, %v104_v2  ;;  %v2033_v36 = vld [vmem:[%s2799_s3 + $0x30] sm:$0xff]  ;;  %v128_v37 = vpack.c.bf16 %v111_v34, %v110_v33 }
  0x1e   :  { %1775 = vmatmul.msk.bf16.vlgmr.msra.gmra.mxu0 %vm166_vm0, %v114_v6 }
  0x20   :  { %423 = vmatpush.bf16.msra.mxu1 %v2023_v25 }
  0x24   :  { %424 = vmatpush.bf16.msra.mxu1 %v2022_v28 }
  0x28   :  { %425 = vmatpush.bf16.msra.mxu1 %v2021_v30  ;;  %v2034_v30 = vld [vmem:[%s2799_s3 + $0x38] sm:$0xff] }
  0x29   :  { %625 = vmatpush.bf16.msra.mxu2 %v2034_v30 }
  0x2c   :  { %426 = vmatpush.bf16.msra.mxu1 %v2020_v31 }
  0x2d   :  { %626 = vmatpush.bf16.msra.mxu2 %v2033_v36 }
  0x2e   :  { %1776 = vmatmul.msk.bf16.gmra.mxu0 %vm166_vm0, %v115_v9 }
  0x30   :  { %427 = vmatpush.bf16.msra.mxu1 %v2019_v32 }
  0x3e   :  { %1777 = vmatmul.msk.bf16.gmra.mxu0 %vm166_vm0, %v116_v12  ;;  %v106_v12 = vld [vmem:[%s2796_s0 + $0xc0] sm:$0xff] }
  0x4e   :  { %1778 = vmatmul.msk.bf16.gmra.mxu0 %vm166_vm0, %v117_v15  ;;  %v126_v15 = vpack.c.bf16 %v107_v13, %v106_v12 }
  0x5e   :  { %1779 = vmatmul.msk.bf16.gmra.mxu0 %vm166_vm0, %v118_v18 }
  0x6e   :  { %1780 = vmatmul.msk.bf16.gmra.mxu0 %vm166_vm0, %v119_v22  ;;  %v108_v22 = vld [vmem:[%s2796_s0 + $0xd0] sm:$0xff] }
  0x6f   :  { %v127_v25 = vpack.c.bf16 %v109_v23, %v108_v22 }
  0x7e   :  { %1781 = vmatmul.msk.bf16.gmra.mxu0 %vm166_vm0, %v120_v29 }
  0x8e   :  { %1782 = vmatmul.msk.bf16.gmra.mxu0 %vm166_vm0, %v121_v35 }
  0x9b   :  { %v224_v39 = vpop.f32.mrf.mxu0 }
  0x9c   :  { %v225_v41 = vadd.f32 %v2351_v40, %v224_v39  ;;  %v2032_v39 = vld [vmem:[%s2799_s3 + $0x28] sm:$0xff] }
  0x9d   :  { %627 = vmatpush.bf16.msra.mxu2 %v2032_v39 }
  0x9e   :  { %1783 = vmatmul.msk.bf16.gmra.mxu0 %vm166_vm0, %v122_v38  ;;  %v304_v44 = vmax.f32 %v225_v41, 0.0  ;;  %v2031_v41 = vld [vmem:[%s2799_s3 + $0x20] sm:$0xff] }
  0xa1   :  { %628 = vmatpush.bf16.msra.mxu2 %v2031_v41 }
  0xa3   :  { %v226_v42 = vpop.f32.mrf.mxu0 }
  0xa4   :  { %v227_v43 = vadd.f32 %v2351_v40, %v226_v42 }
  0xa6   :  { %v305_v45 = vmax.f32 %v227_v43, 0.0 }
  0xa8   :  { %v336_v48 = vpack.c.bf16 %v305_v45, %v304_v44  ;;  %v2030_v45 = vld [vmem:[%s2799_s3 + $0x18] sm:$0xff] }
  0xa9   :  { %629 = vmatpush.bf16.msra.mxu2 %v2030_v45 }
  0xaa   :  { %428 = vmatmul.bf16.vlgmr.msra.gmra.mxu1 %v336_v48  ;;  %v112_v48 = vld [vmem:[%s2796_s0 + $0xf0] sm:$0xff] }
  0xab   :  { %v229_v50 = vpop.f32.mrf.mxu0 }
  0xac   :  { %v230_v51 = vadd.f32 %v2351_v40, %v229_v50 }
  0xae   :  { %1784 = vmatmul.msk.bf16.gmra.mxu0 %vm166_vm0, %v123_v49  ;;  %v306_v54 = vmax.f32 %v230_v51, 0.0  ;;  %v113_v49 = vld [vmem:[%s2796_s0 + $0xf8] sm:$0xff]  ;;  %v2029_v51 = vld [vmem:[%s2799_s3 + $0x10] sm:$0xff] }
  0xaf   :  { %630 = vmatpush.bf16.msra.mxu2 %v2029_v51  ;;  %v2049_v51 = vld [vmem:[%s2801_s5 + $0x30] sm:$0xff] }
  0xb3   :  { %v231_v52 = vpop.f32.mrf.mxu0 }
  0xb4   :  { %v232_v53 = vadd.f32 %v2351_v40, %v231_v52  ;;  %v129_v52 = vpack.c.bf16 %v113_v49, %v112_v48 }
  0xb6   :  { %v307_v55 = vmax.f32 %v232_v53, 0.0 }
  0xb8   :  { %v337_v58 = vpack.c.bf16 %v307_v55, %v306_v54  ;;  %v2028_v54 = vld [vmem:[%s2799_s3 + $0x8] sm:$0xff]  ;;  %v2027_v55 = vld [vmem:[%s2799_s3] sm:$0xff] }
  0xb9   :  { %631 = vmatpush.bf16.msra.mxu2 %v2028_v54 }
  0xba   :  { %433 = vmatmul.bf16.gmra.mxu1 %v337_v58 }
  0xbb   :  { %v234_v60 = vpop.f32.mrf.mxu0 }
  0xbc   :  { %v235_v61 = vadd.f32 %v2351_v40, %v234_v60 }
  0xbd   :  { %632 = vmatpush.bf16.msra.mxu2 %v2027_v55 }
  0xbe   :  { %1785 = vmatmul.msk.bf16.gmra.mxu0 %vm166_vm0, %v124_v59  ;;  %v308_v0 = vmax.f32 %v235_v61, 0.0 }
  0xc3   :  { %v236_v62 = vpop.f32.mrf.mxu0 }
  0xc4   :  { %v237_v63 = vadd.f32 %v2351_v40, %v236_v62 }
  0xc6   :  { %v309_v1 = vmax.f32 %v237_v63, 0.0 }
  0xc8   :  { %v338_v4 = vpack.c.bf16 %v309_v1, %v308_v0 }
  0xca   :  { %438 = vmatmul.bf16.gmra.mxu1 %v338_v4 }
  0xcb   :  { %v239_v6 = vpop.f32.mrf.mxu0 }
  0xcc   :  { %v240_v7 = vadd.f32 %v2351_v40, %v239_v6  ;;  %v2445_v6 = vld [vmem:[#allocation7 + $0x1] ss:$0 sm:$0xff] }
  0xce   :  { %1786 = vmatmul.msk.bf16.gmra.mxu0 %vm166_vm0, %v125_v5  ;;  %v310_v10 = vmax.f32 %v240_v7, 0.0 }
  0xd3   :  { %v241_v8 = vpop.f32.mrf.mxu0 }
  0xd4   :  { %v242_v9 = vadd.f32 %v2351_v40, %v241_v8 }
  0xd6   :  { %v311_v11 = vmax.f32 %v242_v9, 0.0 }
  0xd8   :  { %v339_v14 = vpack.c.bf16 %v311_v11, %v310_v10 }
  0xda   :  { %443 = vmatmul.bf16.gmra.mxu1 %v339_v14 }
  0xdb   :  { %v244_v16 = vpop.f32.mrf.mxu0 }
  0xdc   :  { %v245_v17 = vadd.f32 %v2351_v40, %v244_v16 }
  0xde   :  { %1787 = vmatmul.msk.bf16.gmra.mxu0 %vm166_vm0, %v126_v15  ;;  %v312_v20 = vmax.f32 %v245_v17, 0.0 }
  0xe3   :  { %v246_v18 = vpop.f32.mrf.mxu0 }
  0xe4   :  { %v247_v19 = vadd.f32 %v2351_v40, %v246_v18 }
  0xe6   :  { %v313_v21 = vmax.f32 %v247_v19, 0.0 }
  0xe8   :  { %v340_v24 = vpack.c.bf16 %v313_v21, %v312_v20  ;;  %v2050_v21 = vld [vmem:[%s2801_s5 + $0x38] sm:$0xff] }
  0xe9   :  { %1003 = vmatpush.bf16.msrb.mxu0 %v2050_v21 }
  0xea   :  { %448 = vmatmul.bf16.gmra.mxu1 %v340_v24 }
  0xeb   :  { %v249_v26 = vpop.f32.mrf.mxu0 }
  0xec   :  { %v250_v27 = vadd.f32 %v2351_v40, %v249_v26 }
  0xed   :  { %1004 = vmatpush.bf16.msrb.mxu0 %v2049_v51 }
  0xee   :  { %1788 = vmatmul.msk.bf16.gmra.mxu0 %vm166_vm0, %v127_v25  ;;  %v314_v31 = vmax.f32 %v250_v27, 0.0 }
  0xf3   :  { %v251_v28 = vpop.f32.mrf.mxu0 }
  0xf4   :  { %v252_v29 = vadd.f32 %v2351_v40, %v251_v28 }
  0xf6   :  { %v315_v32 = vmax.f32 %v252_v29, 0.0 }
  0xf8   :  { %v341_v35 = vpack.c.bf16 %v315_v32, %v314_v31 }
  0xfa   :  { %453 = vmatmul.bf16.gmra.mxu1 %v341_v35 }
  0xfb   :  { %v254_v38 = vpop.f32.mrf.mxu0 }
  0xfc   :  { %v255_v42 = vadd.f32 %v2351_v40, %v254_v38 }
  0xfe   :  { %1789 = vmatmul.msk.bf16.gmra.mxu0 %vm166_vm0, %v128_v37  ;;  %v316_v46 = vmax.f32 %v255_v42, 0.0 }
 0x103   :  { %v256_v43 = vpop.f32.mrf.mxu0 }
 0x104   :  { %v257_v44 = vadd.f32 %v2351_v40, %v256_v43 }
 0x106   :  { %v317_v47 = vmax.f32 %v257_v44, 0.0 }
 0x108   :  { %v342_v50 = vpack.c.bf16 %v317_v47, %v316_v46 }
 0x10a   :  { %458 = vmatmul.bf16.gmra.mxu1 %v342_v50 }
 0x10b   :  { %v259_v53 = vpop.f32.mrf.mxu0 }
 0x10c   :  { %v260_v56 = vadd.f32 %v2351_v40, %v259_v53 }
 0x10e   :  { %1790 = vmatmul.msk.bf16.gmra.mxu0 %vm166_vm0, %v129_v52  ;;  %v318_v59 = vmax.f32 %v260_v56, 0.0 }
 0x113   :  { %v261_v57 = vpop.f32.mrf.mxu0 }
 0x114   :  { %v262_v58 = vadd.f32 %v2351_v40, %v261_v57 }
 0x116   :  { %v319_v60 = vmax.f32 %v262_v58, 0.0 }
 0x118   :  { %v343_v61 = vpack.c.bf16 %v319_v60, %v318_v59 }
 0x11a   :  { %463 = vmatmul.bf16.gmra.mxu1 %v343_v61 }
 0x11b   :  { %v264_v62 = vpop.f32.mrf.mxu0 }
 0x11c   :  { %v265_v63 = vadd.f32 %v2351_v40, %v264_v62 }
 0x11e   :  { %v320_v2 = vmax.f32 %v265_v63, 0.0 }
 0x123   :  { %v266_v0 = vpop.f32.mrf.mxu0 }
 0x124   :  { %v267_v1 = vadd.f32 %v2351_v40, %v266_v0 }
 0x126   :  { %v321_v3 = vmax.f32 %v267_v1, 0.0 }
 0x127   :  { %v429_v4 = vpop.f32.mrf.mxu1 }
 0x128   :  { %v344_v5 = vpack.c.bf16 %v321_v3, %v320_v2  ;;  %v430_v8 = vadd.f32 %v2445_v6, %v429_v4 }
 0x12a   :  { %468 = vmatmul.bf16.gmra.mxu1 %v344_v5  ;;  %v509_v11 = vmax.f32 %v430_v8, 0.0 }
 0x12b   :  { %v269_v7 = vpop.f32.mrf.mxu0 }
 0x12c   :  { %v270_v12 = vadd.f32 %v2351_v40, %v269_v7 }
 0x12e   :  { %v322_v17 = vmax.f32 %v270_v12, 0.0 }
 0x12f   :  { %v431_v9 = vpop.f32.mrf.mxu1 }
 0x130   :  { %v432_v10 = vadd.f32 %v2445_v6, %v431_v9 }
 0x132   :  { %v510_v13 = vmax.f32 %v432_v10, 0.0 }
 0x133   :  { %v271_v14 = vpop.f32.mrf.mxu0 }
 0x134   :  { %v272_v15 = vadd.f32 %v2351_v40, %v271_v14  ;;  %v541_v16 = vpack.c.bf16 %v510_v13, %v509_v11 }
 0x136   :  { %v323_v18 = vmax.f32 %v272_v15, 0.0  ;;  %633 = vmatmul.bf16.vlgmr.msra.gmra.mxu2 %v541_v16 }
 0x137   :  { %v434_v19 = vpop.f32.mrf.mxu1 }
 0x138   :  { %v345_v20 = vpack.c.bf16 %v323_v18, %v322_v17  ;;  %v435_v23 = vadd.f32 %v2445_v6, %v434_v19  ;;  %v2048_v17 = vld [vmem:[%s2801_s5 + $0x28] sm:$0xff] }
 0x139   :  { %1005 = vmatpush.bf16.msrb.mxu0 %v2048_v17 }
 0x13a   :  { %473 = vmatmul.bf16.gmra.mxu1 %v345_v20  ;;  %v511_v26 = vmax.f32 %v435_v23, 0.0 }
 0x13b   :  { %v274_v22 = vpop.f32.mrf.mxu0 }
 0x13c   :  { %v275_v27 = vadd.f32 %v2351_v40, %v274_v22 }
 0x13e   :  { %v324_v32 = vmax.f32 %v275_v27, 0.0 }
 0x13f   :  { %v436_v24 = vpop.f32.mrf.mxu1 }
 0x140   :  { %v437_v25 = vadd.f32 %v2445_v6, %v436_v24 }
 0x142   :  { %v512_v28 = vmax.f32 %v437_v25, 0.0 }
 0x143   :  { %v276_v29 = vpop.f32.mrf.mxu0 }
 0x144   :  { %v277_v30 = vadd.f32 %v2351_v40, %v276_v29  ;;  %v542_v31 = vpack.c.bf16 %v512_v28, %v511_v26 }
 0x146   :  { %v325_v33 = vmax.f32 %v277_v30, 0.0  ;;  %638 = vmatmul.bf16.gmra.mxu2 %v542_v31  ;;  %v2042_v31 = vld [vmem:[%s2800_s4 + $0x38] sm:$0xff] }
 0x147   :  { %v439_v34 = vpop.f32.mrf.mxu1  ;;  %830 = vmatpush.bf16.msra.mxu3 %v2042_v31 }
 0x148   :  { %v346_v35 = vpack.c.bf16 %v325_v33, %v324_v32  ;;  %v440_v37 = vadd.f32 %v2445_v6, %v439_v34  ;;  %v2041_v33 = vld [vmem:[%s2800_s4 + $0x30] sm:$0xff] }
 0x14a   :  { %478 = vmatmul.bf16.gmra.mxu1 %v346_v35  ;;  %v513_v41 = vmax.f32 %v440_v37, 0.0  ;;  %v2040_v37 = vld [vmem:[%s2800_s4 + $0x28] sm:$0xff] }
 0x14b   :  { %v279_v36 = vpop.f32.mrf.mxu0  ;;  %831 = vmatpush.bf16.msra.mxu3 %v2041_v33 }
 0x14c   :  { %v280_v42 = vadd.f32 %v2351_v40, %v279_v36 }
 0x14e   :  { %v326_v47 = vmax.f32 %v280_v42, 0.0 }
 0x14f   :  { %v441_v38 = vpop.f32.mrf.mxu1  ;;  %832 = vmatpush.bf16.msra.mxu3 %v2040_v37 }
 0x150   :  { %v442_v39 = vadd.f32 %v2445_v6, %v441_v38 }
 0x152   :  { %v514_v43 = vmax.f32 %v442_v39, 0.0 }
 0x153   :  { %v281_v44 = vpop.f32.mrf.mxu0 }
 0x154   :  { %v282_v45 = vadd.f32 %v2351_v40, %v281_v44  ;;  %v543_v46 = vpack.c.bf16 %v514_v43, %v513_v41  ;;  %v2039_v43 = vld [vmem:[%s2800_s4 + $0x20] sm:$0xff] }
 0x155   :  { %833 = vmatpush.bf16.msra.mxu3 %v2039_v43 }
 0x156   :  { %v327_v48 = vmax.f32 %v282_v45, 0.0  ;;  %643 = vmatmul.bf16.gmra.mxu2 %v543_v46 }
 0x157   :  { %v444_v49 = vpop.f32.mrf.mxu1 }
 0x158   :  { %v347_v50 = vpack.c.bf16 %v327_v48, %v326_v47  ;;  %v445_v53 = vadd.f32 %v2445_v6, %v444_v49 }
 0x15a   :  { %483 = vmatmul.bf16.gmra.mxu1 %v347_v50  ;;  %v515_v56 = vmax.f32 %v445_v53, 0.0  ;;  %v2038_v50 = vld [vmem:[%s2800_s4 + $0x18] sm:$0xff] }
 0x15b   :  { %v284_v52 = vpop.f32.mrf.mxu0  ;;  %834 = vmatpush.bf16.msra.mxu3 %v2038_v50 }
 0x15c   :  { %v285_v57 = vadd.f32 %v2351_v40, %v284_v52  ;;  %v2047_v52 = vld [vmem:[%s2801_s5 + $0x20] sm:$0xff] }
 0x15d   :  { %1006 = vmatpush.bf16.msrb.mxu0 %v2047_v52 }
 0x15e   :  { %v328_v62 = vmax.f32 %v285_v57, 0.0 }
 0x15f   :  { %v446_v54 = vpop.f32.mrf.mxu1 }
 0x160   :  { %v447_v55 = vadd.f32 %v2445_v6, %v446_v54 }
 0x162   :  { %v516_v58 = vmax.f32 %v447_v55, 0.0  ;;  %v2036_v55 = vld [vmem:[%s2800_s4 + $0x8] sm:$0xff] }
 0x163   :  { %v286_v59 = vpop.f32.mrf.mxu0 }
 0x164   :  { %v287_v60 = vadd.f32 %v2351_v40, %v286_v59  ;;  %v544_v61 = vpack.c.bf16 %v516_v58, %v515_v56  ;;  %v2035_v59 = vld [vmem:[%s2800_s4] sm:$0xff] }
 0x166   :  { %v329_v63 = vmax.f32 %v287_v60, 0.0  ;;  %648 = vmatmul.bf16.gmra.mxu2 %v544_v61 }
 0x167   :  { %v449_v0 = vpop.f32.mrf.mxu1 }
 0x168   :  { %v348_v1 = vpack.c.bf16 %v329_v63, %v328_v62  ;;  %v450_v3 = vadd.f32 %v2445_v6, %v449_v0 }
 0x16a   :  { %488 = vmatmul.bf16.gmra.mxu1 %v348_v1  ;;  %v517_v7 = vmax.f32 %v450_v3, 0.0 }
 0x16b   :  { %v289_v2 = vpop.f32.mrf.mxu0 }
 0x16c   :  { %v290_v8 = vadd.f32 %v2351_v40, %v289_v2 }
 0x16e   :  { %v330_v13 = vmax.f32 %v290_v8, 0.0  ;;  %v2518_v8 = vld [vmem:[#allocation7 + $0x2] ss:$0 sm:$0xff] }
 0x16f   :  { %v451_v4 = vpop.f32.mrf.mxu1 }
 0x170   :  { %v452_v5 = vadd.f32 %v2445_v6, %v451_v4 }
 0x172   :  { %v518_v9 = vmax.f32 %v452_v5, 0.0 }
 0x173   :  { %v291_v10 = vpop.f32.mrf.mxu0 }
 0x174   :  { %v292_v11 = vadd.f32 %v2351_v40, %v291_v10  ;;  %v545_v12 = vpack.c.bf16 %v518_v9, %v517_v7  ;;  %v2046_v7 = vld [vmem:[%s2801_s5 + $0x18] sm:$0xff] }
 0x175   :  { %1007 = vmatpush.bf16.msrb.mxu0 %v2046_v7 }
 0x176   :  { %v331_v14 = vmax.f32 %v292_v11, 0.0  ;;  %653 = vmatmul.bf16.gmra.mxu2 %v545_v12 }
 0x177   :  { %v454_v15 = vpop.f32.mrf.mxu1 }
 0x178   :  { %v349_v16 = vpack.c.bf16 %v331_v14, %v330_v13  ;;  %v455_v19 = vadd.f32 %v2445_v6, %v454_v15 }
 0x17a   :  { %493 = vmatmul.bf16.gmra.mxu1 %v349_v16  ;;  %v519_v22 = vmax.f32 %v455_v19, 0.0 }
 0x17b   :  { %v294_v18 = vpop.f32.mrf.mxu0 }
 0x17c   :  { %v295_v23 = vadd.f32 %v2351_v40, %v294_v18 }
 0x17e   :  { %v332_v28 = vmax.f32 %v295_v23, 0.0 }
 0x17f   :  { %v456_v20 = vpop.f32.mrf.mxu1 }
 0x180   :  { %v457_v21 = vadd.f32 %v2445_v6, %v456_v20  ;;  %v2058_v20 = vld [vmem:[%s2802_s6 + $0x38] sm:$0xff] }
 0x181   :  { %1208 = vmatpush.bf16.msrb.mxu1 %v2058_v20 }
 0x182   :  { %v520_v24 = vmax.f32 %v457_v21, 0.0 }
 0x183   :  { %v296_v25 = vpop.f32.mrf.mxu0 }
 0x184   :  { %v297_v26 = vadd.f32 %v2351_v40, %v296_v25  ;;  %v546_v27 = vpack.c.bf16 %v520_v24, %v519_v22 }
 0x186   :  { %v333_v29 = vmax.f32 %v297_v26, 0.0  ;;  %658 = vmatmul.bf16.gmra.mxu2 %v546_v27 }
 0x187   :  { %v459_v30 = vpop.f32.mrf.mxu1 }
 0x188   :  { %v350_v32 = vpack.c.bf16 %v333_v29, %v332_v28  ;;  %v460_v35 = vadd.f32 %v2445_v6, %v459_v30 }
 0x18a   :  { %498 = vmatmul.bf16.gmra.mxu1 %v350_v32  ;;  %v521_v39 = vmax.f32 %v460_v35, 0.0 }
 0x18b   :  { %v299_v34 = vpop.f32.mrf.mxu0 }
 0x18c   :  { %v300_v41 = vadd.f32 %v2351_v40, %v299_v34 }
 0x18e   :  { %v334_v47 = vmax.f32 %v300_v41, 0.0 }
 0x18f   :  { %v461_v36 = vpop.f32.mrf.mxu1 }
 0x190   :  { %v462_v38 = vadd.f32 %v2445_v6, %v461_v36 }
 0x192   :  { %v522_v42 = vmax.f32 %v462_v38, 0.0  ;;  %v2045_v38 = vld [vmem:[%s2801_s5 + $0x10] sm:$0xff] }
 0x193   :  { %v301_v44 = vpop.f32.mrf.mxu0  ;;  %1008 = vmatpush.bf16.msrb.mxu0 %v2045_v38 }
 0x194   :  { %v302_v45 = vadd.f32 %v2351_v40, %v301_v44  ;;  %v547_v46 = vpack.c.bf16 %v522_v42, %v521_v39  ;;  %v2037_v40 = vld [vmem:[%s2800_s4 + $0x10] sm:$0xff] }
 0x195   :  { %835 = vmatpush.bf16.msra.mxu3 %v2037_v40 }
 0x196   :  { %v335_v48 = vmax.f32 %v302_v45, 0.0  ;;  %663 = vmatmul.bf16.gmra.mxu2 %v547_v46 }
 0x197   :  { %v464_v49 = vpop.f32.mrf.mxu1 }
 0x198   :  { %v351_v51 = vpack.c.bf16 %v335_v48, %v334_v47  ;;  %v465_v53 = vadd.f32 %v2445_v6, %v464_v49 }
 0x199   :  { %836 = vmatpush.bf16.msra.mxu3 %v2036_v55 }
 0x19a   :  { %503 = vmatmul.bf16.gmra.mxu1 %v351_v51  ;;  %v523_v57 = vmax.f32 %v465_v53, 0.0  ;;  %v2057_v51 = vld [vmem:[%s2802_s6 + $0x30] sm:$0xff] }
 0x19b   :  { %1209 = vmatpush.bf16.msrb.mxu1 %v2057_v51 }
 0x19d   :  { %837 = vmatpush.bf16.msra.mxu3 %v2035_v59 }
 0x19f   :  { %v466_v54 = vpop.f32.mrf.mxu1 }
 0x1a0   :  { %v467_v56 = vadd.f32 %v2445_v6, %v466_v54 }
 0x1a2   :  { %v524_v58 = vmax.f32 %v467_v56, 0.0 }
 0x1a4   :  { %v548_v60 = vpack.c.bf16 %v524_v58, %v523_v57 }
 0x1a6   :  { %668 = vmatmul.bf16.gmra.mxu2 %v548_v60 }
 0x1a7   :  { %v469_v61 = vpop.f32.mrf.mxu1 }
 0x1a8   :  { %v470_v62 = vadd.f32 %v2445_v6, %v469_v61 }
 0x1aa   :  { %v525_v1 = vmax.f32 %v470_v62, 0.0 }
 0x1af   :  { %v471_v63 = vpop.f32.mrf.mxu1 }
 0x1b0   :  { %v472_v0 = vadd.f32 %v2445_v6, %v471_v63 }
 0x1b2   :  { %v526_v2 = vmax.f32 %v472_v0, 0.0 }
 0x1b4   :  { %v549_v3 = vpack.c.bf16 %v526_v2, %v525_v1 }
 0x1b6   :  { %673 = vmatmul.bf16.gmra.mxu2 %v549_v3 }
 0x1b7   :  { %v474_v4 = vpop.f32.mrf.mxu1 }
 0x1b8   :  { %v475_v9 = vadd.f32 %v2445_v6, %v474_v4  ;;  %v2044_v4 = vld [vmem:[%s2801_s5 + $0x8] sm:$0xff] }
 0x1b9   :  { %v634_v5 = vpop.f32.mrf.mxu2  ;;  %1009 = vmatpush.bf16.msrb.mxu0 %v2044_v4  ;;  %v2580_v4 = vld [vmem:[#allocation7 + $0x3] ss:$0 sm:$0xff] }
 0x1ba   :  { %v635_v11 = vadd.f32 %v2518_v8, %v634_v5  ;;  %v527_v14 = vmax.f32 %v475_v9, 0.0 }
 0x1bc   :  { %v714_v17 = vmax.f32 %v635_v11, 0.0 }
 0x1bf   :  { %v476_v10 = vpop.f32.mrf.mxu1 }
 0x1c0   :  { %v477_v12 = vadd.f32 %v2445_v6, %v476_v10 }
 0x1c1   :  { %v636_v13 = vpop.f32.mrf.mxu2 }
 0x1c2   :  { %v528_v15 = vmax.f32 %v477_v12, 0.0  ;;  %v637_v16 = vadd.f32 %v2518_v8, %v636_v13 }
 0x1c4   :  { %v715_v18 = vmax.f32 %v637_v16, 0.0  ;;  %v550_v19 = vpack.c.bf16 %v528_v15, %v527_v14 }
 0x1c6   :  { %678 = vmatmul.bf16.gmra.mxu2 %v550_v19  ;;  %v746_v21 = vpack.c.bf16 %v715_v18, %v714_v17  ;;  %v2056_v18 = vld [vmem:[%s2802_s6 + $0x28] sm:$0xff] }
 0x1c7   :  { %v479_v22 = vpop.f32.mrf.mxu1  ;;  %1210 = vmatpush.bf16.msrb.mxu1 %v2056_v18 }
 0x1c8   :  { %838 = vmatmul.bf16.vlgmr.msra.gmra.mxu3 %v746_v21  ;;  %v480_v24 = vadd.f32 %v2445_v6, %v479_v22 }
 0x1c9   :  { %v639_v23 = vpop.f32.mrf.mxu2 }
 0x1ca   :  { %v640_v26 = vadd.f32 %v2518_v8, %v639_v23  ;;  %v529_v29 = vmax.f32 %v480_v24, 0.0 }
 0x1cc   :  { %v716_v32 = vmax.f32 %v640_v26, 0.0 }
 0x1cf   :  { %v481_v25 = vpop.f32.mrf.mxu1 }
 0x1d0   :  { %v482_v27 = vadd.f32 %v2445_v6, %v481_v25 }
 0x1d1   :  { %v641_v28 = vpop.f32.mrf.mxu2 }
 0x1d2   :  { %v530_v30 = vmax.f32 %v482_v27, 0.0  ;;  %v642_v31 = vadd.f32 %v2518_v8, %v641_v28 }
 0x1d4   :  { %v717_v33 = vmax.f32 %v642_v31, 0.0  ;;  %v551_v34 = vpack.c.bf16 %v530_v30, %v529_v29 }
 0x1d6   :  { %683 = vmatmul.bf16.gmra.mxu2 %v551_v34  ;;  %v747_v35 = vpack.c.bf16 %v717_v33, %v716_v32 }
 0x1d7   :  { %v484_v36 = vpop.f32.mrf.mxu1 }
 0x1d8   :  { %843 = vmatmul.bf16.gmra.mxu3 %v747_v35  ;;  %v485_v39 = vadd.f32 %v2445_v6, %v484_v36  ;;  %v2043_v35 = vld [vmem:[%s2801_s5] sm:$0xff]  ;;  %s2200_s5 = smov 8  }
 0x1d9   :  { %v644_v37 = vpop.f32.mrf.mxu2  ;;  %1010 = vmatpush.bf16.msrb.mxu0 %v2043_v35 }
 0x1da   :  { %v645_v42 = vadd.f32 %v2518_v8, %v644_v37  ;;  %v531_v45 = vmax.f32 %v485_v39, 0.0 }
 0x1dc   :  { %v718_v48 = vmax.f32 %v645_v42, 0.0 }
 0x1df   :  { %v486_v41 = vpop.f32.mrf.mxu1 }
 0x1e0   :  { %v487_v43 = vadd.f32 %v2445_v6, %v486_v41 }
 0x1e1   :  { %v646_v44 = vpop.f32.mrf.mxu2 }
 0x1e2   :  { %v532_v46 = vmax.f32 %v487_v43, 0.0  ;;  %v647_v47 = vadd.f32 %v2518_v8, %v646_v44 }
 0x1e4   :  { %v719_v49 = vmax.f32 %v647_v47, 0.0  ;;  %v552_v50 = vpack.c.bf16 %v532_v46, %v531_v45 }
 0x1e6   :  { %688 = vmatmul.bf16.gmra.mxu2 %v552_v50  ;;  %v748_v52 = vpack.c.bf16 %v719_v49, %v718_v48  ;;  %v2055_v49 = vld [vmem:[%s2802_s6 + $0x20] sm:$0xff] }
 0x1e7   :  { %v489_v40 = vpop.f32.mrf.mxu1  ;;  %1211 = vmatpush.bf16.msrb.mxu1 %v2055_v49 }
 0x1e8   :  { %848 = vmatmul.bf16.gmra.mxu3 %v748_v52  ;;  %v490_v54 = vadd.f32 %v2445_v6, %v489_v40 }
 0x1e9   :  { %v649_v53 = vpop.f32.mrf.mxu2 }
 0x1ea   :  { %v650_v56 = vadd.f32 %v2518_v8, %v649_v53  ;;  %v533_v59 = vmax.f32 %v490_v54, 0.0 }
 0x1ec   :  { %v720_v62 = vmax.f32 %v650_v56, 0.0 }
 0x1ef   :  { %v491_v55 = vpop.f32.mrf.mxu1 }
 0x1f0   :  { %v492_v57 = vadd.f32 %v2445_v6, %v491_v55 }
 0x1f1   :  { %v651_v58 = vpop.f32.mrf.mxu2 }
 0x1f2   :  { %v534_v60 = vmax.f32 %v492_v57, 0.0  ;;  %v652_v61 = vadd.f32 %v2518_v8, %v651_v58 }
 0x1f4   :  { %v721_v63 = vmax.f32 %v652_v61, 0.0  ;;  %v553_v0 = vpack.c.bf16 %v534_v60, %v533_v59 }
 0x1f6   :  { %693 = vmatmul.bf16.gmra.mxu2 %v553_v0  ;;  %v749_v1 = vpack.c.bf16 %v721_v63, %v720_v62  ;;  %v2054_v63 = vld [vmem:[%s2802_s6 + $0x18] sm:$0xff] }
 0x1f7   :  { %v494_v2 = vpop.f32.mrf.mxu1  ;;  %1212 = vmatpush.bf16.msrb.mxu1 %v2054_v63 }
 0x1f8   :  { %853 = vmatmul.bf16.gmra.mxu3 %v749_v1  ;;  %v495_v5 = vadd.f32 %v2445_v6, %v494_v2  ;;  %v2066_v2 = vld [vmem:[%s2803_s7 + $0x38] sm:$0xff] }
 0x1f9   :  { %v654_v3 = vpop.f32.mrf.mxu2  ;;  %1413 = vmatpush.bf16.msrb.mxu2 %v2066_v2 }
 0x1fa   :  { %v655_v9 = vadd.f32 %v2518_v8, %v654_v3  ;;  %v535_v12 = vmax.f32 %v495_v5, 0.0 }
 0x1fc   :  { %v722_v15 = vmax.f32 %v655_v9, 0.0 }
 0x1ff   :  { %v496_v7 = vpop.f32.mrf.mxu1 }
 0x200   :  { %v497_v10 = vadd.f32 %v2445_v6, %v496_v7 }
 0x201   :  { %v656_v11 = vpop.f32.mrf.mxu2 }
 0x202   :  { %v536_v13 = vmax.f32 %v497_v10, 0.0  ;;  %v657_v14 = vadd.f32 %v2518_v8, %v656_v11 }
 0x204   :  { %v723_v16 = vmax.f32 %v657_v14, 0.0  ;;  %v554_v17 = vpack.c.bf16 %v536_v13, %v535_v12 }
 0x206   :  { %698 = vmatmul.bf16.gmra.mxu2 %v554_v17  ;;  %v750_v19 = vpack.c.bf16 %v723_v16, %v722_v15 }
 0x207   :  { %v499_v20 = vpop.f32.mrf.mxu1 }
 0x208   :  { %858 = vmatmul.bf16.gmra.mxu3 %v750_v19  ;;  %v500_v22 = vadd.f32 %v2445_v6, %v499_v20 }
 0x209   :  { %v659_v21 = vpop.f32.mrf.mxu2 }
 0x20a   :  { %v660_v24 = vadd.f32 %v2518_v8, %v659_v21  ;;  %v537_v27 = vmax.f32 %v500_v22, 0.0 }
 0x20c   :  { %v724_v30 = vmax.f32 %v660_v24, 0.0 }
 0x20f   :  { %v501_v23 = vpop.f32.mrf.mxu1 }
 0x210   :  { %v502_v25 = vadd.f32 %v2445_v6, %v501_v23 }
 0x211   :  { %v661_v26 = vpop.f32.mrf.mxu2 }
 0x212   :  { %v538_v28 = vmax.f32 %v502_v25, 0.0  ;;  %v662_v29 = vadd.f32 %v2518_v8, %v661_v26 }
 0x214   :  { %v725_v31 = vmax.f32 %v662_v29, 0.0  ;;  %v555_v32 = vpack.c.bf16 %v538_v28, %v537_v27  ;;  %v2053_v28 = vld [vmem:[%s2802_s6 + $0x10] sm:$0xff] }
 0x215   :  { %1213 = vmatpush.bf16.msrb.mxu1 %v2053_v28 }
 0x216   :  { %703 = vmatmul.bf16.gmra.mxu2 %v555_v32  ;;  %v751_v33 = vpack.c.bf16 %v725_v31, %v724_v30  ;;  %v2065_v31 = vld [vmem:[%s2803_s7 + $0x30] sm:$0xff] }
 0x217   :  { %v504_v34 = vpop.f32.mrf.mxu1  ;;  %1414 = vmatpush.bf16.msrb.mxu2 %v2065_v31 }
 0x218   :  { %863 = vmatmul.bf16.gmra.mxu3 %v751_v33  ;;  %v505_v37 = vadd.f32 %v2445_v6, %v504_v34 }
 0x219   :  { %v664_v36 = vpop.f32.mrf.mxu2 }
 0x21a   :  { %v665_v39 = vadd.f32 %v2518_v8, %v664_v36  ;;  %v539_v43 = vmax.f32 %v505_v37, 0.0 }
 0x21c   :  { %v726_v46 = vmax.f32 %v665_v39, 0.0 }
 0x21f   :  { %v506_v38 = vpop.f32.mrf.mxu1 }
 0x220   :  { %v507_v41 = vadd.f32 %v2445_v6, %v506_v38 }
 0x221   :  { %v666_v42 = vpop.f32.mrf.mxu2 }
 0x222   :  { %v540_v44 = vmax.f32 %v507_v41, 0.0  ;;  %v667_v45 = vadd.f32 %v2518_v8, %v666_v42 }
 0x224   :  { %v727_v47 = vmax.f32 %v667_v45, 0.0  ;;  %v556_v48 = vpack.c.bf16 %v540_v44, %v539_v43 }
 0x226   :  { %708 = vmatmul.bf16.gmra.mxu2 %v556_v48  ;;  %v752_v50 = vpack.c.bf16 %v727_v47, %v726_v46 }
 0x228   :  { %868 = vmatmul.bf16.gmra.mxu3 %v752_v50 }
 0x229   :  { %v669_v51 = vpop.f32.mrf.mxu2 }
 0x22a   :  { %v670_v52 = vadd.f32 %v2518_v8, %v669_v51 }
 0x22c   :  { %v728_v53 = vmax.f32 %v670_v52, 0.0 }
 0x231   :  { %v671_v6 = vpop.f32.mrf.mxu2 }
 0x232   :  { %v672_v40 = vadd.f32 %v2518_v8, %v671_v6 }
 0x234   :  { %v729_v54 = vmax.f32 %v672_v40, 0.0 }
 0x236   :  { %v753_v55 = vpack.c.bf16 %v729_v54, %v728_v53  ;;  %v2052_v53 = vld [vmem:[%s2802_s6 + $0x8] sm:$0xff] }
 0x237   :  { %1214 = vmatpush.bf16.msrb.mxu1 %v2052_v53 }
 0x238   :  { %873 = vmatmul.bf16.gmra.mxu3 %v753_v55 }
 0x239   :  { %v674_v56 = vpop.f32.mrf.mxu2 }
 0x23a   :  { %v675_v57 = vadd.f32 %v2518_v8, %v674_v56  ;;  %v2064_v56 = vld [vmem:[%s2803_s7 + $0x28] sm:$0xff] }
 0x23b   :  { %1415 = vmatpush.bf16.msrb.mxu2 %v2064_v56 }
 0x23c   :  { %v730_v60 = vmax.f32 %v675_v57, 0.0 }
 0x241   :  { %v676_v58 = vpop.f32.mrf.mxu2 }
 0x242   :  { %v677_v59 = vadd.f32 %v2518_v8, %v676_v58 }
 0x244   :  { %v731_v61 = vmax.f32 %v677_v59, 0.0 }
 0x246   :  { %v754_v62 = vpack.c.bf16 %v731_v61, %v730_v60 }
 0x248   :  { %878 = vmatmul.bf16.gmra.mxu3 %v754_v62 }
 0x249   :  { %v679_v0 = vpop.f32.mrf.mxu2 }
 0x24a   :  { %v680_v3 = vadd.f32 %v2518_v8, %v679_v0 }
 0x24b   :  { %v839_v1 = vpop.f32.mrf.mxu3 }
 0x24c   :  { %v732_v10 = vmax.f32 %v680_v3, 0.0  ;;  %v840_v11 = vadd.f32 %v2580_v4, %v839_v1 }
 0x251   :  { %v681_v5 = vpop.f32.mrf.mxu2 }
 0x252   :  { %v682_v7 = vadd.f32 %v2518_v8, %v681_v5 }
 0x253   :  { %v841_v9 = vpop.f32.mrf.mxu3 }
 0x254   :  { %v733_v12 = vmax.f32 %v682_v7, 0.0  ;;  %v842_v13 = vadd.f32 %v2580_v4, %v841_v9 }
 0x256   :  { %v919_v14 = vpack.c.bf16 %v842_v13, %v840_v11  ;;  %v755_v15 = vpack.c.bf16 %v733_v12, %v732_v10 }
 0x258   :  { %883 = vmatmul.bf16.gmra.mxu3 %v755_v15  ;;  %1011 = vmatmul.bf16.vlgmr.msrb.gmra.mxu0 %v919_v14 }
 0x259   :  { %v684_v16 = vpop.f32.mrf.mxu2 }
 0x25a   :  { %v685_v18 = vadd.f32 %v2518_v8, %v684_v16 }
 0x25b   :  { %v844_v17 = vpop.f32.mrf.mxu3 }
 0x25c   :  { %v734_v22 = vmax.f32 %v685_v18, 0.0  ;;  %v845_v23 = vadd.f32 %v2580_v4, %v844_v17  ;;  %v2051_v18 = vld [vmem:[%s2802_s6] sm:$0xff] }
 0x25d   :  { %1215 = vmatpush.bf16.msrb.mxu1 %v2051_v18 }
 0x261   :  { %v686_v19 = vpop.f32.mrf.mxu2 }
 0x262   :  { %v687_v20 = vadd.f32 %v2518_v8, %v686_v19 }
 0x263   :  { %v846_v21 = vpop.f32.mrf.mxu3 }
 0x264   :  { %v735_v24 = vmax.f32 %v687_v20, 0.0  ;;  %v847_v25 = vadd.f32 %v2580_v4, %v846_v21  ;;  %v2063_v21 = vld [vmem:[%s2803_s7 + $0x20] sm:$0xff] }
 0x265   :  { %1416 = vmatpush.bf16.msrb.mxu2 %v2063_v21 }
 0x266   :  { %v920_v26 = vpack.c.bf16 %v847_v25, %v845_v23  ;;  %v756_v27 = vpack.c.bf16 %v735_v24, %v734_v22 }
 0x268   :  { %888 = vmatmul.bf16.gmra.mxu3 %v756_v27  ;;  %1016 = vmatmul.bf16.gmra.mxu0 %v920_v26 }
 0x269   :  { %v689_v29 = vpop.f32.mrf.mxu2 }
 0x26a   :  { %v690_v32 = vadd.f32 %v2518_v8, %v689_v29 }
 0x26b   :  { %v849_v30 = vpop.f32.mrf.mxu3 }
 0x26c   :  { %v736_v36 = vmax.f32 %v690_v32, 0.0  ;;  %v850_v37 = vadd.f32 %v2580_v4, %v849_v30 }
 0x271   :  { %v691_v33 = vpop.f32.mrf.mxu2 }
 0x272   :  { %v692_v34 = vadd.f32 %v2518_v8, %v691_v33 }
 0x273   :  { %v851_v35 = vpop.f32.mrf.mxu3 }
 0x274   :  { %v737_v38 = vmax.f32 %v692_v34, 0.0  ;;  %v852_v39 = vadd.f32 %v2580_v4, %v851_v35 }
 0x276   :  { %v921_v41 = vpack.c.bf16 %v852_v39, %v850_v37  ;;  %v757_v42 = vpack.c.bf16 %v737_v38, %v736_v36  ;;  %v2062_v37 = vld [vmem:[%s2803_s7 + $0x18] sm:$0xff] }
 0x277   :  { %1417 = vmatpush.bf16.msrb.mxu2 %v2062_v37 }
 0x278   :  { %893 = vmatmul.bf16.gmra.mxu3 %v757_v42  ;;  %1021 = vmatmul.bf16.gmra.mxu0 %v921_v41 }
 0x279   :  { %v694_v43 = vpop.f32.mrf.mxu2 }
 0x27a   :  { %v695_v45 = vadd.f32 %v2518_v8, %v694_v43 }
 0x27b   :  { %v854_v44 = vpop.f32.mrf.mxu3 }
 0x27c   :  { %v738_v49 = vmax.f32 %v695_v45, 0.0  ;;  %v855_v50 = vadd.f32 %v2580_v4, %v854_v44  ;;  %v2634_v44 = vld [vmem:[#allocation7 + $0x4] ss:$0 sm:$0xff] }
 0x281   :  { %v696_v46 = vpop.f32.mrf.mxu2 }
 0x282   :  { %v697_v47 = vadd.f32 %v2518_v8, %v696_v46 }
 0x283   :  { %v856_v48 = vpop.f32.mrf.mxu3 }
 0x284   :  { %v739_v51 = vmax.f32 %v697_v47, 0.0  ;;  %v857_v52 = vadd.f32 %v2580_v4, %v856_v48 }
 0x286   :  { %v922_v6 = vpack.c.bf16 %v857_v52, %v855_v50  ;;  %v758_v40 = vpack.c.bf16 %v739_v51, %v738_v49  ;;  %v2074_v51 = vld [vmem:[#allocation5 + $0x38] sm:$0xff] }
 0x287   :  { %1618 = vmatpush.bf16.msrb.mxu3 %v2074_v51 }
 0x288   :  { %898 = vmatmul.bf16.gmra.mxu3 %v758_v40  ;;  %1026 = vmatmul.bf16.gmra.mxu0 %v922_v6 }
 0x289   :  { %v699_v54 = vpop.f32.mrf.mxu2 }
 0x28a   :  { %v700_v57 = vadd.f32 %v2518_v8, %v699_v54 }
 0x28b   :  { %v859_v55 = vpop.f32.mrf.mxu3 }
 0x28c   :  { %v740_v61 = vmax.f32 %v700_v57, 0.0  ;;  %v860_v62 = vadd.f32 %v2580_v4, %v859_v55 }
 0x291   :  { %v701_v58 = vpop.f32.mrf.mxu2 }
 0x292   :  { %v702_v59 = vadd.f32 %v2518_v8, %v701_v58 }
 0x293   :  { %v861_v60 = vpop.f32.mrf.mxu3 }
 0x294   :  { %v741_v63 = vmax.f32 %v702_v59, 0.0  ;;  %v862_v0 = vadd.f32 %v2580_v4, %v861_v60 }
 0x296   :  { %v923_v1 = vpack.c.bf16 %v862_v0, %v860_v62  ;;  %v759_v2 = vpack.c.bf16 %v741_v63, %v740_v61  ;;  %v2061_v62 = vld [vmem:[%s2803_s7 + $0x10] sm:$0xff] }
 0x297   :  { %1418 = vmatpush.bf16.msrb.mxu2 %v2061_v62 }
 0x298   :  { %903 = vmatmul.bf16.gmra.mxu3 %v759_v2  ;;  %1031 = vmatmul.bf16.gmra.mxu0 %v923_v1 }
 0x299   :  { %v704_v3 = vpop.f32.mrf.mxu2 }
 0x29a   :  { %v705_v7 = vadd.f32 %v2518_v8, %v704_v3 }
 0x29b   :  { %v864_v5 = vpop.f32.mrf.mxu3 }
 0x29c   :  { %v742_v12 = vmax.f32 %v705_v7, 0.0  ;;  %v865_v13 = vadd.f32 %v2580_v4, %v864_v5 }
 0x2a1   :  { %v706_v9 = vpop.f32.mrf.mxu2 }
 0x2a2   :  { %v707_v10 = vadd.f32 %v2518_v8, %v706_v9 }
 0x2a3   :  { %v866_v11 = vpop.f32.mrf.mxu3 }
 0x2a4   :  { %v743_v14 = vmax.f32 %v707_v10, 0.0  ;;  %v867_v15 = vadd.f32 %v2580_v4, %v866_v11 }
 0x2a6   :  { %v924_v16 = vpack.c.bf16 %v867_v15, %v865_v13  ;;  %v760_v17 = vpack.c.bf16 %v743_v14, %v742_v12  ;;  %v2073_v15 = vld [vmem:[#allocation5 + $0x30] sm:$0xff] }
 0x2a7   :  { %1619 = vmatpush.bf16.msrb.mxu3 %v2073_v15 }
 0x2a8   :  { %908 = vmatmul.bf16.gmra.mxu3 %v760_v17  ;;  %1036 = vmatmul.bf16.gmra.mxu0 %v924_v16 }
 0x2a9   :  { %v709_v19 = vpop.f32.mrf.mxu2 }
 0x2aa   :  { %v710_v22 = vadd.f32 %v2518_v8, %v709_v19 }
 0x2ab   :  { %v869_v20 = vpop.f32.mrf.mxu3 }
 0x2ac   :  { %v744_v26 = vmax.f32 %v710_v22, 0.0  ;;  %v870_v27 = vadd.f32 %v2580_v4, %v869_v20 }
 0x2b1   :  { %v711_v23 = vpop.f32.mrf.mxu2 }
 0x2b2   :  { %v712_v24 = vadd.f32 %v2518_v8, %v711_v23 }
 0x2b3   :  { %v871_v25 = vpop.f32.mrf.mxu3 }
 0x2b4   :  { %v745_v28 = vmax.f32 %v712_v24, 0.0  ;;  %v872_v29 = vadd.f32 %v2580_v4, %v871_v25 }
 0x2b6   :  { %v925_v30 = vpack.c.bf16 %v872_v29, %v870_v27  ;;  %v761_v31 = vpack.c.bf16 %v745_v28, %v744_v26  ;;  %v2060_v28 = vld [vmem:[%s2803_s7 + $0x8] sm:$0xff] }
 0x2b7   :  { %1419 = vmatpush.bf16.msrb.mxu2 %v2060_v28 }
 0x2b8   :  { %913 = vmatmul.bf16.gmra.mxu3 %v761_v31  ;;  %1041 = vmatmul.bf16.gmra.mxu0 %v925_v30 }
 0x2bb   :  { %v874_v32 = vpop.f32.mrf.mxu3 }
 0x2bc   :  { %v875_v34 = vadd.f32 %v2580_v4, %v874_v32 }
 0x2c3   :  { %v876_v33 = vpop.f32.mrf.mxu3 }
 0x2c4   :  { %v877_v35 = vadd.f32 %v2580_v4, %v876_v33 }
 0x2c6   :  { %v926_v36 = vpack.c.bf16 %v877_v35, %v875_v34 }
 0x2c8   :  { %1046 = vmatmul.bf16.gmra.mxu0 %v926_v36 }
 0x2cb   :  { %v879_v8 = vpop.f32.mrf.mxu3 }
 0x2cc   :  { %v880_v39 = vadd.f32 %v2580_v4, %v879_v8 }
 0x2d3   :  { %v881_v38 = vpop.f32.mrf.mxu3 }
 0x2d4   :  { %v882_v41 = vadd.f32 %v2580_v4, %v881_v38 }
 0x2d5   :  { %v1012_v42 = vpop.f32.mrf.mxu0 }
 0x2d6   :  { %v927_v43 = vpack.c.bf16 %v882_v41, %v880_v39  ;;  %v1013_v46 = vadd.f32 %v2634_v44, %v1012_v42  ;;  %v2072_v41 = vld [vmem:[#allocation5 + $0x28] sm:$0xff] }
 0x2d7   :  { %1620 = vmatpush.bf16.msrb.mxu3 %v2072_v41 }
 0x2d8   :  { %1051 = vmatmul.bf16.gmra.mxu0 %v927_v43  ;;  %v1092_v49 = vmax.f32 %v1013_v46, 0.0 }
 0x2db   :  { %v884_v45 = vpop.f32.mrf.mxu3 }
 0x2dc   :  { %v885_v40 = vadd.f32 %v2580_v4, %v884_v45 }
 0x2dd   :  { %v1014_v47 = vpop.f32.mrf.mxu0 }
 0x2de   :  { %v1015_v48 = vadd.f32 %v2634_v44, %v1014_v47 }
 0x2e0   :  { %v1093_v50 = vmax.f32 %v1015_v48, 0.0 }
 0x2e2   :  { %v1124_v52 = vpack.c.bf16 %v1093_v50, %v1092_v49 }
 0x2e3   :  { %v886_v6 = vpop.f32.mrf.mxu3 }
 0x2e4   :  { %v887_v53 = vadd.f32 %v2580_v4, %v886_v6  ;;  %1216 = vmatmul.bf16.vlgmr.msrb.gmra.mxu1 %v1124_v52 }
 0x2e5   :  { %v1017_v54 = vpop.f32.mrf.mxu0 }
 0x2e6   :  { %v928_v55 = vpack.c.bf16 %v887_v53, %v885_v40  ;;  %v1018_v57 = vadd.f32 %v2634_v44, %v1017_v54  ;;  %v2059_v53 = vld [vmem:[%s2803_s7] sm:$0xff]  ;;  %s2198_s7 = smov [#allocation8]  }
 0x2e7   :  { %1420 = vmatpush.bf16.msrb.mxu2 %v2059_v53  ;;  %v2069_v53 = vld [vmem:[#allocation5 + $0x10] sm:$0xff]  ;;  %s1743_s14 = sshll.u32 %s2198_s7, 4  ;;  %s1744_s14 = int_to_ptr.vmem [resolvable:$true] %s1743_s14 }
 0x2e8   :  { %1056 = vmatmul.bf16.gmra.mxu0 %v928_v55  ;;  %v1094_v60 = vmax.f32 %v1018_v57, 0.0 }
 0x2eb   :  { %v889_v56 = vpop.f32.mrf.mxu3 }
 0x2ec   :  { %v890_v1 = vadd.f32 %v2580_v4, %v889_v56 }
 0x2ed   :  { %v1019_v58 = vpop.f32.mrf.mxu0 }
 0x2ee   :  { %v1020_v59 = vadd.f32 %v2634_v44, %v1019_v58 }
 0x2f0   :  { %v1095_v61 = vmax.f32 %v1020_v59, 0.0 }
 0x2f2   :  { %v1125_v63 = vpack.c.bf16 %v1095_v61, %v1094_v60 }
 0x2f3   :  { %v891_v0 = vpop.f32.mrf.mxu3 }
 0x2f4   :  { %v892_v2 = vadd.f32 %v2580_v4, %v891_v0  ;;  %1221 = vmatmul.bf16.gmra.mxu1 %v1125_v63 }
 0x2f5   :  { %v1022_v3 = vpop.f32.mrf.mxu0 }
 0x2f6   :  { %v929_v5 = vpack.c.bf16 %v892_v2, %v890_v1  ;;  %v1023_v9 = vadd.f32 %v2634_v44, %v1022_v3 }
 0x2f8   :  { %1061 = vmatmul.bf16.gmra.mxu0 %v929_v5  ;;  %v1096_v12 = vmax.f32 %v1023_v9, 0.0 }
 0x2fb   :  { %v894_v7 = vpop.f32.mrf.mxu3 }
 0x2fc   :  { %v895_v17 = vadd.f32 %v2580_v4, %v894_v7  ;;  %v2071_v7 = vld [vmem:[#allocation5 + $0x20] sm:$0xff] }
 0x2fd   :  { %v1024_v10 = vpop.f32.mrf.mxu0  ;;  %1621 = vmatpush.bf16.msrb.mxu3 %v2071_v7 }
 0x2fe   :  { %v1025_v11 = vadd.f32 %v2634_v44, %v1024_v10 }
 0x300   :  { %v1097_v13 = vmax.f32 %v1025_v11, 0.0 }
 0x302   :  { %v1126_v14 = vpack.c.bf16 %v1097_v13, %v1096_v12 }
 0x303   :  { %v896_v16 = vpop.f32.mrf.mxu3 }
 0x304   :  { %v897_v18 = vadd.f32 %v2580_v4, %v896_v16  ;;  %1226 = vmatmul.bf16.gmra.mxu1 %v1126_v14 }
 0x305   :  { %v1027_v19 = vpop.f32.mrf.mxu0 }
 0x306   :  { %v930_v20 = vpack.c.bf16 %v897_v18, %v895_v17  ;;  %v1028_v22 = vadd.f32 %v2634_v44, %v1027_v19 }
 0x308   :  { %1066 = vmatmul.bf16.gmra.mxu0 %v930_v20  ;;  %v1098_v25 = vmax.f32 %v1028_v22, 0.0 }
 0x30b   :  { %v899_v21 = vpop.f32.mrf.mxu3 }
 0x30c   :  { %v900_v30 = vadd.f32 %v2580_v4, %v899_v21 }
 0x30d   :  { %v1029_v23 = vpop.f32.mrf.mxu0 }
 0x30e   :  { %v1030_v24 = vadd.f32 %v2634_v44, %v1029_v23 }
 0x310   :  { %v1099_v26 = vmax.f32 %v1030_v24, 0.0  ;;  %v2677_v24 = vld [vmem:[#allocation7 + $0x5] ss:$0 sm:$0xff] }
 0x312   :  { %v1127_v27 = vpack.c.bf16 %v1099_v26, %v1098_v25  ;;  %v2070_v25 = vld [vmem:[#allocation5 + $0x18] sm:$0xff] }
 0x313   :  { %v901_v29 = vpop.f32.mrf.mxu3  ;;  %1622 = vmatpush.bf16.msrb.mxu3 %v2070_v25 }
 0x314   :  { %v902_v31 = vadd.f32 %v2580_v4, %v901_v29  ;;  %1231 = vmatmul.bf16.gmra.mxu1 %v1127_v27 }
 0x315   :  { %v1032_v32 = vpop.f32.mrf.mxu0 }
 0x316   :  { %v931_v33 = vpack.c.bf16 %v902_v31, %v900_v30  ;;  %v1033_v35 = vadd.f32 %v2634_v44, %v1032_v32 }
 0x317   :  { %1623 = vmatpush.bf16.msrb.mxu3 %v2069_v53 }
 0x318   :  { %1071 = vmatmul.bf16.gmra.mxu0 %v931_v33  ;;  %v1100_v37 = vmax.f32 %v1033_v35, 0.0 }
 0x31b   :  { %v904_v34 = vpop.f32.mrf.mxu3 }
 0x31c   :  { %v905_v43 = vadd.f32 %v2580_v4, %v904_v34 }
 0x31d   :  { %v1034_v36 = vpop.f32.mrf.mxu0 }
 0x31e   :  { %v1035_v8 = vadd.f32 %v2634_v44, %v1034_v36 }
 0x320   :  { %v1101_v38 = vmax.f32 %v1035_v8, 0.0 }
 0x322   :  { %v1128_v39 = vpack.c.bf16 %v1101_v38, %v1100_v37 }
 0x323   :  { %v906_v42 = vpop.f32.mrf.mxu3 }
 0x324   :  { %v907_v45 = vadd.f32 %v2580_v4, %v906_v42  ;;  %1236 = vmatmul.bf16.gmra.mxu1 %v1128_v39 }
 0x325   :  { %v1037_v46 = vpop.f32.mrf.mxu0 }
 0x326   :  { %v932_v47 = vpack.c.bf16 %v907_v45, %v905_v43  ;;  %v1038_v49 = vadd.f32 %v2634_v44, %v1037_v46 }
 0x328   :  { %1076 = vmatmul.bf16.gmra.mxu0 %v932_v47  ;;  %v1102_v52 = vmax.f32 %v1038_v49, 0.0 }
 0x32b   :  { %v909_v48 = vpop.f32.mrf.mxu3 }
 0x32c   :  { %v910_v55 = vadd.f32 %v2580_v4, %v909_v48 }
 0x32d   :  { %v1039_v50 = vpop.f32.mrf.mxu0 }
 0x32e   :  { %v1040_v51 = vadd.f32 %v2634_v44, %v1039_v50 }
 0x330   :  { %v1103_v6 = vmax.f32 %v1040_v51, 0.0 }
 0x332   :  { %v1129_v40 = vpack.c.bf16 %v1103_v6, %v1102_v52 }
 0x333   :  { %v911_v54 = vpop.f32.mrf.mxu3 }
 0x334   :  { %v912_v56 = vadd.f32 %v2580_v4, %v911_v54  ;;  %1241 = vmatmul.bf16.gmra.mxu1 %v1129_v40 }
 0x335   :  { %v1042_v57 = vpop.f32.mrf.mxu0 }
 0x336   :  { %v933_v58 = vpack.c.bf16 %v912_v56, %v910_v55  ;;  %v1043_v60 = vadd.f32 %v2634_v44, %v1042_v57 }
 0x338   :  { %1081 = vmatmul.bf16.gmra.mxu0 %v933_v58  ;;  %v1104_v63 = vmax.f32 %v1043_v60, 0.0 }
 0x33b   :  { %v914_v59 = vpop.f32.mrf.mxu3 }
 0x33c   :  { %v915_v3 = vadd.f32 %v2580_v4, %v914_v59 }
 0x33d   :  { %v1044_v61 = vpop.f32.mrf.mxu0 }
 0x33e   :  { %v1045_v62 = vadd.f32 %v2634_v44, %v1044_v61 }
 0x340   :  { %v1105_v0 = vmax.f32 %v1045_v62, 0.0 }
 0x342   :  { %v1130_v1 = vpack.c.bf16 %v1105_v0, %v1104_v63 }
 0x343   :  { %v916_v2 = vpop.f32.mrf.mxu3 }
 0x344   :  { %v917_v5 = vadd.f32 %v2580_v4, %v916_v2  ;;  %1246 = vmatmul.bf16.gmra.mxu1 %v1130_v1 }
 0x345   :  { %v1047_v9 = vpop.f32.mrf.mxu0 }
 0x346   :  { %v934_v10 = vpack.c.bf16 %v917_v5, %v915_v3  ;;  %v1048_v11 = vadd.f32 %v2634_v44, %v1047_v9 }
 0x348   :  { %1086 = vmatmul.bf16.gmra.mxu0 %v934_v10  ;;  %v1106_v14 = vmax.f32 %v1048_v11, 0.0 }
 0x34d   :  { %v1049_v12 = vpop.f32.mrf.mxu0 }
 0x34e   :  { %v1050_v13 = vadd.f32 %v2634_v44, %v1049_v12 }
 0x350   :  { %v1107_v15 = vmax.f32 %v1050_v13, 0.0 }
 0x352   :  { %v1131_v16 = vpack.c.bf16 %v1107_v15, %v1106_v14 }
 0x354   :  { %1251 = vmatmul.bf16.gmra.mxu1 %v1131_v16 }
 0x355   :  { %v1052_v17 = vpop.f32.mrf.mxu0 }
 0x356   :  { %v1053_v18 = vadd.f32 %v2634_v44, %v1052_v17 }
 0x358   :  { %v1108_v20 = vmax.f32 %v1053_v18, 0.0 }
 0x35d   :  { %v1054_v19 = vpop.f32.mrf.mxu0 }
 0x35e   :  { %v1055_v4 = vadd.f32 %v2634_v44, %v1054_v19 }
 0x360   :  { %v1109_v21 = vmax.f32 %v1055_v4, 0.0 }
 0x361   :  { %v1217_v22 = vpop.f32.mrf.mxu1 }
 0x362   :  { %v1132_v23 = vpack.c.bf16 %v1109_v21, %v1108_v20  ;;  %v1218_v27 = vadd.f32 %v2677_v24, %v1217_v22  ;;  %v2068_v20 = vld [vmem:[#allocation5 + $0x8] sm:$0xff] }
 0x363   :  { %1624 = vmatpush.bf16.msrb.mxu3 %v2068_v20 }
 0x364   :  { %1256 = vmatmul.bf16.gmra.mxu1 %v1132_v23  ;;  %v1297_v30 = vmax.f32 %v1218_v27, 0.0 }
 0x365   :  { %v1057_v26 = vpop.f32.mrf.mxu0 }
 0x366   :  { %v1058_v31 = vadd.f32 %v2634_v44, %v1057_v26 }
 0x368   :  { %v1110_v36 = vmax.f32 %v1058_v31, 0.0 }
 0x369   :  { %v1219_v28 = vpop.f32.mrf.mxu1 }
 0x36a   :  { %v1220_v29 = vadd.f32 %v2677_v24, %v1219_v28 }
 0x36c   :  { %v1298_v32 = vmax.f32 %v1220_v29, 0.0 }
 0x36d   :  { %v1059_v33 = vpop.f32.mrf.mxu0 }
 0x36e   :  { %v1329_v34 = vpack.c.bf16 %v1298_v32, %v1297_v30  ;;  %v1060_v35 = vadd.f32 %v2634_v44, %v1059_v33 }
 0x370   :  { %v1111_v8 = vmax.f32 %v1060_v35, 0.0  ;;  %1421 = vmatmul.bf16.vlgmr.msrb.gmra.mxu2 %v1329_v34 }
 0x371   :  { %v1222_v37 = vpop.f32.mrf.mxu1 }
 0x372   :  { %v1133_v38 = vpack.c.bf16 %v1111_v8, %v1110_v36  ;;  %v1223_v41 = vadd.f32 %v2677_v24, %v1222_v37 }
 0x374   :  { %1261 = vmatmul.bf16.gmra.mxu1 %v1133_v38  ;;  %v1299_v45 = vmax.f32 %v1223_v41, 0.0 }
 0x375   :  { %v1062_v39 = vpop.f32.mrf.mxu0 }
 0x376   :  { %v1063_v46 = vadd.f32 %v2634_v44, %v1062_v39 }
 0x378   :  { %v1112_v51 = vmax.f32 %v1063_v46, 0.0 }
 0x379   :  { %v1224_v42 = vpop.f32.mrf.mxu1 }
 0x37a   :  { %v1225_v43 = vadd.f32 %v2677_v24, %v1224_v42 }
 0x37c   :  { %v1300_v47 = vmax.f32 %v1225_v43, 0.0 }
 0x37d   :  { %v1064_v48 = vpop.f32.mrf.mxu0 }
 0x37e   :  { %v1065_v49 = vadd.f32 %v2634_v44, %v1064_v48  ;;  %v1330_v50 = vpack.c.bf16 %v1300_v47, %v1299_v45 }
 0x380   :  { %v1113_v52 = vmax.f32 %v1065_v49, 0.0  ;;  %1426 = vmatmul.bf16.gmra.mxu2 %v1330_v50 }
 0x381   :  { %v1227_v6 = vpop.f32.mrf.mxu1 }
 0x382   :  { %v1134_v40 = vpack.c.bf16 %v1113_v52, %v1112_v51  ;;  %v1228_v55 = vadd.f32 %v2677_v24, %v1227_v6  ;;  %v2067_v51 = vld [vmem:[#allocation5] sm:$0xff] }
 0x383   :  { %1625 = vmatpush.bf16.msrb.mxu3 %v2067_v51 }
 0x384   :  { %1266 = vmatmul.bf16.gmra.mxu1 %v1134_v40  ;;  %v1301_v58 = vmax.f32 %v1228_v55, 0.0 }
 0x385   :  { %v1067_v54 = vpop.f32.mrf.mxu0 }
 0x386   :  { %v1068_v59 = vadd.f32 %v2634_v44, %v1067_v54 }
 0x388   :  { %v1114_v0 = vmax.f32 %v1068_v59, 0.0 }
 0x389   :  { %v1229_v56 = vpop.f32.mrf.mxu1 }
 0x38a   :  { %v1230_v57 = vadd.f32 %v2677_v24, %v1229_v56 }
 0x38c   :  { %v1302_v60 = vmax.f32 %v1230_v57, 0.0 }
 0x38d   :  { %v1069_v61 = vpop.f32.mrf.mxu0 }
 0x38e   :  { %v1070_v62 = vadd.f32 %v2634_v44, %v1069_v61  ;;  %v1331_v63 = vpack.c.bf16 %v1302_v60, %v1301_v58 }
 0x390   :  { %v1115_v1 = vmax.f32 %v1070_v62, 0.0  ;;  %1431 = vmatmul.bf16.gmra.mxu2 %v1331_v63 }
 0x391   :  { %v1232_v2 = vpop.f32.mrf.mxu1 }
 0x392   :  { %v1135_v3 = vpack.c.bf16 %v1115_v1, %v1114_v0  ;;  %v1233_v7 = vadd.f32 %v2677_v24, %v1232_v2 }
 0x394   :  { %1271 = vmatmul.bf16.gmra.mxu1 %v1135_v3  ;;  %v1303_v11 = vmax.f32 %v1233_v7, 0.0 }
 0x395   :  { %v1072_v5 = vpop.f32.mrf.mxu0 }
 0x396   :  { %v1073_v12 = vadd.f32 %v2634_v44, %v1072_v5 }
 0x398   :  { %v1116_v17 = vmax.f32 %v1073_v12, 0.0 }
 0x399   :  { %v1234_v9 = vpop.f32.mrf.mxu1 }
 0x39a   :  { %v1235_v10 = vadd.f32 %v2677_v24, %v1234_v9 }
 0x39c   :  { %v1304_v13 = vmax.f32 %v1235_v10, 0.0 }
 0x39d   :  { %v1074_v14 = vpop.f32.mrf.mxu0 }
 0x39e   :  { %v1075_v15 = vadd.f32 %v2634_v44, %v1074_v14  ;;  %v1332_v16 = vpack.c.bf16 %v1304_v13, %v1303_v11 }
 0x3a0   :  { %v1117_v18 = vmax.f32 %v1075_v15, 0.0  ;;  %1436 = vmatmul.bf16.gmra.mxu2 %v1332_v16 }
 0x3a1   :  { %v1237_v19 = vpop.f32.mrf.mxu1 }
 0x3a2   :  { %v1136_v4 = vpack.c.bf16 %v1117_v18, %v1116_v17  ;;  %v1238_v22 = vadd.f32 %v2677_v24, %v1237_v19  ;;  %v2711_v17 = vld [vmem:[#allocation7 + $0x6] ss:$0 sm:$0xff] }
 0x3a4   :  { %1276 = vmatmul.bf16.gmra.mxu1 %v1136_v4  ;;  %v1305_v26 = vmax.f32 %v1238_v22, 0.0 }
 0x3a5   :  { %v1077_v21 = vpop.f32.mrf.mxu0 }
 0x3a6   :  { %v1078_v27 = vadd.f32 %v2634_v44, %v1077_v21 }
 0x3a8   :  { %v1118_v32 = vmax.f32 %v1078_v27, 0.0 }
 0x3a9   :  { %v1239_v23 = vpop.f32.mrf.mxu1 }
 0x3aa   :  { %v1240_v25 = vadd.f32 %v2677_v24, %v1239_v23 }
 0x3ac   :  { %v1306_v28 = vmax.f32 %v1240_v25, 0.0 }
 0x3ad   :  { %v1079_v29 = vpop.f32.mrf.mxu0 }
 0x3ae   :  { %v1333_v30 = vpack.c.bf16 %v1306_v28, %v1305_v26  ;;  %v1080_v31 = vadd.f32 %v2634_v44, %v1079_v29 }
 0x3b0   :  { %v1119_v33 = vmax.f32 %v1080_v31, 0.0  ;;  %1441 = vmatmul.bf16.gmra.mxu2 %v1333_v30 }
 0x3b1   :  { %v1242_v34 = vpop.f32.mrf.mxu1 }
 0x3b2   :  { %v1137_v35 = vpack.c.bf16 %v1119_v33, %v1118_v32  ;;  %v1243_v8 = vadd.f32 %v2677_v24, %v1242_v34 }
 0x3b4   :  { %1281 = vmatmul.bf16.gmra.mxu1 %v1137_v35  ;;  %v1307_v39 = vmax.f32 %v1243_v8, 0.0 }
 0x3b5   :  { %v1082_v36 = vpop.f32.mrf.mxu0 }
 0x3b6   :  { %v1083_v41 = vadd.f32 %v2634_v44, %v1082_v36 }
 0x3b8   :  { %v1120_v47 = vmax.f32 %v1083_v41, 0.0 }
 0x3b9   :  { %v1244_v37 = vpop.f32.mrf.mxu1 }
 0x3ba   :  { %v1245_v38 = vadd.f32 %v2677_v24, %v1244_v37 }
 0x3bc   :  { %v1308_v42 = vmax.f32 %v1245_v38, 0.0 }
 0x3bd   :  { %v1084_v43 = vpop.f32.mrf.mxu0 }
 0x3be   :  { %v1334_v45 = vpack.c.bf16 %v1308_v42, %v1307_v39  ;;  %v1085_v46 = vadd.f32 %v2634_v44, %v1084_v43 }
 0x3c0   :  { %v1121_v48 = vmax.f32 %v1085_v46, 0.0  ;;  %1446 = vmatmul.bf16.gmra.mxu2 %v1334_v45 }
 0x3c1   :  { %v1247_v49 = vpop.f32.mrf.mxu1 }
 0x3c2   :  { %v1138_v50 = vpack.c.bf16 %v1121_v48, %v1120_v47  ;;  %v1248_v6 = vadd.f32 %v2677_v24, %v1247_v49 }
 0x3c4   :  { %1286 = vmatmul.bf16.gmra.mxu1 %v1138_v50  ;;  %v1309_v54 = vmax.f32 %v1248_v6, 0.0 }
 0x3c5   :  { %v1087_v52 = vpop.f32.mrf.mxu0 }
 0x3c6   :  { %v1088_v55 = vadd.f32 %v2634_v44, %v1087_v52 }
 0x3c8   :  { %v1122_v60 = vmax.f32 %v1088_v55, 0.0 }
 0x3c9   :  { %v1249_v40 = vpop.f32.mrf.mxu1 }
 0x3ca   :  { %v1250_v53 = vadd.f32 %v2677_v24, %v1249_v40 }
 0x3cc   :  { %v1310_v56 = vmax.f32 %v1250_v53, 0.0 }
 0x3cd   :  { %v1089_v57 = vpop.f32.mrf.mxu0 }
 0x3ce   :  { %v1335_v58 = vpack.c.bf16 %v1310_v56, %v1309_v54  ;;  %v1090_v59 = vadd.f32 %v2634_v44, %v1089_v57 }
 0x3d0   :  { %v1123_v61 = vmax.f32 %v1090_v59, 0.0  ;;  %1451 = vmatmul.bf16.gmra.mxu2 %v1335_v58 }
 0x3d1   :  { %v1252_v62 = vpop.f32.mrf.mxu1 }
 0x3d2   :  { %v1139_v63 = vpack.c.bf16 %v1123_v61, %v1122_v60  ;;  %v1253_v0 = vadd.f32 %v2677_v24, %v1252_v62 }
 0x3d4   :  { %1291 = vmatmul.bf16.gmra.mxu1 %v1139_v63  ;;  %v1311_v3 = vmax.f32 %v1253_v0, 0.0 }
 0x3d9   :  { %v1254_v1 = vpop.f32.mrf.mxu1 }
 0x3da   :  { %v1255_v2 = vadd.f32 %v2677_v24, %v1254_v1 }
 0x3dc   :  { %v1312_v5 = vmax.f32 %v1255_v2, 0.0 }
 0x3de   :  { %v1336_v7 = vpack.c.bf16 %v1312_v5, %v1311_v3 }
 0x3e0   :  { %1456 = vmatmul.bf16.gmra.mxu2 %v1336_v7 }
 0x3e1   :  { %v1257_v9 = vpop.f32.mrf.mxu1 }
 0x3e2   :  { %v1258_v10 = vadd.f32 %v2677_v24, %v1257_v9 }
 0x3e4   :  { %v1313_v12 = vmax.f32 %v1258_v10, 0.0 }
 0x3e9   :  { %v1259_v11 = vpop.f32.mrf.mxu1 }
 0x3ea   :  { %v1260_v44 = vadd.f32 %v2677_v24, %v1259_v11 }
 0x3ec   :  { %v1314_v13 = vmax.f32 %v1260_v44, 0.0 }
 0x3ee   :  { %v1337_v14 = vpack.c.bf16 %v1314_v13, %v1313_v12 }
 0x3f0   :  { %1461 = vmatmul.bf16.gmra.mxu2 %v1337_v14 }
 0x3f1   :  { %v1262_v15 = vpop.f32.mrf.mxu1 }
 0x3f2   :  { %v1263_v18 = vadd.f32 %v2677_v24, %v1262_v15 }
 0x3f3   :  { %v1422_v16 = vpop.f32.mrf.mxu2 }
 0x3f4   :  { %v1423_v4 = vadd.f32 %v2711_v17, %v1422_v16  ;;  %v1315_v22 = vmax.f32 %v1263_v18, 0.0 }
 0x3f6   :  { %v1502_v26 = vmax.f32 %v1423_v4, 0.0 }
 0x3f9   :  { %v1264_v19 = vpop.f32.mrf.mxu1 }
 0x3fa   :  { %v1265_v20 = vadd.f32 %v2677_v24, %v1264_v19 }
 0x3fb   :  { %v1424_v21 = vpop.f32.mrf.mxu2 }
 0x3fc   :  { %v1316_v23 = vmax.f32 %v1265_v20, 0.0  ;;  %v1425_v25 = vadd.f32 %v2711_v17, %v1424_v21 }
 0x3fe   :  { %v1338_v27 = vpack.c.bf16 %v1316_v23, %v1315_v22  ;;  %v1503_v28 = vmax.f32 %v1425_v25, 0.0 }
 0x400   :  { %v1534_v29 = vpack.c.bf16 %v1503_v28, %v1502_v26  ;;  %1466 = vmatmul.bf16.gmra.mxu2 %v1338_v27 }
 0x401   :  { %v1267_v30 = vpop.f32.mrf.mxu1 }
 0x402   :  { %1626 = vmatmul.bf16.vlgmr.msrb.gmra.mxu3 %v1534_v29  ;;  %v1268_v32 = vadd.f32 %v2677_v24, %v1267_v30 }
 0x403   :  { %v1427_v31 = vpop.f32.mrf.mxu2 }
 0x404   :  { %v1428_v34 = vadd.f32 %v2711_v17, %v1427_v31  ;;  %v1317_v8 = vmax.f32 %v1268_v32, 0.0 }
 0x406   :  { %v1504_v39 = vmax.f32 %v1428_v34, 0.0 }
 0x409   :  { %v1269_v33 = vpop.f32.mrf.mxu1 }
 0x40a   :  { %v1270_v35 = vadd.f32 %v2677_v24, %v1269_v33 }
 0x40b   :  { %v1429_v36 = vpop.f32.mrf.mxu2 }
 0x40c   :  { %v1318_v37 = vmax.f32 %v1270_v35, 0.0  ;;  %v1430_v38 = vadd.f32 %v2711_v17, %v1429_v36 }
 0x40e   :  { %v1339_v41 = vpack.c.bf16 %v1318_v37, %v1317_v8  ;;  %v1505_v42 = vmax.f32 %v1430_v38, 0.0 }
 0x410   :  { %1471 = vmatmul.bf16.gmra.mxu2 %v1339_v41  ;;  %v1535_v43 = vpack.c.bf16 %v1505_v42, %v1504_v39 }
 0x411   :  { %v1272_v45 = vpop.f32.mrf.mxu1 }
 0x412   :  { %1631 = vmatmul.bf16.gmra.mxu3 %v1535_v43  ;;  %v1273_v47 = vadd.f32 %v2677_v24, %v1272_v45 }
 0x413   :  { %v1432_v46 = vpop.f32.mrf.mxu2 }
 0x414   :  { %v1433_v49 = vadd.f32 %v2711_v17, %v1432_v46  ;;  %v1319_v52 = vmax.f32 %v1273_v47, 0.0 }
 0x416   :  { %v1506_v53 = vmax.f32 %v1433_v49, 0.0 }
 0x419   :  { %v1274_v48 = vpop.f32.mrf.mxu1 }
 0x41a   :  { %v1275_v50 = vadd.f32 %v2677_v24, %v1274_v48 }
 0x41b   :  { %v1434_v51 = vpop.f32.mrf.mxu2 }
 0x41c   :  { %v1320_v6 = vmax.f32 %v1275_v50, 0.0  ;;  %v1435_v40 = vadd.f32 %v2711_v17, %v1434_v51 }
 0x41e   :  { %v1340_v54 = vpack.c.bf16 %v1320_v6, %v1319_v52  ;;  %v1507_v55 = vmax.f32 %v1435_v40, 0.0 }
 0x420   :  { %1476 = vmatmul.bf16.gmra.mxu2 %v1340_v54  ;;  %v1536_v56 = vpack.c.bf16 %v1507_v55, %v1506_v53 }
 0x421   :  { %v1277_v57 = vpop.f32.mrf.mxu1 }
 0x422   :  { %1636 = vmatmul.bf16.gmra.mxu3 %v1536_v56  ;;  %v1278_v59 = vadd.f32 %v2677_v24, %v1277_v57 }
 0x423   :  { %v1437_v58 = vpop.f32.mrf.mxu2 }
 0x424   :  { %v1438_v61 = vadd.f32 %v2711_v17, %v1437_v58  ;;  %v1321_v0 = vmax.f32 %v1278_v59, 0.0 }
 0x426   :  { %v1508_v3 = vmax.f32 %v1438_v61, 0.0 }
 0x429   :  { %v1279_v60 = vpop.f32.mrf.mxu1 }
 0x42a   :  { %v1280_v62 = vadd.f32 %v2677_v24, %v1279_v60 }
 0x42b   :  { %v1439_v63 = vpop.f32.mrf.mxu2 }
 0x42c   :  { %v1322_v1 = vmax.f32 %v1280_v62, 0.0  ;;  %v1440_v2 = vadd.f32 %v2711_v17, %v1439_v63 }
 0x42e   :  { %v1341_v5 = vpack.c.bf16 %v1322_v1, %v1321_v0  ;;  %v1509_v7 = vmax.f32 %v1440_v2, 0.0  ;;  %v2745_v0 = vld [vmem:[#allocation7 + $0x7] ss:$0 sm:$0xff] }
 0x430   :  { %1481 = vmatmul.bf16.gmra.mxu2 %v1341_v5  ;;  %v1537_v9 = vpack.c.bf16 %v1509_v7, %v1508_v3 }
 0x431   :  { %v1282_v10 = vpop.f32.mrf.mxu1 }
 0x432   :  { %1641 = vmatmul.bf16.gmra.mxu3 %v1537_v9  ;;  %v1283_v44 = vadd.f32 %v2677_v24, %v1282_v10 }
 0x433   :  { %v1442_v11 = vpop.f32.mrf.mxu2 }
 0x434   :  { %v1443_v13 = vadd.f32 %v2711_v17, %v1442_v11  ;;  %v1323_v16 = vmax.f32 %v1283_v44, 0.0 }
 0x436   :  { %v1510_v4 = vmax.f32 %v1443_v13, 0.0 }
 0x439   :  { %v1284_v12 = vpop.f32.mrf.mxu1 }
 0x43a   :  { %v1285_v14 = vadd.f32 %v2677_v24, %v1284_v12 }
 0x43b   :  { %v1444_v15 = vpop.f32.mrf.mxu2 }
 0x43c   :  { %v1324_v18 = vmax.f32 %v1285_v14, 0.0  ;;  %v1445_v19 = vadd.f32 %v2711_v17, %v1444_v15 }
 0x43e   :  { %v1342_v20 = vpack.c.bf16 %v1324_v18, %v1323_v16  ;;  %v1511_v21 = vmax.f32 %v1445_v19, 0.0 }
 0x440   :  { %v1538_v22 = vpack.c.bf16 %v1511_v21, %v1510_v4  ;;  %1486 = vmatmul.bf16.gmra.mxu2 %v1342_v20 }
 0x441   :  { %v1287_v23 = vpop.f32.mrf.mxu1 }
 0x442   :  { %1646 = vmatmul.bf16.gmra.mxu3 %v1538_v22  ;;  %v1288_v26 = vadd.f32 %v2677_v24, %v1287_v23 }
 0x443   :  { %v1447_v25 = vpop.f32.mrf.mxu2 }
 0x444   :  { %v1448_v28 = vadd.f32 %v2711_v17, %v1447_v25  ;;  %v1325_v31 = vmax.f32 %v1288_v26, 0.0 }
 0x446   :  { %v1512_v34 = vmax.f32 %v1448_v28, 0.0 }
 0x449   :  { %v1289_v27 = vpop.f32.mrf.mxu1 }
 0x44a   :  { %v1290_v29 = vadd.f32 %v2677_v24, %v1289_v27 }
 0x44b   :  { %v1449_v30 = vpop.f32.mrf.mxu2 }
 0x44c   :  { %v1326_v32 = vmax.f32 %v1290_v29, 0.0  ;;  %v1450_v33 = vadd.f32 %v2711_v17, %v1449_v30 }
 0x44e   :  { %v1343_v35 = vpack.c.bf16 %v1326_v32, %v1325_v31  ;;  %v1513_v36 = vmax.f32 %v1450_v33, 0.0 }
 0x450   :  { %v1539_v8 = vpack.c.bf16 %v1513_v36, %v1512_v34  ;;  %1491 = vmatmul.bf16.gmra.mxu2 %v1343_v35 }
 0x451   :  { %v1292_v37 = vpop.f32.mrf.mxu1 }
 0x452   :  { %1651 = vmatmul.bf16.gmra.mxu3 %v1539_v8  ;;  %v1293_v39 = vadd.f32 %v2677_v24, %v1292_v37 }
 0x453   :  { %v1452_v38 = vpop.f32.mrf.mxu2 }
 0x454   :  { %v1453_v42 = vadd.f32 %v2711_v17, %v1452_v38  ;;  %v1327_v46 = vmax.f32 %v1293_v39, 0.0 }
 0x456   :  { %v1514_v49 = vmax.f32 %v1453_v42, 0.0 }
 0x459   :  { %v1294_v41 = vpop.f32.mrf.mxu1 }
 0x45a   :  { %v1295_v43 = vadd.f32 %v2677_v24, %v1294_v41 }
 0x45b   :  { %v1454_v45 = vpop.f32.mrf.mxu2 }
 0x45c   :  { %v1328_v47 = vmax.f32 %v1295_v43, 0.0  ;;  %v1455_v48 = vadd.f32 %v2711_v17, %v1454_v45 }
 0x45e   :  { %v1344_v50 = vpack.c.bf16 %v1328_v47, %v1327_v46  ;;  %v1515_v51 = vmax.f32 %v1455_v48, 0.0 }
 0x460   :  { %v1540_v52 = vpack.c.bf16 %v1515_v51, %v1514_v49  ;;  %1496 = vmatmul.bf16.gmra.mxu2 %v1344_v50 }
 0x462   :  { %1656 = vmatmul.bf16.gmra.mxu3 %v1540_v52 }
 0x463   :  { %v1457_v6 = vpop.f32.mrf.mxu2 }
 0x464   :  { %v1458_v40 = vadd.f32 %v2711_v17, %v1457_v6 }
 0x466   :  { %v1516_v55 = vmax.f32 %v1458_v40, 0.0 }
 0x46b   :  { %v1459_v53 = vpop.f32.mrf.mxu2 }
 0x46c   :  { %v1460_v54 = vadd.f32 %v2711_v17, %v1459_v53 }
 0x46e   :  { %v1517_v56 = vmax.f32 %v1460_v54, 0.0 }
 0x470   :  { %v1541_v24 = vpack.c.bf16 %v1517_v56, %v1516_v55 }
 0x472   :  { %1661 = vmatmul.bf16.gmra.mxu3 %v1541_v24 }
 0x473   :  { %v1462_v57 = vpop.f32.mrf.mxu2 }
 0x474   :  { %v1463_v58 = vadd.f32 %v2711_v17, %v1462_v57 }
 0x476   :  { %v1518_v61 = vmax.f32 %v1463_v58, 0.0 }
 0x47b   :  { %v1464_v59 = vpop.f32.mrf.mxu2 }
 0x47c   :  { %v1465_v60 = vadd.f32 %v2711_v17, %v1464_v59 }
 0x47e   :  { %v1519_v62 = vmax.f32 %v1465_v60, 0.0 }
 0x480   :  { %v1542_v63 = vpack.c.bf16 %v1519_v62, %v1518_v61 }
 0x482   :  { %1666 = vmatmul.bf16.gmra.mxu3 %v1542_v63 }
 0x483   :  { %v1467_v1 = vpop.f32.mrf.mxu2 }
 0x484   :  { %v1468_v5 = vadd.f32 %v2711_v17, %v1467_v1 }
 0x485   :  { %v1627_v2 = vpop.f32.mrf.mxu3 }
 0x486   :  { %v1628_v3 = vadd.f32 %v2745_v0, %v1627_v2  ;;  %v1520_v11 = vmax.f32 %v1468_v5, 0.0 }
 0x488   :  { %1707 = vst [vmem:[#allocation8] sm:$0xff] %v1628_v3 }
 0x48b   :  { %v1469_v7 = vpop.f32.mrf.mxu2 }
 0x48c   :  { %v1470_v9 = vadd.f32 %v2711_v17, %v1469_v7 }
 0x48d   :  { %v1629_v10 = vpop.f32.mrf.mxu3 }
 0x48e   :  { %v1521_v44 = vmax.f32 %v1470_v9, 0.0  ;;  %v1630_v12 = vadd.f32 %v2745_v0, %v1629_v10 }
 0x490   :  { %v1543_v13 = vpack.c.bf16 %v1521_v44, %v1520_v11  ;;  %1708 = vst [vmem:[#allocation8 + $0x8] sm:$0xff] %v1630_v12 }
 0x492   :  { %1671 = vmatmul.bf16.gmra.mxu3 %v1543_v13 }
 0x493   :  { %v1472_v14 = vpop.f32.mrf.mxu2 }
 0x494   :  { %v1473_v18 = vadd.f32 %v2711_v17, %v1472_v14 }
 0x495   :  { %v1632_v15 = vpop.f32.mrf.mxu3 }
 0x496   :  { %v1633_v16 = vadd.f32 %v2745_v0, %v1632_v15  ;;  %v1522_v21 = vmax.f32 %v1473_v18, 0.0 }
 0x498   :  { %1709 = vst [vmem:[#allocation8 + $0x10] sm:$0xff] %v1633_v16 }
 0x49b   :  { %v1474_v19 = vpop.f32.mrf.mxu2 }
 0x49c   :  { %v1475_v4 = vadd.f32 %v2711_v17, %v1474_v19 }
 0x49d   :  { %v1634_v20 = vpop.f32.mrf.mxu3 }
 0x49e   :  { %v1523_v22 = vmax.f32 %v1475_v4, 0.0  ;;  %v1635_v23 = vadd.f32 %v2745_v0, %v1634_v20 }
 0x4a0   :  { %v1544_v25 = vpack.c.bf16 %v1523_v22, %v1522_v21  ;;  %1710 = vst [vmem:[#allocation8 + $0x18] sm:$0xff] %v1635_v23 }
 0x4a2   :  { %1676 = vmatmul.bf16.gmra.mxu3 %v1544_v25 }
 0x4a3   :  { %v1477_v26 = vpop.f32.mrf.mxu2 }
 0x4a4   :  { %v1478_v29 = vadd.f32 %v2711_v17, %v1477_v26 }
 0x4a5   :  { %v1637_v27 = vpop.f32.mrf.mxu3 }
 0x4a6   :  { %v1638_v28 = vadd.f32 %v2745_v0, %v1637_v27  ;;  %v1524_v33 = vmax.f32 %v1478_v29, 0.0 }
 0x4a8   :  { %1711 = vst [vmem:[#allocation8 + $0x20] sm:$0xff] %v1638_v28 }
 0x4ab   :  { %v1479_v30 = vpop.f32.mrf.mxu2 }
 0x4ac   :  { %v1480_v31 = vadd.f32 %v2711_v17, %v1479_v30 }
 0x4ad   :  { %v1639_v32 = vpop.f32.mrf.mxu3 }
 0x4ae   :  { %v1525_v34 = vmax.f32 %v1480_v31, 0.0  ;;  %v1640_v35 = vadd.f32 %v2745_v0, %v1639_v32 }
 0x4b0   :  { %v1545_v36 = vpack.c.bf16 %v1525_v34, %v1524_v33  ;;  %1712 = vst [vmem:[#allocation8 + $0x28] sm:$0xff] %v1640_v35 }
 0x4b2   :  { %1681 = vmatmul.bf16.gmra.mxu3 %v1545_v36 }
 0x4b3   :  { %v1482_v8 = vpop.f32.mrf.mxu2 }
 0x4b4   :  { %v1483_v39 = vadd.f32 %v2711_v17, %v1482_v8 }
 0x4b5   :  { %v1642_v37 = vpop.f32.mrf.mxu3 }
 0x4b6   :  { %v1643_v38 = vadd.f32 %v2745_v0, %v1642_v37  ;;  %v1526_v45 = vmax.f32 %v1483_v39, 0.0 }
 0x4b8   :  { %1713 = vst [vmem:[#allocation8 + $0x30] sm:$0xff] %v1643_v38 }
 0x4bb   :  { %v1484_v41 = vpop.f32.mrf.mxu2 }
 0x4bc   :  { %v1485_v42 = vadd.f32 %v2711_v17, %v1484_v41 }
 0x4bd   :  { %v1644_v43 = vpop.f32.mrf.mxu3 }
 0x4be   :  { %v1527_v46 = vmax.f32 %v1485_v42, 0.0  ;;  %v1645_v47 = vadd.f32 %v2745_v0, %v1644_v43 }
 0x4c0   :  { %v1546_v48 = vpack.c.bf16 %v1527_v46, %v1526_v45  ;;  %1714 = vst [vmem:[#allocation8 + $0x38] sm:$0xff] %v1645_v47 }
 0x4c2   :  { %1686 = vmatmul.bf16.gmra.mxu3 %v1546_v48 }
 0x4c3   :  { %v1487_v49 = vpop.f32.mrf.mxu2 }
 0x4c4   :  { %v1488_v52 = vadd.f32 %v2711_v17, %v1487_v49 }
 0x4c5   :  { %v1647_v50 = vpop.f32.mrf.mxu3 }
 0x4c6   :  { %v1648_v51 = vadd.f32 %v2745_v0, %v1647_v50  ;;  %v1528_v54 = vmax.f32 %v1488_v52, 0.0 }
 0x4c8   :  { %1715 = vst [vmem:[#allocation8 + $0x40] sm:$0xff] %v1648_v51 }
 0x4cb   :  { %v1489_v6 = vpop.f32.mrf.mxu2 }
 0x4cc   :  { %v1490_v40 = vadd.f32 %v2711_v17, %v1489_v6 }
 0x4cd   :  { %v1649_v53 = vpop.f32.mrf.mxu3 }
 0x4ce   :  { %v1529_v55 = vmax.f32 %v1490_v40, 0.0  ;;  %v1650_v56 = vadd.f32 %v2745_v0, %v1649_v53 }
 0x4d0   :  { %v1547_v24 = vpack.c.bf16 %v1529_v55, %v1528_v54  ;;  %1716 = vst [vmem:[#allocation8 + $0x48] sm:$0xff] %v1650_v56 }
 0x4d2   :  { %1691 = vmatmul.bf16.gmra.mxu3 %v1547_v24 }
 0x4d3   :  { %v1492_v57 = vpop.f32.mrf.mxu2 }
 0x4d4   :  { %v1493_v60 = vadd.f32 %v2711_v17, %v1492_v57 }
 0x4d5   :  { %v1652_v58 = vpop.f32.mrf.mxu3 }
 0x4d6   :  { %v1653_v59 = vadd.f32 %v2745_v0, %v1652_v58  ;;  %v1530_v1 = vmax.f32 %v1493_v60, 0.0 }
 0x4d8   :  { %1717 = vst [vmem:[#allocation8 + $0x50] sm:$0xff] %v1653_v59 }
 0x4db   :  { %v1494_v61 = vpop.f32.mrf.mxu2 }
 0x4dc   :  { %v1495_v62 = vadd.f32 %v2711_v17, %v1494_v61 }
 0x4dd   :  { %v1654_v63 = vpop.f32.mrf.mxu3 }
 0x4de   :  { %v1531_v2 = vmax.f32 %v1495_v62, 0.0  ;;  %v1655_v3 = vadd.f32 %v2745_v0, %v1654_v63 }
 0x4e0   :  { %v1548_v5 = vpack.c.bf16 %v1531_v2, %v1530_v1  ;;  %1718 = vst [vmem:[#allocation8 + $0x58] sm:$0xff] %v1655_v3 }
 0x4e2   :  { %1696 = vmatmul.bf16.gmra.mxu3 %v1548_v5 }
 0x4e3   :  { %v1497_v7 = vpop.f32.mrf.mxu2 }
 0x4e4   :  { %v1498_v11 = vadd.f32 %v2711_v17, %v1497_v7 }
 0x4e5   :  { %v1657_v9 = vpop.f32.mrf.mxu3 }
 0x4e6   :  { %v1658_v10 = vadd.f32 %v2745_v0, %v1657_v9  ;;  %v1532_v14 = vmax.f32 %v1498_v11, 0.0 }
 0x4e8   :  { %1719 = vst [vmem:[#allocation8 + $0x60] sm:$0xff] %v1658_v10 }
 0x4eb   :  { %v1499_v44 = vpop.f32.mrf.mxu2 }
 0x4ec   :  { %v1500_v12 = vadd.f32 %v2711_v17, %v1499_v44 }
 0x4ed   :  { %v1659_v13 = vpop.f32.mrf.mxu3 }
 0x4ee   :  { %v1533_v15 = vmax.f32 %v1500_v12, 0.0  ;;  %v1660_v16 = vadd.f32 %v2745_v0, %v1659_v13 }
 0x4f0   :  { %v1549_v18 = vpack.c.bf16 %v1533_v15, %v1532_v14  ;;  %1720 = vst [vmem:[#allocation8 + $0x68] sm:$0xff] %v1660_v16 }
 0x4f2   :  { %1701 = vmatmul.bf16.gmra.mxu3 %v1549_v18 }
 0x4f5   :  { %v1662_v19 = vpop.f32.mrf.mxu3 }
 0x4f6   :  { %v1663_v4 = vadd.f32 %v2745_v0, %v1662_v19 }
 0x4f8   :  { %1721 = vst [vmem:[#allocation8 + $0x70] sm:$0xff] %v1663_v4 }
 0x4fd   :  { %v1664_v20 = vpop.f32.mrf.mxu3 }
 0x4fe   :  { %v1665_v21 = vadd.f32 %v2745_v0, %v1664_v20 }
 0x500   :  { %1722 = vst [vmem:[#allocation8 + $0x78] sm:$0xff] %v1665_v21 }
 0x505   :  { %v1667_v22 = vpop.f32.mrf.mxu3 }
 0x506   :  { %v1668_v23 = vadd.f32 %v2745_v0, %v1667_v22 }
 0x508   :  { %1723 = vst [vmem:[#allocation8 + $0x80] sm:$0xff] %v1668_v23 }
 0x50d   :  { %v1669_v17 = vpop.f32.mrf.mxu3 }
 0x50e   :  { %v1670_v25 = vadd.f32 %v2745_v0, %v1669_v17 }
 0x510   :  { %1724 = vst [vmem:[#allocation8 + $0x88] sm:$0xff] %v1670_v25 }
 0x515   :  { %v1672_v26 = vpop.f32.mrf.mxu3 }
 0x516   :  { %v1673_v27 = vadd.f32 %v2745_v0, %v1672_v26 }
 0x518   :  { %1725 = vst [vmem:[#allocation8 + $0x90] sm:$0xff] %v1673_v27 }
 0x51d   :  { %v1674_v28 = vpop.f32.mrf.mxu3 }
 0x51e   :  { %v1675_v29 = vadd.f32 %v2745_v0, %v1674_v28 }
 0x520   :  { %1726 = vst [vmem:[#allocation8 + $0x98] sm:$0xff] %v1675_v29 }
 0x525   :  { %v1677_v30 = vpop.f32.mrf.mxu3 }
 0x526   :  { %v1678_v31 = vadd.f32 %v2745_v0, %v1677_v30 }
 0x528   :  { %1727 = vst [vmem:[#allocation8 + $0xa0] sm:$0xff] %v1678_v31 }
 0x52d   :  { %v1679_v32 = vpop.f32.mrf.mxu3 }
 0x52e   :  { %v1680_v33 = vadd.f32 %v2745_v0, %v1679_v32 }
 0x530   :  { %1728 = vst [vmem:[#allocation8 + $0xa8] sm:$0xff] %v1680_v33 }
 0x535   :  { %v1682_v34 = vpop.f32.mrf.mxu3 }
 0x536   :  { %v1683_v35 = vadd.f32 %v2745_v0, %v1682_v34 }
 0x538   :  { %1729 = vst [vmem:[#allocation8 + $0xb0] sm:$0xff] %v1683_v35 }
 0x53d   :  { %v1684_v36 = vpop.f32.mrf.mxu3 }
 0x53e   :  { %v1685_v8 = vadd.f32 %v2745_v0, %v1684_v36 }
 0x540   :  { %1730 = vst [vmem:[#allocation8 + $0xb8] sm:$0xff] %v1685_v8 }
 0x545   :  { %v1687_v37 = vpop.f32.mrf.mxu3 }
 0x546   :  { %v1688_v38 = vadd.f32 %v2745_v0, %v1687_v37 }
 0x548   :  { %1731 = vst [vmem:[#allocation8 + $0xc0] sm:$0xff] %v1688_v38 }
 0x54d   :  { %v1689_v39 = vpop.f32.mrf.mxu3 }
 0x54e   :  { %v1690_v41 = vadd.f32 %v2745_v0, %v1689_v39 }
 0x550   :  { %1732 = vst [vmem:[#allocation8 + $0xc8] sm:$0xff] %v1690_v41 }
 0x555   :  { %v1692_v42 = vpop.f32.mrf.mxu3 }
 0x556   :  { %v1693_v43 = vadd.f32 %v2745_v0, %v1692_v42 }
 0x558   :  { %1733 = vst [vmem:[#allocation8 + $0xd0] sm:$0xff] %v1693_v43 }
 0x55d   :  { %v1694_v45 = vpop.f32.mrf.mxu3 }
 0x55e   :  { %v1695_v46 = vadd.f32 %v2745_v0, %v1694_v45 }
 0x560   :  { %1734 = vst [vmem:[#allocation8 + $0xd8] sm:$0xff] %v1695_v46 }
 0x565   :  { %v1697_v47 = vpop.f32.mrf.mxu3 }
 0x566   :  { %v1698_v48 = vadd.f32 %v2745_v0, %v1697_v47 }
 0x568   :  { %1735 = vst [vmem:[#allocation8 + $0xe0] sm:$0xff] %v1698_v48 }
 0x56d   :  { %v1699_v49 = vpop.f32.mrf.mxu3 }
 0x56e   :  { %v1700_v50 = vadd.f32 %v2745_v0, %v1699_v49 }
 0x570   :  { %1736 = vst [vmem:[#allocation8 + $0xe8] sm:$0xff] %v1700_v50 }
 0x575   :  { %v1702_v51 = vpop.f32.mrf.mxu3 }
 0x576   :  { %v1703_v52 = vadd.f32 %v2745_v0, %v1702_v51 }
 0x578   :  { %1737 = vst [vmem:[#allocation8 + $0xf0] sm:$0xff] %v1703_v52 }
 0x57d   :  { %v1704_v6 = vpop.f32.mrf.mxu3 }
 0x57e   :  { %v1705_v40 = vadd.f32 %v2745_v0, %v1704_v6 }
 0x580   :  { %1738 = vst [vmem:[#allocation8 + $0xf8] sm:$0xff] %v1705_v40 }
 0x581   :  { %1751 = dma.vmem_to_hbm [thread:$0]  %s1744_s14, 4096, %s1746_s17, [#allocation4], %s2199_s18, %s2199_s18, %s2200_s5  }
 0x582   :  { %2191 = dma.done.wait [#allocation4], 4096  }
 0x583   :  { %2192 = vsyncadd [#allocation4], 4294963200 }
 0x584   :  { %1756 = vsyncpa [#allocation3], 1 }
 0x585   :  { %1757 = vsyncpa [#allocation6], 1 }
 0x586   :  { %1758 = vsyncpa [#allocation4], 1 }

// kernel: tpu_custom_call.1
= control target key start
LH: loop header
LB: loop body
LE: loop exit
PB: predicated region body
PF: predicated region fallthrough
CT: control target
= control target key end

     0   :  { %15 = vsyncpa [#allocation3], 0  ;;  %s2796_s0 = inlined_call_operand.vmem [shape: f32[256,64], index: 0, kind: input, shape index: {}]   ;;  %s2797_s1 = inlined_call_operand.hbm [shape: bf16[64,128], index: 1, kind: input, shape index: {}]   ;;  %s2798_s2 = inlined_call_operand.vmem [shape: bf16[128,128], index: 2, kind: input, shape index: {}]   ;;  %s2799_s3 = inlined_call_operand.vmem [shape: bf16[128,128], index: 3, kind: input, shape index: {}]   ;;  %s2800_s4 = inlined_call_operand.vmem [shape: bf16[128,128], index: 4, kind: input, shape index: {}]   ;;  %s2801_s5 = inlined_call_operand.vmem [shape: bf16[128,128], index: 5, kind: input, shape index: {}]   ;;  %s2802_s6 = inlined_call_operand.vmem [shape: bf16[128,128], index: 6, kind: input, shape index: {}]   ;;  %s2803_s7 = inlined_call_operand.vmem [shape: bf16[128,128], index: 7, kind: input, shape index: {}]   ;;  %s2804_s8 = inlined_call_operand.hbm [shape: bf16[128,128], index: 8, kind: input, shape index: {}]   ;;  %s2805_s9 = inlined_call_operand.hbm [shape: f32[1,1024], index: 9, kind: input, shape index: {}]   ;;  %s2806_s10 = inlined_call_operand.hbm [shape: f32[256,128], index: 10, kind: output, shape index: {}]  }
   0x1   :  { %16 = vsyncpa [#allocation6], 0 }
   0x2   :  { %17 = vsyncpa [#allocation4], 0  ;;  %s49_s15 = sshll.u32 %s2804_s8, 4  ;;  %s2193_s16 = smov [#allocation5]   ;;  %s50_s15 = int_to_ptr.hbm [resolvable:$true] %s49_s15 }
   0x3   :  { %s51_s17 = sshll.u32 %s2193_s16, 4  ;;  %s24_s20 = sshll.u32 %s2797_s1, 4  ;;  %s52_s17 = int_to_ptr.vmem [resolvable:$true] %s51_s17  ;;  %s25_s20 = int_to_ptr.hbm [resolvable:$true] %s24_s20 }
   0x4   :  { %s2194_s21 = smov 64   ;;  %s2195_s22 = smov 4  }
   0x5   :  { %57 = dma.hbm_to_vmem [thread:$0]  %s50_s15, 1024, %s52_s17, [#allocation6], %s2194_s21, %s2194_s21, %s2195_s22  }
   0x6   :  { %s2196_s23 = smov [#allocation2]   ;;  %s63_s27 = sshll.u32 %s2805_s9, 4  ;;  %s64_s27 = int_to_ptr.hbm [resolvable:$true] %s63_s27 }
   0x7   :  { %s26_s24 = sshll.u32 %s2196_s23, 4  ;;  %s2197_s8 = smov [#allocation7]   ;;  %s27_s24 = int_to_ptr.vmem [resolvable:$true] %s26_s24 }
   0x8   :  { %32 = dma.hbm_to_vmem [thread:$0]  %s25_s20, 512, %s27_s24, [#allocation3], %s2194_s21, %s2194_s21, %s2195_s22  }
   0x9   :  { %s65_s28 = sshll.u32 %s2197_s8, 4  ;;  %s66_s28 = int_to_ptr.vmem [resolvable:$true] %s65_s28 }
   0xa   :  { %68 = dma.hbm_to_vmem [thread:$0]  %s64_s27, 128, %s66_s28, [#allocation6]  }
   0xb   :  { %2187 = dma.done.wait [#allocation3], 512  }
   0xc   :  { %2188 = vsyncadd [#allocation3], 4294966784 }
   0xd   :  { %2189 = dma.done.wait [#allocation6], 1152  }
   0xe   :  { %2190 = vsyncadd [#allocation6], 4294966144  ;;  %v2018_v0 = vld [vmem:[#allocation2 + $0x18] sm:$0xff]  ;;  %v2017_v1 = vld [vmem:[#allocation2 + $0x10] sm:$0xff]  ;;  %vm166_vm0 = vcmask 523264   ;;  %s1745_s17 = sshll.u32 %s2806_s10, 4  ;;  %s1746_s17 = int_to_ptr.hbm [resolvable:$true] %s1745_s17 }
   0xf   :  { %219 = vmatpush.bf16.msra.mxu0 %v2018_v0  ;;  %v2016_v2 = vld [vmem:[#allocation2 + $0x8] sm:$0xff]  ;;  %v2015_v3 = vld [vmem:[#allocation2] sm:$0xff]  ;;  %v84_v7 = vld [vmem:[%s2796_s0 + $0x10] sm:$0xff]  ;;  %s2199_s18 = smov 128  }
  0x10   :  { %v82_v4 = vld [vmem:[%s2796_s0] sm:$0xff]  ;;  %v83_v5 = vld [vmem:[%s2796_s0 + $0x8] sm:$0xff]  ;;  %v85_v8 = vld [vmem:[%s2796_s0 + $0x18] sm:$0xff] }
  0x11   :  { %v114_v6 = vpack.c.bf16 %v83_v5, %v82_v4  ;;  %v115_v9 = vpack.c.bf16 %v85_v8, %v84_v7  ;;  %v86_v10 = vld [vmem:[%s2796_s0 + $0x20] sm:$0xff]  ;;  %v87_v11 = vld [vmem:[%s2796_s0 + $0x28] sm:$0xff]  ;;  %v88_v13 = vld [vmem:[%s2796_s0 + $0x30] sm:$0xff] }
  0x12   :  { %v116_v12 = vpack.c.bf16 %v87_v11, %v86_v10  ;;  %v89_v14 = vld [vmem:[%s2796_s0 + $0x38] sm:$0xff]  ;;  %v90_v16 = vld [vmem:[%s2796_s0 + $0x40] sm:$0xff]  ;;  %v91_v17 = vld [vmem:[%s2796_s0 + $0x48] sm:$0xff] }
  0x13   :  { %220 = vmatpush.bf16.msra.mxu0 %v2017_v1  ;;  %v117_v15 = vpack.c.bf16 %v89_v14, %v88_v13  ;;  %v118_v18 = vpack.c.bf16 %v91_v17, %v90_v16  ;;  %v2026_v19 = vld [vmem:[%s2798_s2 + $0x38] sm:$0xff]  ;;  %v92_v20 = vld [vmem:[%s2796_s0 + $0x50] sm:$0xff]  ;;  %v2024_v24 = vld [vmem:[%s2798_s2 + $0x28] sm:$0xff] }
  0x14   :  { %420 = vmatpush.bf16.msra.mxu1 %v2026_v19  ;;  %v93_v21 = vld [vmem:[%s2796_s0 + $0x58] sm:$0xff]  ;;  %v2025_v23 = vld [vmem:[%s2798_s2 + $0x30] sm:$0xff]  ;;  %v2023_v25 = vld [vmem:[%s2798_s2 + $0x20] sm:$0xff] }
  0x15   :  { %v119_v22 = vpack.c.bf16 %v93_v21, %v92_v20  ;;  %v94_v26 = vld [vmem:[%s2796_s0 + $0x60] sm:$0xff]  ;;  %v95_v27 = vld [vmem:[%s2796_s0 + $0x68] sm:$0xff]  ;;  %v2022_v28 = vld [vmem:[%s2798_s2 + $0x18] sm:$0xff] }
  0x16   :  { %v120_v29 = vpack.c.bf16 %v95_v27, %v94_v26  ;;  %v2021_v30 = vld [vmem:[%s2798_s2 + $0x10] sm:$0xff]  ;;  %v2020_v31 = vld [vmem:[%s2798_s2 + $0x8] sm:$0xff]  ;;  %v2019_v32 = vld [vmem:[%s2798_s2] sm:$0xff] }
  0x17   :  { %221 = vmatpush.bf16.msra.mxu0 %v2016_v2  ;;  %v96_v33 = vld [vmem:[%s2796_s0 + $0x70] sm:$0xff]  ;;  %v97_v34 = vld [vmem:[%s2796_s0 + $0x78] sm:$0xff]  ;;  %v98_v36 = vld [vmem:[%s2796_s0 + $0x80] sm:$0xff] }
  0x18   :  { %421 = vmatpush.bf16.msra.mxu1 %v2025_v23  ;;  %v121_v35 = vpack.c.bf16 %v97_v34, %v96_v33  ;;  %v99_v37 = vld [vmem:[%s2796_s0 + $0x88] sm:$0xff]  ;;  %v2351_v40 = vld [vmem:[#allocation7] ss:$0 sm:$0xff]  ;;  %v100_v46 = vld [vmem:[%s2796_s0 + $0x90] sm:$0xff] }
  0x19   :  { %v122_v38 = vpack.c.bf16 %v99_v37, %v98_v36  ;;  %v101_v47 = vld [vmem:[%s2796_s0 + $0x98] sm:$0xff]  ;;  %v102_v56 = vld [vmem:[%s2796_s0 + $0xa0] sm:$0xff]  ;;  %v103_v57 = vld [vmem:[%s2796_s0 + $0xa8] sm:$0xff] }
  0x1a   :  { %v123_v49 = vpack.c.bf16 %v101_v47, %v100_v46  ;;  %v124_v59 = vpack.c.bf16 %v103_v57, %v102_v56  ;;  %v104_v2 = vld [vmem:[%s2796_s0 + $0xb0] sm:$0xff]  ;;  %v107_v13 = vld [vmem:[%s2796_s0 + $0xc8] sm:$0xff]  ;;  %v109_v23 = vld [vmem:[%s2796_s0 + $0xd8] sm:$0xff] }
  0x1b   :  { %222 = vmatpush.bf16.msra.mxu0 %v2015_v3  ;;  %v105_v3 = vld [vmem:[%s2796_s0 + $0xb8] sm:$0xff]  ;;  %v110_v33 = vld [vmem:[%s2796_s0 + $0xe0] sm:$0xff]  ;;  %v111_v34 = vld [vmem:[%s2796_s0 + $0xe8] sm:$0xff] }
  0x1c   :  { %422 = vmatpush.bf16.msra.mxu1 %v2024_v24  ;;  %v125_v5 = vpack.c.bf16 %v105_v3, %v104_v2  ;;  %v2033_v36 = vld [vmem:[%s2799_s3 + $0x30] sm:$0xff]  ;;  %v128_v37 = vpack.c.bf16 %v111_v34, %v110_v33 }
  0x1e   :  { %1775 = vmatmul.msk.bf16.vlgmr.msra.gmra.mxu0 %vm166_vm0, %v114_v6 }
  0x20   :  { %423 = vmatpush.bf16.msra.mxu1 %v2023_v25 }
  0x24   :  { %424 = vmatpush.bf16.msra.mxu1 %v2022_v28 }
  0x28   :  { %425 = vmatpush.bf16.msra.mxu1 %v2021_v30  ;;  %v2034_v30 = vld [vmem:[%s2799_s3 + $0x38] sm:$0xff] }
  0x29   :  { %625 = vmatpush.bf16.msra.mxu2 %v2034_v30 }
  0x2c   :  { %426 = vmatpush.bf16.msra.mxu1 %v2020_v31 }
  0x2d   :  { %626 = vmatpush.bf16.msra.mxu2 %v2033_v36 }
  0x2e   :  { %1776 = vmatmul.msk.bf16.gmra.mxu0 %vm166_vm0, %v115_v9 }
  0x30   :  { %427 = vmatpush.bf16.msra.mxu1 %v2019_v32 }
  0x3e   :  { %1777 = vmatmul.msk.bf16.gmra.mxu0 %vm166_vm0, %v116_v12  ;;  %v106_v12 = vld [vmem:[%s2796_s0 + $0xc0] sm:$0xff] }
  0x4e   :  { %1778 = vmatmul.msk.bf16.gmra.mxu0 %vm166_vm0, %v117_v15  ;;  %v126_v15 = vpack.c.bf16 %v107_v13, %v106_v12 }
  0x5e   :  { %1779 = vmatmul.msk.bf16.gmra.mxu0 %vm166_vm0, %v118_v18 }
  0x6e   :  { %1780 = vmatmul.msk.bf16.gmra.mxu0 %vm166_vm0, %v119_v22  ;;  %v108_v22 = vld [vmem:[%s2796_s0 + $0xd0] sm:$0xff] }
  0x6f   :  { %v127_v25 = vpack.c.bf16 %v109_v23, %v108_v22 }
  0x7e   :  { %1781 = vmatmul.msk.bf16.gmra.mxu0 %vm166_vm0, %v120_v29 }
  0x8e   :  { %1782 = vmatmul.msk.bf16.gmra.mxu0 %vm166_vm0, %v121_v35 }
  0x9b   :  { %v224_v39 = vpop.f32.mrf.mxu0 }
  0x9c   :  { %v225_v41 = vadd.f32 %v2351_v40, %v224_v39  ;;  %v2032_v39 = vld [vmem:[%s2799_s3 + $0x28] sm:$0xff] }
  0x9d   :  { %627 = vmatpush.bf16.msra.mxu2 %v2032_v39 }
  0x9e   :  { %1783 = vmatmul.msk.bf16.gmra.mxu0 %vm166_vm0, %v122_v38  ;;  %v304_v44 = vmax.f32 %v225_v41, 0.0  ;;  %v2031_v41 = vld [vmem:[%s2799_s3 + $0x20] sm:$0xff] }
  0xa1   :  { %628 = vmatpush.bf16.msra.mxu2 %v2031_v41 }
  0xa3   :  { %v226_v42 = vpop.f32.mrf.mxu0 }
  0xa4   :  { %v227_v43 = vadd.f32 %v2351_v40, %v226_v42 }
  0xa6   :  { %v305_v45 = vmax.f32 %v227_v43, 0.0 }
  0xa8   :  { %v336_v48 = vpack.c.bf16 %v305_v45, %v304_v44  ;;  %v2030_v45 = vld [vmem:[%s2799_s3 + $0x18] sm:$0xff] }
  0xa9   :  { %629 = vmatpush.bf16.msra.mxu2 %v2030_v45 }
  0xaa   :  { %428 = vmatmul.bf16.vlgmr.msra.gmra.mxu1 %v336_v48  ;;  %v112_v48 = vld [vmem:[%s2796_s0 + $0xf0] sm:$0xff] }
  0xab   :  { %v229_v50 = vpop.f32.mrf.mxu0 }
  0xac   :  { %v230_v51 = vadd.f32 %v2351_v40, %v229_v50 }
  0xae   :  { %1784 = vmatmul.msk.bf16.gmra.mxu0 %vm166_vm0, %v123_v49  ;;  %v306_v54 = vmax.f32 %v230_v51, 0.0  ;;  %v113_v49 = vld [vmem:[%s2796_s0 + $0xf8] sm:$0xff]  ;;  %v2029_v51 = vld [vmem:[%s2799_s3 + $0x10] sm:$0xff] }
  0xaf   :  { %630 = vmatpush.bf16.msra.mxu2 %v2029_v51  ;;  %v2049_v51 = vld [vmem:[%s2801_s5 + $0x30] sm:$0xff] }
  0xb3   :  { %v231_v52 = vpop.f32.mrf.mxu0 }
  0xb4   :  { %v232_v53 = vadd.f32 %v2351_v40, %v231_v52  ;;  %v129_v52 = vpack.c.bf16 %v113_v49, %v112_v48 }
  0xb6   :  { %v307_v55 = vmax.f32 %v232_v53, 0.0 }
  0xb8   :  { %v337_v58 = vpack.c.bf16 %v307_v55, %v306_v54  ;;  %v2028_v54 = vld [vmem:[%s2799_s3 + $0x8] sm:$0xff]  ;;  %v2027_v55 = vld [vmem:[%s2799_s3] sm:$0xff] }
  0xb9   :  { %631 = vmatpush.bf16.msra.mxu2 %v2028_v54 }
  0xba   :  { %433 = vmatmul.bf16.gmra.mxu1 %v337_v58 }
  0xbb   :  { %v234_v60 = vpop.f32.mrf.mxu0 }
  0xbc   :  { %v235_v61 = vadd.f32 %v2351_v40, %v234_v60 }
  0xbd   :  { %632 = vmatpush.bf16.msra.mxu2 %v2027_v55 }
  0xbe   :  { %1785 = vmatmul.msk.bf16.gmra.mxu0 %vm166_vm0, %v124_v59  ;;  %v308_v0 = vmax.f32 %v235_v61, 0.0 }
  0xc3   :  { %v236_v62 = vpop.f32.mrf.mxu0 }
  0xc4   :  { %v237_v63 = vadd.f32 %v2351_v40, %v236_v62 }
  0xc6   :  { %v309_v1 = vmax.f32 %v237_v63, 0.0 }
  0xc8   :  { %v338_v4 = vpack.c.bf16 %v309_v1, %v308_v0 }
  0xca   :  { %438 = vmatmul.bf16.gmra.mxu1 %v338_v4 }
  0xcb   :  { %v239_v6 = vpop.f32.mrf.mxu0 }
  0xcc   :  { %v240_v7 = vadd.f32 %v2351_v40, %v239_v6  ;;  %v2445_v6 = vld [vmem:[#allocation7 + $0x1] ss:$0 sm:$0xff] }
  0xce   :  { %1786 = vmatmul.msk.bf16.gmra.mxu0 %vm166_vm0, %v125_v5  ;;  %v310_v10 = vmax.f32 %v240_v7, 0.0 }
  0xd3   :  { %v241_v8 = vpop.f32.mrf.mxu0 }
  0xd4   :  { %v242_v9 = vadd.f32 %v2351_v40, %v241_v8 }
  0xd6   :  { %v311_v11 = vmax.f32 %v242_v9, 0.0 }
  0xd8   :  { %v339_v14 = vpack.c.bf16 %v311_v11, %v310_v10 }
  0xda   :  { %443 = vmatmul.bf16.gmra.mxu1 %v339_v14 }
  0xdb   :  { %v244_v16 = vpop.f32.mrf.mxu0 }
  0xdc   :  { %v245_v17 = vadd.f32 %v2351_v40, %v244_v16 }
  0xde   :  { %1787 = vmatmul.msk.bf16.gmra.mxu0 %vm166_vm0, %v126_v15  ;;  %v312_v20 = vmax.f32 %v245_v17, 0.0 }
  0xe3   :  { %v246_v18 = vpop.f32.mrf.mxu0 }
  0xe4   :  { %v247_v19 = vadd.f32 %v2351_v40, %v246_v18 }
  0xe6   :  { %v313_v21 = vmax.f32 %v247_v19, 0.0 }
  0xe8   :  { %v340_v24 = vpack.c.bf16 %v313_v21, %v312_v20  ;;  %v2050_v21 = vld [vmem:[%s2801_s5 + $0x38] sm:$0xff] }
  0xe9   :  { %1003 = vmatpush.bf16.msrb.mxu0 %v2050_v21 }
  0xea   :  { %448 = vmatmul.bf16.gmra.mxu1 %v340_v24 }
  0xeb   :  { %v249_v26 = vpop.f32.mrf.mxu0 }
  0xec   :  { %v250_v27 = vadd.f32 %v2351_v40, %v249_v26 }
  0xed   :  { %1004 = vmatpush.bf16.msrb.mxu0 %v2049_v51 }
  0xee   :  { %1788 = vmatmul.msk.bf16.gmra.mxu0 %vm166_vm0, %v127_v25  ;;  %v314_v31 = vmax.f32 %v250_v27, 0.0 }
  0xf3   :  { %v251_v28 = vpop.f32.mrf.mxu0 }
  0xf4   :  { %v252_v29 = vadd.f32 %v2351_v40, %v251_v28 }
  0xf6   :  { %v315_v32 = vmax.f32 %v252_v29, 0.0 }
  0xf8   :  { %v341_v35 = vpack.c.bf16 %v315_v32, %v314_v31 }
  0xfa   :  { %453 = vmatmul.bf16.gmra.mxu1 %v341_v35 }
  0xfb   :  { %v254_v38 = vpop.f32.mrf.mxu0 }
  0xfc   :  { %v255_v42 = vadd.f32 %v2351_v40, %v254_v38 }
  0xfe   :  { %1789 = vmatmul.msk.bf16.gmra.mxu0 %vm166_vm0, %v128_v37  ;;  %v316_v46 = vmax.f32 %v255_v42, 0.0 }
 0x103   :  { %v256_v43 = vpop.f32.mrf.mxu0 }
 0x104   :  { %v257_v44 = vadd.f32 %v2351_v40, %v256_v43 }
 0x106   :  { %v317_v47 = vmax.f32 %v257_v44, 0.0 }
 0x108   :  { %v342_v50 = vpack.c.bf16 %v317_v47, %v316_v46 }
 0x10a   :  { %458 = vmatmul.bf16.gmra.mxu1 %v342_v50 }
 0x10b   :  { %v259_v53 = vpop.f32.mrf.mxu0 }
 0x10c   :  { %v260_v56 = vadd.f32 %v2351_v40, %v259_v53 }
 0x10e   :  { %1790 = vmatmul.msk.bf16.gmra.mxu0 %vm166_vm0, %v129_v52  ;;  %v318_v59 = vmax.f32 %v260_v56, 0.0 }
 0x113   :  { %v261_v57 = vpop.f32.mrf.mxu0 }
 0x114   :  { %v262_v58 = vadd.f32 %v2351_v40, %v261_v57 }
 0x116   :  { %v319_v60 = vmax.f32 %v262_v58, 0.0 }
 0x118   :  { %v343_v61 = vpack.c.bf16 %v319_v60, %v318_v59 }
 0x11a   :  { %463 = vmatmul.bf16.gmra.mxu1 %v343_v61 }
 0x11b   :  { %v264_v62 = vpop.f32.mrf.mxu0 }
 0x11c   :  { %v265_v63 = vadd.f32 %v2351_v40, %v264_v62 }
 0x11e   :  { %v320_v2 = vmax.f32 %v265_v63, 0.0 }
 0x123   :  { %v266_v0 = vpop.f32.mrf.mxu0 }
 0x124   :  { %v267_v1 = vadd.f32 %v2351_v40, %v266_v0 }
 0x126   :  { %v321_v3 = vmax.f32 %v267_v1, 0.0 }
 0x127   :  { %v429_v4 = vpop.f32.mrf.mxu1 }
 0x128   :  { %v344_v5 = vpack.c.bf16 %v321_v3, %v320_v2  ;;  %v430_v8 = vadd.f32 %v2445_v6, %v429_v4 }
 0x12a   :  { %468 = vmatmul.bf16.gmra.mxu1 %v344_v5  ;;  %v509_v11 = vmax.f32 %v430_v8, 0.0 }
 0x12b   :  { %v269_v7 = vpop.f32.mrf.mxu0 }
 0x12c   :  { %v270_v12 = vadd.f32 %v2351_v40, %v269_v7 }
 0x12e   :  { %v322_v17 = vmax.f32 %v270_v12, 0.0 }
 0x12f   :  { %v431_v9 = vpop.f32.mrf.mxu1 }
 0x130   :  { %v432_v10 = vadd.f32 %v2445_v6, %v431_v9 }
 0x132   :  { %v510_v13 = vmax.f32 %v432_v10, 0.0 }
 0x133   :  { %v271_v14 = vpop.f32.mrf.mxu0 }
 0x134   :  { %v272_v15 = vadd.f32 %v2351_v40, %v271_v14  ;;  %v541_v16 = vpack.c.bf16 %v510_v13, %v509_v11 }
 0x136   :  { %v323_v18 = vmax.f32 %v272_v15, 0.0  ;;  %633 = vmatmul.bf16.vlgmr.msra.gmra.mxu2 %v541_v16 }
 0x137   :  { %v434_v19 = vpop.f32.mrf.mxu1 }
 0x138   :  { %v345_v20 = vpack.c.bf16 %v323_v18, %v322_v17  ;;  %v435_v23 = vadd.f32 %v2445_v6, %v434_v19  ;;  %v2048_v17 = vld [vmem:[%s2801_s5 + $0x28] sm:$0xff] }
 0x139   :  { %1005 = vmatpush.bf16.msrb.mxu0 %v2048_v17 }
 0x13a   :  { %473 = vmatmul.bf16.gmra.mxu1 %v345_v20  ;;  %v511_v26 = vmax.f32 %v435_v23, 0.0 }
 0x13b   :  { %v274_v22 = vpop.f32.mrf.mxu0 }
 0x13c   :  { %v275_v27 = vadd.f32 %v2351_v40, %v274_v22 }
 0x13e   :  { %v324_v32 = vmax.f32 %v275_v27, 0.0 }
 0x13f   :  { %v436_v24 = vpop.f32.mrf.mxu1 }
 0x140   :  { %v437_v25 = vadd.f32 %v2445_v6, %v436_v24 }
 0x142   :  { %v512_v28 = vmax.f32 %v437_v25, 0.0 }
 0x143   :  { %v276_v29 = vpop.f32.mrf.mxu0 }
 0x144   :  { %v277_v30 = vadd.f32 %v2351_v40, %v276_v29  ;;  %v542_v31 = vpack.c.bf16 %v512_v28, %v511_v26 }
 0x146   :  { %v325_v33 = vmax.f32 %v277_v30, 0.0  ;;  %638 = vmatmul.bf16.gmra.mxu2 %v542_v31  ;;  %v2042_v31 = vld [vmem:[%s2800_s4 + $0x38] sm:$0xff] }
 0x147   :  { %v439_v34 = vpop.f32.mrf.mxu1  ;;  %830 = vmatpush.bf16.msra.mxu3 %v2042_v31 }
 0x148   :  { %v346_v35 = vpack.c.bf16 %v325_v33, %v324_v32  ;;  %v440_v37 = vadd.f32 %v2445_v6, %v439_v34  ;;  %v2041_v33 = vld [vmem:[%s2800_s4 + $0x30] sm:$0xff] }
 0x14a   :  { %478 = vmatmul.bf16.gmra.mxu1 %v346_v35  ;;  %v513_v41 = vmax.f32 %v440_v37, 0.0  ;;  %v2040_v37 = vld [vmem:[%s2800_s4 + $0x28] sm:$0xff] }
 0x14b   :  { %v279_v36 = vpop.f32.mrf.mxu0  ;;  %831 = vmatpush.bf16.msra.mxu3 %v2041_v33 }
 0x14c   :  { %v280_v42 = vadd.f32 %v2351_v40, %v279_v36 }
 0x14e   :  { %v326_v47 = vmax.f32 %v280_v42, 0.0 }
 0x14f   :  { %v441_v38 = vpop.f32.mrf.mxu1  ;;  %832 = vmatpush.bf16.msra.mxu3 %v2040_v37 }
 0x150   :  { %v442_v39 = vadd.f32 %v2445_v6, %v441_v38 }
 0x152   :  { %v514_v43 = vmax.f32 %v442_v39, 0.0 }
 0x153   :  { %v281_v44 = vpop.f32.mrf.mxu0 }
 0x154   :  { %v282_v45 = vadd.f32 %v2351_v40, %v281_v44  ;;  %v543_v46 = vpack.c.bf16 %v514_v43, %v513_v41  ;;  %v2039_v43 = vld [vmem:[%s2800_s4 + $0x20] sm:$0xff] }
 0x155   :  { %833 = vmatpush.bf16.msra.mxu3 %v2039_v43 }
 0x156   :  { %v327_v48 = vmax.f32 %v282_v45, 0.0  ;;  %643 = vmatmul.bf16.gmra.mxu2 %v543_v46 }
 0x157   :  { %v444_v49 = vpop.f32.mrf.mxu1 }
 0x158   :  { %v347_v50 = vpack.c.bf16 %v327_v48, %v326_v47  ;;  %v445_v53 = vadd.f32 %v2445_v6, %v444_v49 }
 0x15a   :  { %483 = vmatmul.bf16.gmra.mxu1 %v347_v50  ;;  %v515_v56 = vmax.f32 %v445_v53, 0.0  ;;  %v2038_v50 = vld [vmem:[%s2800_s4 + $0x18] sm:$0xff] }
 0x15b   :  { %v284_v52 = vpop.f32.mrf.mxu0  ;;  %834 = vmatpush.bf16.msra.mxu3 %v2038_v50 }
 0x15c   :  { %v285_v57 = vadd.f32 %v2351_v40, %v284_v52  ;;  %v2047_v52 = vld [vmem:[%s2801_s5 + $0x20] sm:$0xff] }
 0x15d   :  { %1006 = vmatpush.bf16.msrb.mxu0 %v2047_v52 }
 0x15e   :  { %v328_v62 = vmax.f32 %v285_v57, 0.0 }
 0x15f   :  { %v446_v54 = vpop.f32.mrf.mxu1 }
 0x160   :  { %v447_v55 = vadd.f32 %v2445_v6, %v446_v54 }
 0x162   :  { %v516_v58 = vmax.f32 %v447_v55, 0.0  ;;  %v2036_v55 = vld [vmem:[%s2800_s4 + $0x8] sm:$0xff] }
 0x163   :  { %v286_v59 = vpop.f32.mrf.mxu0 }
 0x164   :  { %v287_v60 = vadd.f32 %v2351_v40, %v286_v59  ;;  %v544_v61 = vpack.c.bf16 %v516_v58, %v515_v56  ;;  %v2035_v59 = vld [vmem:[%s2800_s4] sm:$0xff] }
 0x166   :  { %v329_v63 = vmax.f32 %v287_v60, 0.0  ;;  %648 = vmatmul.bf16.gmra.mxu2 %v544_v61 }
 0x167   :  { %v449_v0 = vpop.f32.mrf.mxu1 }
 0x168   :  { %v348_v1 = vpack.c.bf16 %v329_v63, %v328_v62  ;;  %v450_v3 = vadd.f32 %v2445_v6, %v449_v0 }
 0x16a   :  { %488 = vmatmul.bf16.gmra.mxu1 %v348_v1  ;;  %v517_v7 = vmax.f32 %v450_v3, 0.0 }
 0x16b   :  { %v289_v2 = vpop.f32.mrf.mxu0 }
 0x16c   :  { %v290_v8 = vadd.f32 %v2351_v40, %v289_v2 }
 0x16e   :  { %v330_v13 = vmax.f32 %v290_v8, 0.0  ;;  %v2518_v8 = vld [vmem:[#allocation7 + $0x2] ss:$0 sm:$0xff] }
 0x16f   :  { %v451_v4 = vpop.f32.mrf.mxu1 }
 0x170   :  { %v452_v5 = vadd.f32 %v2445_v6, %v451_v4 }
 0x172   :  { %v518_v9 = vmax.f32 %v452_v5, 0.0 }
 0x173   :  { %v291_v10 = vpop.f32.mrf.mxu0 }
 0x174   :  { %v292_v11 = vadd.f32 %v2351_v40, %v291_v10  ;;  %v545_v12 = vpack.c.bf16 %v518_v9, %v517_v7  ;;  %v2046_v7 = vld [vmem:[%s2801_s5 + $0x18] sm:$0xff] }
 0x175   :  { %1007 = vmatpush.bf16.msrb.mxu0 %v2046_v7 }
 0x176   :  { %v331_v14 = vmax.f32 %v292_v11, 0.0  ;;  %653 = vmatmul.bf16.gmra.mxu2 %v545_v12 }
 0x177   :  { %v454_v15 = vpop.f32.mrf.mxu1 }
 0x178   :  { %v349_v16 = vpack.c.bf16 %v331_v14, %v330_v13  ;;  %v455_v19 = vadd.f32 %v2445_v6, %v454_v15 }
 0x17a   :  { %493 = vmatmul.bf16.gmra.mxu1 %v349_v16  ;;  %v519_v22 = vmax.f32 %v455_v19, 0.0 }
 0x17b   :  { %v294_v18 = vpop.f32.mrf.mxu0 }
 0x17c   :  { %v295_v23 = vadd.f32 %v2351_v40, %v294_v18 }
 0x17e   :  { %v332_v28 = vmax.f32 %v295_v23, 0.0 }
 0x17f   :  { %v456_v20 = vpop.f32.mrf.mxu1 }
 0x180   :  { %v457_v21 = vadd.f32 %v2445_v6, %v456_v20  ;;  %v2058_v20 = vld [vmem:[%s2802_s6 + $0x38] sm:$0xff] }
 0x181   :  { %1208 = vmatpush.bf16.msrb.mxu1 %v2058_v20 }
 0x182   :  { %v520_v24 = vmax.f32 %v457_v21, 0.0 }
 0x183   :  { %v296_v25 = vpop.f32.mrf.mxu0 }
 0x184   :  { %v297_v26 = vadd.f32 %v2351_v40, %v296_v25  ;;  %v546_v27 = vpack.c.bf16 %v520_v24, %v519_v22 }
 0x186   :  { %v333_v29 = vmax.f32 %v297_v26, 0.0  ;;  %658 = vmatmul.bf16.gmra.mxu2 %v546_v27 }
 0x187   :  { %v459_v30 = vpop.f32.mrf.mxu1 }
 0x188   :  { %v350_v32 = vpack.c.bf16 %v333_v29, %v332_v28  ;;  %v460_v35 = vadd.f32 %v2445_v6, %v459_v30 }
 0x18a   :  { %498 = vmatmul.bf16.gmra.mxu1 %v350_v32  ;;  %v521_v39 = vmax.f32 %v460_v35, 0.0 }
 0x18b   :  { %v299_v34 = vpop.f32.mrf.mxu0 }
 0x18c   :  { %v300_v41 = vadd.f32 %v2351_v40, %v299_v34 }
 0x18e   :  { %v334_v47 = vmax.f32 %v300_v41, 0.0 }
 0x18f   :  { %v461_v36 = vpop.f32.mrf.mxu1 }
 0x190   :  { %v462_v38 = vadd.f32 %v2445_v6, %v461_v36 }
 0x192   :  { %v522_v42 = vmax.f32 %v462_v38, 0.0  ;;  %v2045_v38 = vld [vmem:[%s2801_s5 + $0x10] sm:$0xff] }
 0x193   :  { %v301_v44 = vpop.f32.mrf.mxu0  ;;  %1008 = vmatpush.bf16.msrb.mxu0 %v2045_v38 }
 0x194   :  { %v302_v45 = vadd.f32 %v2351_v40, %v301_v44  ;;  %v547_v46 = vpack.c.bf16 %v522_v42, %v521_v39  ;;  %v2037_v40 = vld [vmem:[%s2800_s4 + $0x10] sm:$0xff] }
 0x195   :  { %835 = vmatpush.bf16.msra.mxu3 %v2037_v40 }
 0x196   :  { %v335_v48 = vmax.f32 %v302_v45, 0.0  ;;  %663 = vmatmul.bf16.gmra.mxu2 %v547_v46 }
 0x197   :  { %v464_v49 = vpop.f32.mrf.mxu1 }
 0x198   :  { %v351_v51 = vpack.c.bf16 %v335_v48, %v334_v47  ;;  %v465_v53 = vadd.f32 %v2445_v6, %v464_v49 }
 0x199   :  { %836 = vmatpush.bf16.msra.mxu3 %v2036_v55 }
 0x19a   :  { %503 = vmatmul.bf16.gmra.mxu1 %v351_v51  ;;  %v523_v57 = vmax.f32 %v465_v53, 0.0  ;;  %v2057_v51 = vld [vmem:[%s2802_s6 + $0x30] sm:$0xff] }
 0x19b   :  { %1209 = vmatpush.bf16.msrb.mxu1 %v2057_v51 }
 0x19d   :  { %837 = vmatpush.bf16.msra.mxu3 %v2035_v59 }
 0x19f   :  { %v466_v54 = vpop.f32.mrf.mxu1 }
 0x1a0   :  { %v467_v56 = vadd.f32 %v2445_v6, %v466_v54 }
 0x1a2   :  { %v524_v58 = vmax.f32 %v467_v56, 0.0 }
 0x1a4   :  { %v548_v60 = vpack.c.bf16 %v524_v58, %v523_v57 }
 0x1a6   :  { %668 = vmatmul.bf16.gmra.mxu2 %v548_v60 }
 0x1a7   :  { %v469_v61 = vpop.f32.mrf.mxu1 }
 0x1a8   :  { %v470_v62 = vadd.f32 %v2445_v6, %v469_v61 }
 0x1aa   :  { %v525_v1 = vmax.f32 %v470_v62, 0.0 }
 0x1af   :  { %v471_v63 = vpop.f32.mrf.mxu1 }
 0x1b0   :  { %v472_v0 = vadd.f32 %v2445_v6, %v471_v63 }
 0x1b2   :  { %v526_v2 = vmax.f32 %v472_v0, 0.0 }
 0x1b4   :  { %v549_v3 = vpack.c.bf16 %v526_v2, %v525_v1 }
 0x1b6   :  { %673 = vmatmul.bf16.gmra.mxu2 %v549_v3 }
 0x1b7   :  { %v474_v4 = vpop.f32.mrf.mxu1 }
 0x1b8   :  { %v475_v9 = vadd.f32 %v2445_v6, %v474_v4  ;;  %v2044_v4 = vld [vmem:[%s2801_s5 + $0x8] sm:$0xff] }
 0x1b9   :  { %v634_v5 = vpop.f32.mrf.mxu2  ;;  %1009 = vmatpush.bf16.msrb.mxu0 %v2044_v4  ;;  %v2580_v4 = vld [vmem:[#allocation7 + $0x3] ss:$0 sm:$0xff] }
 0x1ba   :  { %v635_v11 = vadd.f32 %v2518_v8, %v634_v5  ;;  %v527_v14 = vmax.f32 %v475_v9, 0.0 }
 0x1bc   :  { %v714_v17 = vmax.f32 %v635_v11, 0.0 }
 0x1bf   :  { %v476_v10 = vpop.f32.mrf.mxu1 }
 0x1c0   :  { %v477_v12 = vadd.f32 %v2445_v6, %v476_v10 }
 0x1c1   :  { %v636_v13 = vpop.f32.mrf.mxu2 }
 0x1c2   :  { %v528_v15 = vmax.f32 %v477_v12, 0.0  ;;  %v637_v16 = vadd.f32 %v2518_v8, %v636_v13 }
 0x1c4   :  { %v715_v18 = vmax.f32 %v637_v16, 0.0  ;;  %v550_v19 = vpack.c.bf16 %v528_v15, %v527_v14 }
 0x1c6   :  { %678 = vmatmul.bf16.gmra.mxu2 %v550_v19  ;;  %v746_v21 = vpack.c.bf16 %v715_v18, %v714_v17  ;;  %v2056_v18 = vld [vmem:[%s2802_s6 + $0x28] sm:$0xff] }
 0x1c7   :  { %v479_v22 = vpop.f32.mrf.mxu1  ;;  %1210 = vmatpush.bf16.msrb.mxu1 %v2056_v18 }
 0x1c8   :  { %838 = vmatmul.bf16.vlgmr.msra.gmra.mxu3 %v746_v21  ;;  %v480_v24 = vadd.f32 %v2445_v6, %v479_v22 }
 0x1c9   :  { %v639_v23 = vpop.f32.mrf.mxu2 }
 0x1ca   :  { %v640_v26 = vadd.f32 %v2518_v8, %v639_v23  ;;  %v529_v29 = vmax.f32 %v480_v24, 0.0 }
 0x1cc   :  { %v716_v32 = vmax.f32 %v640_v26, 0.0 }
 0x1cf   :  { %v481_v25 = vpop.f32.mrf.mxu1 }
 0x1d0   :  { %v482_v27 = vadd.f32 %v2445_v6, %v481_v25 }
 0x1d1   :  { %v641_v28 = vpop.f32.mrf.mxu2 }
 0x1d2   :  { %v530_v30 = vmax.f32 %v482_v27, 0.0  ;;  %v642_v31 = vadd.f32 %v2518_v8, %v641_v28 }
 0x1d4   :  { %v717_v33 = vmax.f32 %v642_v31, 0.0  ;;  %v551_v34 = vpack.c.bf16 %v530_v30, %v529_v29 }
 0x1d6   :  { %683 = vmatmul.bf16.gmra.mxu2 %v551_v34  ;;  %v747_v35 = vpack.c.bf16 %v717_v33, %v716_v32 }
 0x1d7   :  { %v484_v36 = vpop.f32.mrf.mxu1 }
 0x1d8   :  { %843 = vmatmul.bf16.gmra.mxu3 %v747_v35  ;;  %v485_v39 = vadd.f32 %v2445_v6, %v484_v36  ;;  %v2043_v35 = vld [vmem:[%s2801_s5] sm:$0xff]  ;;  %s2200_s5 = smov 8  }
 0x1d9   :  { %v644_v37 = vpop.f32.mrf.mxu2  ;;  %1010 = vmatpush.bf16.msrb.mxu0 %v2043_v35 }
 0x1da   :  { %v645_v42 = vadd.f32 %v2518_v8, %v644_v37  ;;  %v531_v45 = vmax.f32 %v485_v39, 0.0 }
 0x1dc   :  { %v718_v48 = vmax.f32 %v645_v42, 0.0 }
 0x1df   :  { %v486_v41 = vpop.f32.mrf.mxu1 }
 0x1e0   :  { %v487_v43 = vadd.f32 %v2445_v6, %v486_v41 }
 0x1e1   :  { %v646_v44 = vpop.f32.mrf.mxu2 }
 0x1e2   :  { %v532_v46 = vmax.f32 %v487_v43, 0.0  ;;  %v647_v47 = vadd.f32 %v2518_v8, %v646_v44 }
 0x1e4   :  { %v719_v49 = vmax.f32 %v647_v47, 0.0  ;;  %v552_v50 = vpack.c.bf16 %v532_v46, %v531_v45 }
 0x1e6   :  { %688 = vmatmul.bf16.gmra.mxu2 %v552_v50  ;;  %v748_v52 = vpack.c.bf16 %v719_v49, %v718_v48  ;;  %v2055_v49 = vld [vmem:[%s2802_s6 + $0x20] sm:$0xff] }
 0x1e7   :  { %v489_v40 = vpop.f32.mrf.mxu1  ;;  %1211 = vmatpush.bf16.msrb.mxu1 %v2055_v49 }
 0x1e8   :  { %848 = vmatmul.bf16.gmra.mxu3 %v748_v52  ;;  %v490_v54 = vadd.f32 %v2445_v6, %v489_v40 }
 0x1e9   :  { %v649_v53 = vpop.f32.mrf.mxu2 }
 0x1ea   :  { %v650_v56 = vadd.f32 %v2518_v8, %v649_v53  ;;  %v533_v59 = vmax.f32 %v490_v54, 0.0 }
 0x1ec   :  { %v720_v62 = vmax.f32 %v650_v56, 0.0 }
 0x1ef   :  { %v491_v55 = vpop.f32.mrf.mxu1 }
 0x1f0   :  { %v492_v57 = vadd.f32 %v2445_v6, %v491_v55 }
 0x1f1   :  { %v651_v58 = vpop.f32.mrf.mxu2 }
 0x1f2   :  { %v534_v60 = vmax.f32 %v492_v57, 0.0  ;;  %v652_v61 = vadd.f32 %v2518_v8, %v651_v58 }
 0x1f4   :  { %v721_v63 = vmax.f32 %v652_v61, 0.0  ;;  %v553_v0 = vpack.c.bf16 %v534_v60, %v533_v59 }
 0x1f6   :  { %693 = vmatmul.bf16.gmra.mxu2 %v553_v0  ;;  %v749_v1 = vpack.c.bf16 %v721_v63, %v720_v62  ;;  %v2054_v63 = vld [vmem:[%s2802_s6 + $0x18] sm:$0xff] }
 0x1f7   :  { %v494_v2 = vpop.f32.mrf.mxu1  ;;  %1212 = vmatpush.bf16.msrb.mxu1 %v2054_v63 }
 0x1f8   :  { %853 = vmatmul.bf16.gmra.mxu3 %v749_v1  ;;  %v495_v5 = vadd.f32 %v2445_v6, %v494_v2  ;;  %v2066_v2 = vld [vmem:[%s2803_s7 + $0x38] sm:$0xff] }
 0x1f9   :  { %v654_v3 = vpop.f32.mrf.mxu2  ;;  %1413 = vmatpush.bf16.msrb.mxu2 %v2066_v2 }
 0x1fa   :  { %v655_v9 = vadd.f32 %v2518_v8, %v654_v3  ;;  %v535_v12 = vmax.f32 %v495_v5, 0.0 }
 0x1fc   :  { %v722_v15 = vmax.f32 %v655_v9, 0.0 }
 0x1ff   :  { %v496_v7 = vpop.f32.mrf.mxu1 }
 0x200   :  { %v497_v10 = vadd.f32 %v2445_v6, %v496_v7 }
 0x201   :  { %v656_v11 = vpop.f32.mrf.mxu2 }
 0x202   :  { %v536_v13 = vmax.f32 %v497_v10, 0.0  ;;  %v657_v14 = vadd.f32 %v2518_v8, %v656_v11 }
 0x204   :  { %v723_v16 = vmax.f32 %v657_v14, 0.0  ;;  %v554_v17 = vpack.c.bf16 %v536_v13, %v535_v12 }
 0x206   :  { %698 = vmatmul.bf16.gmra.mxu2 %v554_v17  ;;  %v750_v19 = vpack.c.bf16 %v723_v16, %v722_v15 }
 0x207   :  { %v499_v20 = vpop.f32.mrf.mxu1 }
 0x208   :  { %858 = vmatmul.bf16.gmra.mxu3 %v750_v19  ;;  %v500_v22 = vadd.f32 %v2445_v6, %v499_v20 }
 0x209   :  { %v659_v21 = vpop.f32.mrf.mxu2 }
 0x20a   :  { %v660_v24 = vadd.f32 %v2518_v8, %v659_v21  ;;  %v537_v27 = vmax.f32 %v500_v22, 0.0 }
 0x20c   :  { %v724_v30 = vmax.f32 %v660_v24, 0.0 }
 0x20f   :  { %v501_v23 = vpop.f32.mrf.mxu1 }
 0x210   :  { %v502_v25 = vadd.f32 %v2445_v6, %v501_v23 }
 0x211   :  { %v661_v26 = vpop.f32.mrf.mxu2 }
 0x212   :  { %v538_v28 = vmax.f32 %v502_v25, 0.0  ;;  %v662_v29 = vadd.f32 %v2518_v8, %v661_v26 }
 0x214   :  { %v725_v31 = vmax.f32 %v662_v29, 0.0  ;;  %v555_v32 = vpack.c.bf16 %v538_v28, %v537_v27  ;;  %v2053_v28 = vld [vmem:[%s2802_s6 + $0x10] sm:$0xff] }
 0x215   :  { %1213 = vmatpush.bf16.msrb.mxu1 %v2053_v28 }
 0x216   :  { %703 = vmatmul.bf16.gmra.mxu2 %v555_v32  ;;  %v751_v33 = vpack.c.bf16 %v725_v31, %v724_v30  ;;  %v2065_v31 = vld [vmem:[%s2803_s7 + $0x30] sm:$0xff] }
 0x217   :  { %v504_v34 = vpop.f32.mrf.mxu1  ;;  %1414 = vmatpush.bf16.msrb.mxu2 %v2065_v31 }
 0x218   :  { %863 = vmatmul.bf16.gmra.mxu3 %v751_v33  ;;  %v505_v37 = vadd.f32 %v2445_v6, %v504_v34 }
 0x219   :  { %v664_v36 = vpop.f32.mrf.mxu2 }
 0x21a   :  { %v665_v39 = vadd.f32 %v2518_v8, %v664_v36  ;;  %v539_v43 = vmax.f32 %v505_v37, 0.0 }
 0x21c   :  { %v726_v46 = vmax.f32 %v665_v39, 0.0 }
 0x21f   :  { %v506_v38 = vpop.f32.mrf.mxu1 }
 0x220   :  { %v507_v41 = vadd.f32 %v2445_v6, %v506_v38 }
 0x221   :  { %v666_v42 = vpop.f32.mrf.mxu2 }
 0x222   :  { %v540_v44 = vmax.f32 %v507_v41, 0.0  ;;  %v667_v45 = vadd.f32 %v2518_v8, %v666_v42 }
 0x224   :  { %v727_v47 = vmax.f32 %v667_v45, 0.0  ;;  %v556_v48 = vpack.c.bf16 %v540_v44, %v539_v43 }
 0x226   :  { %708 = vmatmul.bf16.gmra.mxu2 %v556_v48  ;;  %v752_v50 = vpack.c.bf16 %v727_v47, %v726_v46 }
 0x228   :  { %868 = vmatmul.bf16.gmra.mxu3 %v752_v50 }
 0x229   :  { %v669_v51 = vpop.f32.mrf.mxu2 }
 0x22a   :  { %v670_v52 = vadd.f32 %v2518_v8, %v669_v51 }
 0x22c   :  { %v728_v53 = vmax.f32 %v670_v52, 0.0 }
 0x231   :  { %v671_v6 = vpop.f32.mrf.mxu2 }
 0x232   :  { %v672_v40 = vadd.f32 %v2518_v8, %v671_v6 }
 0x234   :  { %v729_v54 = vmax.f32 %v672_v40, 0.0 }
 0x236   :  { %v753_v55 = vpack.c.bf16 %v729_v54, %v728_v53  ;;  %v2052_v53 = vld [vmem:[%s2802_s6 + $0x8] sm:$0xff] }
 0x237   :  { %1214 = vmatpush.bf16.msrb.mxu1 %v2052_v53 }
 0x238   :  { %873 = vmatmul.bf16.gmra.mxu3 %v753_v55 }
 0x239   :  { %v674_v56 = vpop.f32.mrf.mxu2 }
 0x23a   :  { %v675_v57 = vadd.f32 %v2518_v8, %v674_v56  ;;  %v2064_v56 = vld [vmem:[%s2803_s7 + $0x28] sm:$0xff] }
 0x23b   :  { %1415 = vmatpush.bf16.msrb.mxu2 %v2064_v56 }
 0x23c   :  { %v730_v60 = vmax.f32 %v675_v57, 0.0 }
 0x241   :  { %v676_v58 = vpop.f32.mrf.mxu2 }
 0x242   :  { %v677_v59 = vadd.f32 %v2518_v8, %v676_v58 }
 0x244   :  { %v731_v61 = vmax.f32 %v677_v59, 0.0 }
 0x246   :  { %v754_v62 = vpack.c.bf16 %v731_v61, %v730_v60 }
 0x248   :  { %878 = vmatmul.bf16.gmra.mxu3 %v754_v62 }
 0x249   :  { %v679_v0 = vpop.f32.mrf.mxu2 }
 0x24a   :  { %v680_v3 = vadd.f32 %v2518_v8, %v679_v0 }
 0x24b   :  { %v839_v1 = vpop.f32.mrf.mxu3 }
 0x24c   :  { %v732_v10 = vmax.f32 %v680_v3, 0.0  ;;  %v840_v11 = vadd.f32 %v2580_v4, %v839_v1 }
 0x251   :  { %v681_v5 = vpop.f32.mrf.mxu2 }
 0x252   :  { %v682_v7 = vadd.f32 %v2518_v8, %v681_v5 }
 0x253   :  { %v841_v9 = vpop.f32.mrf.mxu3 }
 0x254   :  { %v733_v12 = vmax.f32 %v682_v7, 0.0  ;;  %v842_v13 = vadd.f32 %v2580_v4, %v841_v9 }
 0x256   :  { %v919_v14 = vpack.c.bf16 %v842_v13, %v840_v11  ;;  %v755_v15 = vpack.c.bf16 %v733_v12, %v732_v10 }
 0x258   :  { %883 = vmatmul.bf16.gmra.mxu3 %v755_v15  ;;  %1011 = vmatmul.bf16.vlgmr.msrb.gmra.mxu0 %v919_v14 }
 0x259   :  { %v684_v16 = vpop.f32.mrf.mxu2 }
 0x25a   :  { %v685_v18 = vadd.f32 %v2518_v8, %v684_v16 }
 0x25b   :  { %v844_v17 = vpop.f32.mrf.mxu3 }
 0x25c   :  { %v734_v22 = vmax.f32 %v685_v18, 0.0  ;;  %v845_v23 = vadd.f32 %v2580_v4, %v844_v17  ;;  %v2051_v18 = vld [vmem:[%s2802_s6] sm:$0xff] }
 0x25d   :  { %1215 = vmatpush.bf16.msrb.mxu1 %v2051_v18 }
 0x261   :  { %v686_v19 = vpop.f32.mrf.mxu2 }
 0x262   :  { %v687_v20 = vadd.f32 %v2518_v8, %v686_v19 }
 0x263   :  { %v846_v21 = vpop.f32.mrf.mxu3 }
 0x264   :  { %v735_v24 = vmax.f32 %v687_v20, 0.0  ;;  %v847_v25 = vadd.f32 %v2580_v4, %v846_v21  ;;  %v2063_v21 = vld [vmem:[%s2803_s7 + $0x20] sm:$0xff] }
 0x265   :  { %1416 = vmatpush.bf16.msrb.mxu2 %v2063_v21 }
 0x266   :  { %v920_v26 = vpack.c.bf16 %v847_v25, %v845_v23  ;;  %v756_v27 = vpack.c.bf16 %v735_v24, %v734_v22 }
 0x268   :  { %888 = vmatmul.bf16.gmra.mxu3 %v756_v27  ;;  %1016 = vmatmul.bf16.gmra.mxu0 %v920_v26 }
 0x269   :  { %v689_v29 = vpop.f32.mrf.mxu2 }
 0x26a   :  { %v690_v32 = vadd.f32 %v2518_v8, %v689_v29 }
 0x26b   :  { %v849_v30 = vpop.f32.mrf.mxu3 }
 0x26c   :  { %v736_v36 = vmax.f32 %v690_v32, 0.0  ;;  %v850_v37 = vadd.f32 %v2580_v4, %v849_v30 }
 0x271   :  { %v691_v33 = vpop.f32.mrf.mxu2 }
 0x272   :  { %v692_v34 = vadd.f32 %v2518_v8, %v691_v33 }
 0x273   :  { %v851_v35 = vpop.f32.mrf.mxu3 }
 0x274   :  { %v737_v38 = vmax.f32 %v692_v34, 0.0  ;;  %v852_v39 = vadd.f32 %v2580_v4, %v851_v35 }
 0x276   :  { %v921_v41 = vpack.c.bf16 %v852_v39, %v850_v37  ;;  %v757_v42 = vpack.c.bf16 %v737_v38, %v736_v36  ;;  %v2062_v37 = vld [vmem:[%s2803_s7 + $0x18] sm:$0xff] }
 0x277   :  { %1417 = vmatpush.bf16.msrb.mxu2 %v2062_v37 }
 0x278   :  { %893 = vmatmul.bf16.gmra.mxu3 %v757_v42  ;;  %1021 = vmatmul.bf16.gmra.mxu0 %v921_v41 }
 0x279   :  { %v694_v43 = vpop.f32.mrf.mxu2 }
 0x27a   :  { %v695_v45 = vadd.f32 %v2518_v8, %v694_v43 }
 0x27b   :  { %v854_v44 = vpop.f32.mrf.mxu3 }
 0x27c   :  { %v738_v49 = vmax.f32 %v695_v45, 0.0  ;;  %v855_v50 = vadd.f32 %v2580_v4, %v854_v44  ;;  %v2634_v44 = vld [vmem:[#allocation7 + $0x4] ss:$0 sm:$0xff] }
 0x281   :  { %v696_v46 = vpop.f32.mrf.mxu2 }
 0x282   :  { %v697_v47 = vadd.f32 %v2518_v8, %v696_v46 }
 0x283   :  { %v856_v48 = vpop.f32.mrf.mxu3 }
 0x284   :  { %v739_v51 = vmax.f32 %v697_v47, 0.0  ;;  %v857_v52 = vadd.f32 %v2580_v4, %v856_v48 }
 0x286   :  { %v922_v6 = vpack.c.bf16 %v857_v52, %v855_v50  ;;  %v758_v40 = vpack.c.bf16 %v739_v51, %v738_v49  ;;  %v2074_v51 = vld [vmem:[#allocation5 + $0x38] sm:$0xff] }
 0x287   :  { %1618 = vmatpush.bf16.msrb.mxu3 %v2074_v51 }
 0x288   :  { %898 = vmatmul.bf16.gmra.mxu3 %v758_v40  ;;  %1026 = vmatmul.bf16.gmra.mxu0 %v922_v6 }
 0x289   :  { %v699_v54 = vpop.f32.mrf.mxu2 }
 0x28a   :  { %v700_v57 = vadd.f32 %v2518_v8, %v699_v54 }
 0x28b   :  { %v859_v55 = vpop.f32.mrf.mxu3 }
 0x28c   :  { %v740_v61 = vmax.f32 %v700_v57, 0.0  ;;  %v860_v62 = vadd.f32 %v2580_v4, %v859_v55 }
 0x291   :  { %v701_v58 = vpop.f32.mrf.mxu2 }
 0x292   :  { %v702_v59 = vadd.f32 %v2518_v8, %v701_v58 }
 0x293   :  { %v861_v60 = vpop.f32.mrf.mxu3 }
 0x294   :  { %v741_v63 = vmax.f32 %v702_v59, 0.0  ;;  %v862_v0 = vadd.f32 %v2580_v4, %v861_v60 }
 0x296   :  { %v923_v1 = vpack.c.bf16 %v862_v0, %v860_v62  ;;  %v759_v2 = vpack.c.bf16 %v741_v63, %v740_v61  ;;  %v2061_v62 = vld [vmem:[%s2803_s7 + $0x10] sm:$0xff] }
 0x297   :  { %1418 = vmatpush.bf16.msrb.mxu2 %v2061_v62 }
 0x298   :  { %903 = vmatmul.bf16.gmra.mxu3 %v759_v2  ;;  %1031 = vmatmul.bf16.gmra.mxu0 %v923_v1 }
 0x299   :  { %v704_v3 = vpop.f32.mrf.mxu2 }
 0x29a   :  { %v705_v7 = vadd.f32 %v2518_v8, %v704_v3 }
 0x29b   :  { %v864_v5 = vpop.f32.mrf.mxu3 }
 0x29c   :  { %v742_v12 = vmax.f32 %v705_v7, 0.0  ;;  %v865_v13 = vadd.f32 %v2580_v4, %v864_v5 }
 0x2a1   :  { %v706_v9 = vpop.f32.mrf.mxu2 }
 0x2a2   :  { %v707_v10 = vadd.f32 %v2518_v8, %v706_v9 }
 0x2a3   :  { %v866_v11 = vpop.f32.mrf.mxu3 }
 0x2a4   :  { %v743_v14 = vmax.f32 %v707_v10, 0.0  ;;  %v867_v15 = vadd.f32 %v2580_v4, %v866_v11 }
 0x2a6   :  { %v924_v16 = vpack.c.bf16 %v867_v15, %v865_v13  ;;  %v760_v17 = vpack.c.bf16 %v743_v14, %v742_v12  ;;  %v2073_v15 = vld [vmem:[#allocation5 + $0x30] sm:$0xff] }
 0x2a7   :  { %1619 = vmatpush.bf16.msrb.mxu3 %v2073_v15 }
 0x2a8   :  { %908 = vmatmul.bf16.gmra.mxu3 %v760_v17  ;;  %1036 = vmatmul.bf16.gmra.mxu0 %v924_v16 }
 0x2a9   :  { %v709_v19 = vpop.f32.mrf.mxu2 }
 0x2aa   :  { %v710_v22 = vadd.f32 %v2518_v8, %v709_v19 }
 0x2ab   :  { %v869_v20 = vpop.f32.mrf.mxu3 }
 0x2ac   :  { %v744_v26 = vmax.f32 %v710_v22, 0.0  ;;  %v870_v27 = vadd.f32 %v2580_v4, %v869_v20 }
 0x2b1   :  { %v711_v23 = vpop.f32.mrf.mxu2 }
 0x2b2   :  { %v712_v24 = vadd.f32 %v2518_v8, %v711_v23 }
 0x2b3   :  { %v871_v25 = vpop.f32.mrf.mxu3 }
 0x2b4   :  { %v745_v28 = vmax.f32 %v712_v24, 0.0  ;;  %v872_v29 = vadd.f32 %v2580_v4, %v871_v25 }
 0x2b6   :  { %v925_v30 = vpack.c.bf16 %v872_v29, %v870_v27  ;;  %v761_v31 = vpack.c.bf16 %v745_v28, %v744_v26  ;;  %v2060_v28 = vld [vmem:[%s2803_s7 + $0x8] sm:$0xff] }
 0x2b7   :  { %1419 = vmatpush.bf16.msrb.mxu2 %v2060_v28 }
 0x2b8   :  { %913 = vmatmul.bf16.gmra.mxu3 %v761_v31  ;;  %1041 = vmatmul.bf16.gmra.mxu0 %v925_v30 }
 0x2bb   :  { %v874_v32 = vpop.f32.mrf.mxu3 }
 0x2bc   :  { %v875_v34 = vadd.f32 %v2580_v4, %v874_v32 }
 0x2c3   :  { %v876_v33 = vpop.f32.mrf.mxu3 }
 0x2c4   :  { %v877_v35 = vadd.f32 %v2580_v4, %v876_v33 }
 0x2c6   :  { %v926_v36 = vpack.c.bf16 %v877_v35, %v875_v34 }
 0x2c8   :  { %1046 = vmatmul.bf16.gmra.mxu0 %v926_v36 }
 0x2cb   :  { %v879_v8 = vpop.f32.mrf.mxu3 }
 0x2cc   :  { %v880_v39 = vadd.f32 %v2580_v4, %v879_v8 }
 0x2d3   :  { %v881_v38 = vpop.f32.mrf.mxu3 }
 0x2d4   :  { %v882_v41 = vadd.f32 %v2580_v4, %v881_v38 }
 0x2d5   :  { %v1012_v42 = vpop.f32.mrf.mxu0 }
 0x2d6   :  { %v927_v43 = vpack.c.bf16 %v882_v41, %v880_v39  ;;  %v1013_v46 = vadd.f32 %v2634_v44, %v1012_v42  ;;  %v2072_v41 = vld [vmem:[#allocation5 + $0x28] sm:$0xff] }
 0x2d7   :  { %1620 = vmatpush.bf16.msrb.mxu3 %v2072_v41 }
 0x2d8   :  { %1051 = vmatmul.bf16.gmra.mxu0 %v927_v43  ;;  %v1092_v49 = vmax.f32 %v1013_v46, 0.0 }
 0x2db   :  { %v884_v45 = vpop.f32.mrf.mxu3 }
 0x2dc   :  { %v885_v40 = vadd.f32 %v2580_v4, %v884_v45 }
 0x2dd   :  { %v1014_v47 = vpop.f32.mrf.mxu0 }
 0x2de   :  { %v1015_v48 = vadd.f32 %v2634_v44, %v1014_v47 }
 0x2e0   :  { %v1093_v50 = vmax.f32 %v1015_v48, 0.0 }
 0x2e2   :  { %v1124_v52 = vpack.c.bf16 %v1093_v50, %v1092_v49 }
 0x2e3   :  { %v886_v6 = vpop.f32.mrf.mxu3 }
 0x2e4   :  { %v887_v53 = vadd.f32 %v2580_v4, %v886_v6  ;;  %1216 = vmatmul.bf16.vlgmr.msrb.gmra.mxu1 %v1124_v52 }
 0x2e5   :  { %v1017_v54 = vpop.f32.mrf.mxu0 }
 0x2e6   :  { %v928_v55 = vpack.c.bf16 %v887_v53, %v885_v40  ;;  %v1018_v57 = vadd.f32 %v2634_v44, %v1017_v54  ;;  %v2059_v53 = vld [vmem:[%s2803_s7] sm:$0xff]  ;;  %s2198_s7 = smov [#allocation8]  }
 0x2e7   :  { %1420 = vmatpush.bf16.msrb.mxu2 %v2059_v53  ;;  %v2069_v53 = vld [vmem:[#allocation5 + $0x10] sm:$0xff]  ;;  %s1743_s14 = sshll.u32 %s2198_s7, 4  ;;  %s1744_s14 = int_to_ptr.vmem [resolvable:$true] %s1743_s14 }
 0x2e8   :  { %1056 = vmatmul.bf16.gmra.mxu0 %v928_v55  ;;  %v1094_v60 = vmax.f32 %v1018_v57, 0.0 }
 0x2eb   :  { %v889_v56 = vpop.f32.mrf.mxu3 }
 0x2ec   :  { %v890_v1 = vadd.f32 %v2580_v4, %v889_v56 }
 0x2ed   :  { %v1019_v58 = vpop.f32.mrf.mxu0 }
 0x2ee   :  { %v1020_v59 = vadd.f32 %v2634_v44, %v1019_v58 }
 0x2f0   :  { %v1095_v61 = vmax.f32 %v1020_v59, 0.0 }
 0x2f2   :  { %v1125_v63 = vpack.c.bf16 %v1095_v61, %v1094_v60 }
 0x2f3   :  { %v891_v0 = vpop.f32.mrf.mxu3 }
 0x2f4   :  { %v892_v2 = vadd.f32 %v2580_v4, %v891_v0  ;;  %1221 = vmatmul.bf16.gmra.mxu1 %v1125_v63 }
 0x2f5   :  { %v1022_v3 = vpop.f32.mrf.mxu0 }
 0x2f6   :  { %v929_v5 = vpack.c.bf16 %v892_v2, %v890_v1  ;;  %v1023_v9 = vadd.f32 %v2634_v44, %v1022_v3 }
 0x2f8   :  { %1061 = vmatmul.bf16.gmra.mxu0 %v929_v5  ;;  %v1096_v12 = vmax.f32 %v1023_v9, 0.0 }
 0x2fb   :  { %v894_v7 = vpop.f32.mrf.mxu3 }
 0x2fc   :  { %v895_v17 = vadd.f32 %v2580_v4, %v894_v7  ;;  %v2071_v7 = vld [vmem:[#allocation5 + $0x20] sm:$0xff] }
 0x2fd   :  { %v1024_v10 = vpop.f32.mrf.mxu0  ;;  %1621 = vmatpush.bf16.msrb.mxu3 %v2071_v7 }
 0x2fe   :  { %v1025_v11 = vadd.f32 %v2634_v44, %v1024_v10 }
 0x300   :  { %v1097_v13 = vmax.f32 %v1025_v11, 0.0 }
 0x302   :  { %v1126_v14 = vpack.c.bf16 %v1097_v13, %v1096_v12 }
 0x303   :  { %v896_v16 = vpop.f32.mrf.mxu3 }
 0x304   :  { %v897_v18 = vadd.f32 %v2580_v4, %v896_v16  ;;  %1226 = vmatmul.bf16.gmra.mxu1 %v1126_v14 }
 0x305   :  { %v1027_v19 = vpop.f32.mrf.mxu0 }
 0x306   :  { %v930_v20 = vpack.c.bf16 %v897_v18, %v895_v17  ;;  %v1028_v22 = vadd.f32 %v2634_v44, %v1027_v19 }
 0x308   :  { %1066 = vmatmul.bf16.gmra.mxu0 %v930_v20  ;;  %v1098_v25 = vmax.f32 %v1028_v22, 0.0 }
 0x30b   :  { %v899_v21 = vpop.f32.mrf.mxu3 }
 0x30c   :  { %v900_v30 = vadd.f32 %v2580_v4, %v899_v21 }
 0x30d   :  { %v1029_v23 = vpop.f32.mrf.mxu0 }
 0x30e   :  { %v1030_v24 = vadd.f32 %v2634_v44, %v1029_v23 }
 0x310   :  { %v1099_v26 = vmax.f32 %v1030_v24, 0.0  ;;  %v2677_v24 = vld [vmem:[#allocation7 + $0x5] ss:$0 sm:$0xff] }
 0x312   :  { %v1127_v27 = vpack.c.bf16 %v1099_v26, %v1098_v25  ;;  %v2070_v25 = vld [vmem:[#allocation5 + $0x18] sm:$0xff] }
 0x313   :  { %v901_v29 = vpop.f32.mrf.mxu3  ;;  %1622 = vmatpush.bf16.msrb.mxu3 %v2070_v25 }
 0x314   :  { %v902_v31 = vadd.f32 %v2580_v4, %v901_v29  ;;  %1231 = vmatmul.bf16.gmra.mxu1 %v1127_v27 }
 0x315   :  { %v1032_v32 = vpop.f32.mrf.mxu0 }
 0x316   :  { %v931_v33 = vpack.c.bf16 %v902_v31, %v900_v30  ;;  %v1033_v35 = vadd.f32 %v2634_v44, %v1032_v32 }
 0x317   :  { %1623 = vmatpush.bf16.msrb.mxu3 %v2069_v53 }
 0x318   :  { %1071 = vmatmul.bf16.gmra.mxu0 %v931_v33  ;;  %v1100_v37 = vmax.f32 %v1033_v35, 0.0 }
 0x31b   :  { %v904_v34 = vpop.f32.mrf.mxu3 }
 0x31c   :  { %v905_v43 = vadd.f32 %v2580_v4, %v904_v34 }
 0x31d   :  { %v1034_v36 = vpop.f32.mrf.mxu0 }
 0x31e   :  { %v1035_v8 = vadd.f32 %v2634_v44, %v1034_v36 }
 0x320   :  { %v1101_v38 = vmax.f32 %v1035_v8, 0.0 }
 0x322   :  { %v1128_v39 = vpack.c.bf16 %v1101_v38, %v1100_v37 }
 0x323   :  { %v906_v42 = vpop.f32.mrf.mxu3 }
 0x324   :  { %v907_v45 = vadd.f32 %v2580_v4, %v906_v42  ;;  %1236 = vmatmul.bf16.gmra.mxu1 %v1128_v39 }
 0x325   :  { %v1037_v46 = vpop.f32.mrf.mxu0 }
 0x326   :  { %v932_v47 = vpack.c.bf16 %v907_v45, %v905_v43  ;;  %v1038_v49 = vadd.f32 %v2634_v44, %v1037_v46 }
 0x328   :  { %1076 = vmatmul.bf16.gmra.mxu0 %v932_v47  ;;  %v1102_v52 = vmax.f32 %v1038_v49, 0.0 }
 0x32b   :  { %v909_v48 = vpop.f32.mrf.mxu3 }
 0x32c   :  { %v910_v55 = vadd.f32 %v2580_v4, %v909_v48 }
 0x32d   :  { %v1039_v50 = vpop.f32.mrf.mxu0 }
 0x32e   :  { %v1040_v51 = vadd.f32 %v2634_v44, %v1039_v50 }
 0x330   :  { %v1103_v6 = vmax.f32 %v1040_v51, 0.0 }
 0x332   :  { %v1129_v40 = vpack.c.bf16 %v1103_v6, %v1102_v52 }
 0x333   :  { %v911_v54 = vpop.f32.mrf.mxu3 }
 0x334   :  { %v912_v56 = vadd.f32 %v2580_v4, %v911_v54  ;;  %1241 = vmatmul.bf16.gmra.mxu1 %v1129_v40 }
 0x335   :  { %v1042_v57 = vpop.f32.mrf.mxu0 }
 0x336   :  { %v933_v58 = vpack.c.bf16 %v912_v56, %v910_v55  ;;  %v1043_v60 = vadd.f32 %v2634_v44, %v1042_v57 }
 0x338   :  { %1081 = vmatmul.bf16.gmra.mxu0 %v933_v58  ;;  %v1104_v63 = vmax.f32 %v1043_v60, 0.0 }
 0x33b   :  { %v914_v59 = vpop.f32.mrf.mxu3 }
 0x33c   :  { %v915_v3 = vadd.f32 %v2580_v4, %v914_v59 }
 0x33d   :  { %v1044_v61 = vpop.f32.mrf.mxu0 }
 0x33e   :  { %v1045_v62 = vadd.f32 %v2634_v44, %v1044_v61 }
 0x340   :  { %v1105_v0 = vmax.f32 %v1045_v62, 0.0 }
 0x342   :  { %v1130_v1 = vpack.c.bf16 %v1105_v0, %v1104_v63 }
 0x343   :  { %v916_v2 = vpop.f32.mrf.mxu3 }
 0x344   :  { %v917_v5 = vadd.f32 %v2580_v4, %v916_v2  ;;  %1246 = vmatmul.bf16.gmra.mxu1 %v1130_v1 }
 0x345   :  { %v1047_v9 = vpop.f32.mrf.mxu0 }
 0x346   :  { %v934_v10 = vpack.c.bf16 %v917_v5, %v915_v3  ;;  %v1048_v11 = vadd.f32 %v2634_v44, %v1047_v9 }
 0x348   :  { %1086 = vmatmul.bf16.gmra.mxu0 %v934_v10  ;;  %v1106_v14 = vmax.f32 %v1048_v11, 0.0 }
 0x34d   :  { %v1049_v12 = vpop.f32.mrf.mxu0 }
 0x34e   :  { %v1050_v13 = vadd.f32 %v2634_v44, %v1049_v12 }
 0x350   :  { %v1107_v15 = vmax.f32 %v1050_v13, 0.0 }
 0x352   :  { %v1131_v16 = vpack.c.bf16 %v1107_v15, %v1106_v14 }
 0x354   :  { %1251 = vmatmul.bf16.gmra.mxu1 %v1131_v16 }
 0x355   :  { %v1052_v17 = vpop.f32.mrf.mxu0 }
 0x356   :  { %v1053_v18 = vadd.f32 %v2634_v44, %v1052_v17 }
 0x358   :  { %v1108_v20 = vmax.f32 %v1053_v18, 0.0 }
 0x35d   :  { %v1054_v19 = vpop.f32.mrf.mxu0 }
 0x35e   :  { %v1055_v4 = vadd.f32 %v2634_v44, %v1054_v19 }
 0x360   :  { %v1109_v21 = vmax.f32 %v1055_v4, 0.0 }
 0x361   :  { %v1217_v22 = vpop.f32.mrf.mxu1 }
 0x362   :  { %v1132_v23 = vpack.c.bf16 %v1109_v21, %v1108_v20  ;;  %v1218_v27 = vadd.f32 %v2677_v24, %v1217_v22  ;;  %v2068_v20 = vld [vmem:[#allocation5 + $0x8] sm:$0xff] }
 0x363   :  { %1624 = vmatpush.bf16.msrb.mxu3 %v2068_v20 }
 0x364   :  { %1256 = vmatmul.bf16.gmra.mxu1 %v1132_v23  ;;  %v1297_v30 = vmax.f32 %v1218_v27, 0.0 }
 0x365   :  { %v1057_v26 = vpop.f32.mrf.mxu0 }
 0x366   :  { %v1058_v31 = vadd.f32 %v2634_v44, %v1057_v26 }
 0x368   :  { %v1110_v36 = vmax.f32 %v1058_v31, 0.0 }
 0x369   :  { %v1219_v28 = vpop.f32.mrf.mxu1 }
 0x36a   :  { %v1220_v29 = vadd.f32 %v2677_v24, %v1219_v28 }
 0x36c   :  { %v1298_v32 = vmax.f32 %v1220_v29, 0.0 }
 0x36d   :  { %v1059_v33 = vpop.f32.mrf.mxu0 }
 0x36e   :  { %v1329_v34 = vpack.c.bf16 %v1298_v32, %v1297_v30  ;;  %v1060_v35 = vadd.f32 %v2634_v44, %v1059_v33 }
 0x370   :  { %v1111_v8 = vmax.f32 %v1060_v35, 0.0  ;;  %1421 = vmatmul.bf16.vlgmr.msrb.gmra.mxu2 %v1329_v34 }
 0x371   :  { %v1222_v37 = vpop.f32.mrf.mxu1 }
 0x372   :  { %v1133_v38 = vpack.c.bf16 %v1111_v8, %v1110_v36  ;;  %v1223_v41 = vadd.f32 %v2677_v24, %v1222_v37 }
 0x374   :  { %1261 = vmatmul.bf16.gmra.mxu1 %v1133_v38  ;;  %v1299_v45 = vmax.f32 %v1223_v41, 0.0 }
 0x375   :  { %v1062_v39 = vpop.f32.mrf.mxu0 }
 0x376   :  { %v1063_v46 = vadd.f32 %v2634_v44, %v1062_v39 }
 0x378   :  { %v1112_v51 = vmax.f32 %v1063_v46, 0.0 }
 0x379   :  { %v1224_v42 = vpop.f32.mrf.mxu1 }
 0x37a   :  { %v1225_v43 = vadd.f32 %v2677_v24, %v1224_v42 }
 0x37c   :  { %v1300_v47 = vmax.f32 %v1225_v43, 0.0 }
 0x37d   :  { %v1064_v48 = vpop.f32.mrf.mxu0 }
 0x37e   :  { %v1065_v49 = vadd.f32 %v2634_v44, %v1064_v48  ;;  %v1330_v50 = vpack.c.bf16 %v1300_v47, %v1299_v45 }
 0x380   :  { %v1113_v52 = vmax.f32 %v1065_v49, 0.0  ;;  %1426 = vmatmul.bf16.gmra.mxu2 %v1330_v50 }
 0x381   :  { %v1227_v6 = vpop.f32.mrf.mxu1 }
 0x382   :  { %v1134_v40 = vpack.c.bf16 %v1113_v52, %v1112_v51  ;;  %v1228_v55 = vadd.f32 %v2677_v24, %v1227_v6  ;;  %v2067_v51 = vld [vmem:[#allocation5] sm:$0xff] }
 0x383   :  { %1625 = vmatpush.bf16.msrb.mxu3 %v2067_v51 }
 0x384   :  { %1266 = vmatmul.bf16.gmra.mxu1 %v1134_v40  ;;  %v1301_v58 = vmax.f32 %v1228_v55, 0.0 }
 0x385   :  { %v1067_v54 = vpop.f32.mrf.mxu0 }
 0x386   :  { %v1068_v59 = vadd.f32 %v2634_v44, %v1067_v54 }
 0x388   :  { %v1114_v0 = vmax.f32 %v1068_v59, 0.0 }
 0x389   :  { %v1229_v56 = vpop.f32.mrf.mxu1 }
 0x38a   :  { %v1230_v57 = vadd.f32 %v2677_v24, %v1229_v56 }
 0x38c   :  { %v1302_v60 = vmax.f32 %v1230_v57, 0.0 }
 0x38d   :  { %v1069_v61 = vpop.f32.mrf.mxu0 }
 0x38e   :  { %v1070_v62 = vadd.f32 %v2634_v44, %v1069_v61  ;;  %v1331_v63 = vpack.c.bf16 %v1302_v60, %v1301_v58 }
 0x390   :  { %v1115_v1 = vmax.f32 %v1070_v62, 0.0  ;;  %1431 = vmatmul.bf16.gmra.mxu2 %v1331_v63 }
 0x391   :  { %v1232_v2 = vpop.f32.mrf.mxu1 }
 0x392   :  { %v1135_v3 = vpack.c.bf16 %v1115_v1, %v1114_v0  ;;  %v1233_v7 = vadd.f32 %v2677_v24, %v1232_v2 }
 0x394   :  { %1271 = vmatmul.bf16.gmra.mxu1 %v1135_v3  ;;  %v1303_v11 = vmax.f32 %v1233_v7, 0.0 }
 0x395   :  { %v1072_v5 = vpop.f32.mrf.mxu0 }
 0x396   :  { %v1073_v12 = vadd.f32 %v2634_v44, %v1072_v5 }
 0x398   :  { %v1116_v17 = vmax.f32 %v1073_v12, 0.0 }
 0x399   :  { %v1234_v9 = vpop.f32.mrf.mxu1 }
 0x39a   :  { %v1235_v10 = vadd.f32 %v2677_v24, %v1234_v9 }
 0x39c   :  { %v1304_v13 = vmax.f32 %v1235_v10, 0.0 }
 0x39d   :  { %v1074_v14 = vpop.f32.mrf.mxu0 }
 0x39e   :  { %v1075_v15 = vadd.f32 %v2634_v44, %v1074_v14  ;;  %v1332_v16 = vpack.c.bf16 %v1304_v13, %v1303_v11 }
 0x3a0   :  { %v1117_v18 = vmax.f32 %v1075_v15, 0.0  ;;  %1436 = vmatmul.bf16.gmra.mxu2 %v1332_v16 }
 0x3a1   :  { %v1237_v19 = vpop.f32.mrf.mxu1 }
 0x3a2   :  { %v1136_v4 = vpack.c.bf16 %v1117_v18, %v1116_v17  ;;  %v1238_v22 = vadd.f32 %v2677_v24, %v1237_v19  ;;  %v2711_v17 = vld [vmem:[#allocation7 + $0x6] ss:$0 sm:$0xff] }
 0x3a4   :  { %1276 = vmatmul.bf16.gmra.mxu1 %v1136_v4  ;;  %v1305_v26 = vmax.f32 %v1238_v22, 0.0 }
 0x3a5   :  { %v1077_v21 = vpop.f32.mrf.mxu0 }
 0x3a6   :  { %v1078_v27 = vadd.f32 %v2634_v44, %v1077_v21 }
 0x3a8   :  { %v1118_v32 = vmax.f32 %v1078_v27, 0.0 }
 0x3a9   :  { %v1239_v23 = vpop.f32.mrf.mxu1 }
 0x3aa   :  { %v1240_v25 = vadd.f32 %v2677_v24, %v1239_v23 }
 0x3ac   :  { %v1306_v28 = vmax.f32 %v1240_v25, 0.0 }
 0x3ad   :  { %v1079_v29 = vpop.f32.mrf.mxu0 }
 0x3ae   :  { %v1333_v30 = vpack.c.bf16 %v1306_v28, %v1305_v26  ;;  %v1080_v31 = vadd.f32 %v2634_v44, %v1079_v29 }
 0x3b0   :  { %v1119_v33 = vmax.f32 %v1080_v31, 0.0  ;;  %1441 = vmatmul.bf16.gmra.mxu2 %v1333_v30 }
 0x3b1   :  { %v1242_v34 = vpop.f32.mrf.mxu1 }
 0x3b2   :  { %v1137_v35 = vpack.c.bf16 %v1119_v33, %v1118_v32  ;;  %v1243_v8 = vadd.f32 %v2677_v24, %v1242_v34 }
 0x3b4   :  { %1281 = vmatmul.bf16.gmra.mxu1 %v1137_v35  ;;  %v1307_v39 = vmax.f32 %v1243_v8, 0.0 }
 0x3b5   :  { %v1082_v36 = vpop.f32.mrf.mxu0 }
 0x3b6   :  { %v1083_v41 = vadd.f32 %v2634_v44, %v1082_v36 }
 0x3b8   :  { %v1120_v47 = vmax.f32 %v1083_v41, 0.0 }
 0x3b9   :  { %v1244_v37 = vpop.f32.mrf.mxu1 }
 0x3ba   :  { %v1245_v38 = vadd.f32 %v2677_v24, %v1244_v37 }
 0x3bc   :  { %v1308_v42 = vmax.f32 %v1245_v38, 0.0 }
 0x3bd   :  { %v1084_v43 = vpop.f32.mrf.mxu0 }
 0x3be   :  { %v1334_v45 = vpack.c.bf16 %v1308_v42, %v1307_v39  ;;  %v1085_v46 = vadd.f32 %v2634_v44, %v1084_v43 }
 0x3c0   :  { %v1121_v48 = vmax.f32 %v1085_v46, 0.0  ;;  %1446 = vmatmul.bf16.gmra.mxu2 %v1334_v45 }
 0x3c1   :  { %v1247_v49 = vpop.f32.mrf.mxu1 }
 0x3c2   :  { %v1138_v50 = vpack.c.bf16 %v1121_v48, %v1120_v47  ;;  %v1248_v6 = vadd.f32 %v2677_v24, %v1247_v49 }
 0x3c4   :  { %1286 = vmatmul.bf16.gmra.mxu1 %v1138_v50  ;;  %v1309_v54 = vmax.f32 %v1248_v6, 0.0 }
 0x3c5   :  { %v1087_v52 = vpop.f32.mrf.mxu0 }
 0x3c6   :  { %v1088_v55 = vadd.f32 %v2634_v44, %v1087_v52 }
 0x3c8   :  { %v1122_v60 = vmax.f32 %v1088_v55, 0.0 }
 0x3c9   :  { %v1249_v40 = vpop.f32.mrf.mxu1 }
 0x3ca   :  { %v1250_v53 = vadd.f32 %v2677_v24, %v1249_v40 }
 0x3cc   :  { %v1310_v56 = vmax.f32 %v1250_v53, 0.0 }
 0x3cd   :  { %v1089_v57 = vpop.f32.mrf.mxu0 }
 0x3ce   :  { %v1335_v58 = vpack.c.bf16 %v1310_v56, %v1309_v54  ;;  %v1090_v59 = vadd.f32 %v2634_v44, %v1089_v57 }
 0x3d0   :  { %v1123_v61 = vmax.f32 %v1090_v59, 0.0  ;;  %1451 = vmatmul.bf16.gmra.mxu2 %v1335_v58 }
 0x3d1   :  { %v1252_v62 = vpop.f32.mrf.mxu1 }
 0x3d2   :  { %v1139_v63 = vpack.c.bf16 %v1123_v61, %v1122_v60  ;;  %v1253_v0 = vadd.f32 %v2677_v24, %v1252_v62 }
 0x3d4   :  { %1291 = vmatmul.bf16.gmra.mxu1 %v1139_v63  ;;  %v1311_v3 = vmax.f32 %v1253_v0, 0.0 }
 0x3d9   :  { %v1254_v1 = vpop.f32.mrf.mxu1 }
 0x3da   :  { %v1255_v2 = vadd.f32 %v2677_v24, %v1254_v1 }
 0x3dc   :  { %v1312_v5 = vmax.f32 %v1255_v2, 0.0 }
 0x3de   :  { %v1336_v7 = vpack.c.bf16 %v1312_v5, %v1311_v3 }
 0x3e0   :  { %1456 = vmatmul.bf16.gmra.mxu2 %v1336_v7 }
 0x3e1   :  { %v1257_v9 = vpop.f32.mrf.mxu1 }
 0x3e2   :  { %v1258_v10 = vadd.f32 %v2677_v24, %v1257_v9 }
 0x3e4   :  { %v1313_v12 = vmax.f32 %v1258_v10, 0.0 }
 0x3e9   :  { %v1259_v11 = vpop.f32.mrf.mxu1 }
 0x3ea   :  { %v1260_v44 = vadd.f32 %v2677_v24, %v1259_v11 }
 0x3ec   :  { %v1314_v13 = vmax.f32 %v1260_v44, 0.0 }
 0x3ee   :  { %v1337_v14 = vpack.c.bf16 %v1314_v13, %v1313_v12 }
 0x3f0   :  { %1461 = vmatmul.bf16.gmra.mxu2 %v1337_v14 }
 0x3f1   :  { %v1262_v15 = vpop.f32.mrf.mxu1 }
 0x3f2   :  { %v1263_v18 = vadd.f32 %v2677_v24, %v1262_v15 }
 0x3f3   :  { %v1422_v16 = vpop.f32.mrf.mxu2 }
 0x3f4   :  { %v1423_v4 = vadd.f32 %v2711_v17, %v1422_v16  ;;  %v1315_v22 = vmax.f32 %v1263_v18, 0.0 }
 0x3f6   :  { %v1502_v26 = vmax.f32 %v1423_v4, 0.0 }
 0x3f9   :  { %v1264_v19 = vpop.f32.mrf.mxu1 }
 0x3fa   :  { %v1265_v20 = vadd.f32 %v2677_v24, %v1264_v19 }
 0x3fb   :  { %v1424_v21 = vpop.f32.mrf.mxu2 }
 0x3fc   :  { %v1316_v23 = vmax.f32 %v1265_v20, 0.0  ;;  %v1425_v25 = vadd.f32 %v2711_v17, %v1424_v21 }
 0x3fe   :  { %v1338_v27 = vpack.c.bf16 %v1316_v23, %v1315_v22  ;;  %v1503_v28 = vmax.f32 %v1425_v25, 0.0 }
 0x400   :  { %v1534_v29 = vpack.c.bf16 %v1503_v28, %v1502_v26  ;;  %1466 = vmatmul.bf16.gmra.mxu2 %v1338_v27 }
 0x401   :  { %v1267_v30 = vpop.f32.mrf.mxu1 }
 0x402   :  { %1626 = vmatmul.bf16.vlgmr.msrb.gmra.mxu3 %v1534_v29  ;;  %v1268_v32 = vadd.f32 %v2677_v24, %v1267_v30 }
 0x403   :  { %v1427_v31 = vpop.f32.mrf.mxu2 }
 0x404   :  { %v1428_v34 = vadd.f32 %v2711_v17, %v1427_v31  ;;  %v1317_v8 = vmax.f32 %v1268_v32, 0.0 }
 0x406   :  { %v1504_v39 = vmax.f32 %v1428_v34, 0.0 }
 0x409   :  { %v1269_v33 = vpop.f32.mrf.mxu1 }
 0x40a   :  { %v1270_v35 = vadd.f32 %v2677_v24, %v1269_v33 }
 0x40b   :  { %v1429_v36 = vpop.f32.mrf.mxu2 }
 0x40c   :  { %v1318_v37 = vmax.f32 %v1270_v35, 0.0  ;;  %v1430_v38 = vadd.f32 %v2711_v17, %v1429_v36 }
 0x40e   :  { %v1339_v41 = vpack.c.bf16 %v1318_v37, %v1317_v8  ;;  %v1505_v42 = vmax.f32 %v1430_v38, 0.0 }
 0x410   :  { %1471 = vmatmul.bf16.gmra.mxu2 %v1339_v41  ;;  %v1535_v43 = vpack.c.bf16 %v1505_v42, %v1504_v39 }
 0x411   :  { %v1272_v45 = vpop.f32.mrf.mxu1 }
 0x412   :  { %1631 = vmatmul.bf16.gmra.mxu3 %v1535_v43  ;;  %v1273_v47 = vadd.f32 %v2677_v24, %v1272_v45 }
 0x413   :  { %v1432_v46 = vpop.f32.mrf.mxu2 }
 0x414   :  { %v1433_v49 = vadd.f32 %v2711_v17, %v1432_v46  ;;  %v1319_v52 = vmax.f32 %v1273_v47, 0.0 }
 0x416   :  { %v1506_v53 = vmax.f32 %v1433_v49, 0.0 }
 0x419   :  { %v1274_v48 = vpop.f32.mrf.mxu1 }
 0x41a   :  { %v1275_v50 = vadd.f32 %v2677_v24, %v1274_v48 }
 0x41b   :  { %v1434_v51 = vpop.f32.mrf.mxu2 }
 0x41c   :  { %v1320_v6 = vmax.f32 %v1275_v50, 0.0  ;;  %v1435_v40 = vadd.f32 %v2711_v17, %v1434_v51 }
 0x41e   :  { %v1340_v54 = vpack.c.bf16 %v1320_v6, %v1319_v52  ;;  %v1507_v55 = vmax.f32 %v1435_v40, 0.0 }
 0x420   :  { %1476 = vmatmul.bf16.gmra.mxu2 %v1340_v54  ;;  %v1536_v56 = vpack.c.bf16 %v1507_v55, %v1506_v53 }
 0x421   :  { %v1277_v57 = vpop.f32.mrf.mxu1 }
 0x422   :  { %1636 = vmatmul.bf16.gmra.mxu3 %v1536_v56  ;;  %v1278_v59 = vadd.f32 %v2677_v24, %v1277_v57 }
 0x423   :  { %v1437_v58 = vpop.f32.mrf.mxu2 }
 0x424   :  { %v1438_v61 = vadd.f32 %v2711_v17, %v1437_v58  ;;  %v1321_v0 = vmax.f32 %v1278_v59, 0.0 }
 0x426   :  { %v1508_v3 = vmax.f32 %v1438_v61, 0.0 }
 0x429   :  { %v1279_v60 = vpop.f32.mrf.mxu1 }
 0x42a   :  { %v1280_v62 = vadd.f32 %v2677_v24, %v1279_v60 }
 0x42b   :  { %v1439_v63 = vpop.f32.mrf.mxu2 }
 0x42c   :  { %v1322_v1 = vmax.f32 %v1280_v62, 0.0  ;;  %v1440_v2 = vadd.f32 %v2711_v17, %v1439_v63 }
 0x42e   :  { %v1341_v5 = vpack.c.bf16 %v1322_v1, %v1321_v0  ;;  %v1509_v7 = vmax.f32 %v1440_v2, 0.0  ;;  %v2745_v0 = vld [vmem:[#allocation7 + $0x7] ss:$0 sm:$0xff] }
 0x430   :  { %1481 = vmatmul.bf16.gmra.mxu2 %v1341_v5  ;;  %v1537_v9 = vpack.c.bf16 %v1509_v7, %v1508_v3 }
 0x431   :  { %v1282_v10 = vpop.f32.mrf.mxu1 }
 0x432   :  { %1641 = vmatmul.bf16.gmra.mxu3 %v1537_v9  ;;  %v1283_v44 = vadd.f32 %v2677_v24, %v1282_v10 }
 0x433   :  { %v1442_v11 = vpop.f32.mrf.mxu2 }
 0x434   :  { %v1443_v13 = vadd.f32 %v2711_v17, %v1442_v11  ;;  %v1323_v16 = vmax.f32 %v1283_v44, 0.0 }
 0x436   :  { %v1510_v4 = vmax.f32 %v1443_v13, 0.0 }
 0x439   :  { %v1284_v12 = vpop.f32.mrf.mxu1 }
 0x43a   :  { %v1285_v14 = vadd.f32 %v2677_v24, %v1284_v12 }
 0x43b   :  { %v1444_v15 = vpop.f32.mrf.mxu2 }
 0x43c   :  { %v1324_v18 = vmax.f32 %v1285_v14, 0.0  ;;  %v1445_v19 = vadd.f32 %v2711_v17, %v1444_v15 }
 0x43e   :  { %v1342_v20 = vpack.c.bf16 %v1324_v18, %v1323_v16  ;;  %v1511_v21 = vmax.f32 %v1445_v19, 0.0 }
 0x440   :  { %v1538_v22 = vpack.c.bf16 %v1511_v21, %v1510_v4  ;;  %1486 = vmatmul.bf16.gmra.mxu2 %v1342_v20 }
 0x441   :  { %v1287_v23 = vpop.f32.mrf.mxu1 }
 0x442   :  { %1646 = vmatmul.bf16.gmra.mxu3 %v1538_v22  ;;  %v1288_v26 = vadd.f32 %v2677_v24, %v1287_v23 }
 0x443   :  { %v1447_v25 = vpop.f32.mrf.mxu2 }
 0x444   :  { %v1448_v28 = vadd.f32 %v2711_v17, %v1447_v25  ;;  %v1325_v31 = vmax.f32 %v1288_v26, 0.0 }
 0x446   :  { %v1512_v34 = vmax.f32 %v1448_v28, 0.0 }
 0x449   :  { %v1289_v27 = vpop.f32.mrf.mxu1 }
 0x44a   :  { %v1290_v29 = vadd.f32 %v2677_v24, %v1289_v27 }
 0x44b   :  { %v1449_v30 = vpop.f32.mrf.mxu2 }
 0x44c   :  { %v1326_v32 = vmax.f32 %v1290_v29, 0.0  ;;  %v1450_v33 = vadd.f32 %v2711_v17, %v1449_v30 }
 0x44e   :  { %v1343_v35 = vpack.c.bf16 %v1326_v32, %v1325_v31  ;;  %v1513_v36 = vmax.f32 %v1450_v33, 0.0 }
 0x450   :  { %v1539_v8 = vpack.c.bf16 %v1513_v36, %v1512_v34  ;;  %1491 = vmatmul.bf16.gmra.mxu2 %v1343_v35 }
 0x451   :  { %v1292_v37 = vpop.f32.mrf.mxu1 }
 0x452   :  { %1651 = vmatmul.bf16.gmra.mxu3 %v1539_v8  ;;  %v1293_v39 = vadd.f32 %v2677_v24, %v1292_v37 }
 0x453   :  { %v1452_v38 = vpop.f32.mrf.mxu2 }
 0x454   :  { %v1453_v42 = vadd.f32 %v2711_v17, %v1452_v38  ;;  %v1327_v46 = vmax.f32 %v1293_v39, 0.0 }
 0x456   :  { %v1514_v49 = vmax.f32 %v1453_v42, 0.0 }
 0x459   :  { %v1294_v41 = vpop.f32.mrf.mxu1 }
 0x45a   :  { %v1295_v43 = vadd.f32 %v2677_v24, %v1294_v41 }
 0x45b   :  { %v1454_v45 = vpop.f32.mrf.mxu2 }
 0x45c   :  { %v1328_v47 = vmax.f32 %v1295_v43, 0.0  ;;  %v1455_v48 = vadd.f32 %v2711_v17, %v1454_v45 }
 0x45e   :  { %v1344_v50 = vpack.c.bf16 %v1328_v47, %v1327_v46  ;;  %v1515_v51 = vmax.f32 %v1455_v48, 0.0 }
 0x460   :  { %v1540_v52 = vpack.c.bf16 %v1515_v51, %v1514_v49  ;;  %1496 = vmatmul.bf16.gmra.mxu2 %v1344_v50 }
 0x462   :  { %1656 = vmatmul.bf16.gmra.mxu3 %v1540_v52 }
 0x463   :  { %v1457_v6 = vpop.f32.mrf.mxu2 }
 0x464   :  { %v1458_v40 = vadd.f32 %v2711_v17, %v1457_v6 }
 0x466   :  { %v1516_v55 = vmax.f32 %v1458_v40, 0.0 }
 0x46b   :  { %v1459_v53 = vpop.f32.mrf.mxu2 }
 0x46c   :  { %v1460_v54 = vadd.f32 %v2711_v17, %v1459_v53 }
 0x46e   :  { %v1517_v56 = vmax.f32 %v1460_v54, 0.0 }
 0x470   :  { %v1541_v24 = vpack.c.bf16 %v1517_v56, %v1516_v55 }
 0x472   :  { %1661 = vmatmul.bf16.gmra.mxu3 %v1541_v24 }
 0x473   :  { %v1462_v57 = vpop.f32.mrf.mxu2 }
 0x474   :  { %v1463_v58 = vadd.f32 %v2711_v17, %v1462_v57 }
 0x476   :  { %v1518_v61 = vmax.f32 %v1463_v58, 0.0 }
 0x47b   :  { %v1464_v59 = vpop.f32.mrf.mxu2 }
 0x47c   :  { %v1465_v60 = vadd.f32 %v2711_v17, %v1464_v59 }
 0x47e   :  { %v1519_v62 = vmax.f32 %v1465_v60, 0.0 }
 0x480   :  { %v1542_v63 = vpack.c.bf16 %v1519_v62, %v1518_v61 }
 0x482   :  { %1666 = vmatmul.bf16.gmra.mxu3 %v1542_v63 }
 0x483   :  { %v1467_v1 = vpop.f32.mrf.mxu2 }
 0x484   :  { %v1468_v5 = vadd.f32 %v2711_v17, %v1467_v1 }
 0x485   :  { %v1627_v2 = vpop.f32.mrf.mxu3 }
 0x486   :  { %v1628_v3 = vadd.f32 %v2745_v0, %v1627_v2  ;;  %v1520_v11 = vmax.f32 %v1468_v5, 0.0 }
 0x488   :  { %1707 = vst [vmem:[#allocation8] sm:$0xff] %v1628_v3 }
 0x48b   :  { %v1469_v7 = vpop.f32.mrf.mxu2 }
 0x48c   :  { %v1470_v9 = vadd.f32 %v2711_v17, %v1469_v7 }
 0x48d   :  { %v1629_v10 = vpop.f32.mrf.mxu3 }
 0x48e   :  { %v1521_v44 = vmax.f32 %v1470_v9, 0.0  ;;  %v1630_v12 = vadd.f32 %v2745_v0, %v1629_v10 }
 0x490   :  { %v1543_v13 = vpack.c.bf16 %v1521_v44, %v1520_v11  ;;  %1708 = vst [vmem:[#allocation8 + $0x8] sm:$0xff] %v1630_v12 }
 0x492   :  { %1671 = vmatmul.bf16.gmra.mxu3 %v1543_v13 }
 0x493   :  { %v1472_v14 = vpop.f32.mrf.mxu2 }
 0x494   :  { %v1473_v18 = vadd.f32 %v2711_v17, %v1472_v14 }
 0x495   :  { %v1632_v15 = vpop.f32.mrf.mxu3 }
 0x496   :  { %v1633_v16 = vadd.f32 %v2745_v0, %v1632_v15  ;;  %v1522_v21 = vmax.f32 %v1473_v18, 0.0 }
 0x498   :  { %1709 = vst [vmem:[#allocation8 + $0x10] sm:$0xff] %v1633_v16 }
 0x49b   :  { %v1474_v19 = vpop.f32.mrf.mxu2 }
 0x49c   :  { %v1475_v4 = vadd.f32 %v2711_v17, %v1474_v19 }
 0x49d   :  { %v1634_v20 = vpop.f32.mrf.mxu3 }
 0x49e   :  { %v1523_v22 = vmax.f32 %v1475_v4, 0.0  ;;  %v1635_v23 = vadd.f32 %v2745_v0, %v1634_v20 }
 0x4a0   :  { %v1544_v25 = vpack.c.bf16 %v1523_v22, %v1522_v21  ;;  %1710 = vst [vmem:[#allocation8 + $0x18] sm:$0xff] %v1635_v23 }
 0x4a2   :  { %1676 = vmatmul.bf16.gmra.mxu3 %v1544_v25 }
 0x4a3   :  { %v1477_v26 = vpop.f32.mrf.mxu2 }
 0x4a4   :  { %v1478_v29 = vadd.f32 %v2711_v17, %v1477_v26 }
 0x4a5   :  { %v1637_v27 = vpop.f32.mrf.mxu3 }
 0x4a6   :  { %v1638_v28 = vadd.f32 %v2745_v0, %v1637_v27  ;;  %v1524_v33 = vmax.f32 %v1478_v29, 0.0 }
 0x4a8   :  { %1711 = vst [vmem:[#allocation8 + $0x20] sm:$0xff] %v1638_v28 }
 0x4ab   :  { %v1479_v30 = vpop.f32.mrf.mxu2 }
 0x4ac   :  { %v1480_v31 = vadd.f32 %v2711_v17, %v1479_v30 }
 0x4ad   :  { %v1639_v32 = vpop.f32.mrf.mxu3 }
 0x4ae   :  { %v1525_v34 = vmax.f32 %v1480_v31, 0.0  ;;  %v1640_v35 = vadd.f32 %v2745_v0, %v1639_v32 }
 0x4b0   :  { %v1545_v36 = vpack.c.bf16 %v1525_v34, %v1524_v33  ;;  %1712 = vst [vmem:[#allocation8 + $0x28] sm:$0xff] %v1640_v35 }
 0x4b2   :  { %1681 = vmatmul.bf16.gmra.mxu3 %v1545_v36 }
 0x4b3   :  { %v1482_v8 = vpop.f32.mrf.mxu2 }
 0x4b4   :  { %v1483_v39 = vadd.f32 %v2711_v17, %v1482_v8 }
 0x4b5   :  { %v1642_v37 = vpop.f32.mrf.mxu3 }
 0x4b6   :  { %v1643_v38 = vadd.f32 %v2745_v0, %v1642_v37  ;;  %v1526_v45 = vmax.f32 %v1483_v39, 0.0 }
 0x4b8   :  { %1713 = vst [vmem:[#allocation8 + $0x30] sm:$0xff] %v1643_v38 }
 0x4bb   :  { %v1484_v41 = vpop.f32.mrf.mxu2 }
 0x4bc   :  { %v1485_v42 = vadd.f32 %v2711_v17, %v1484_v41 }
 0x4bd   :  { %v1644_v43 = vpop.f32.mrf.mxu3 }
 0x4be   :  { %v1527_v46 = vmax.f32 %v1485_v42, 0.0  ;;  %v1645_v47 = vadd.f32 %v2745_v0, %v1644_v43 }
 0x4c0   :  { %v1546_v48 = vpack.c.bf16 %v1527_v46, %v1526_v45  ;;  %1714 = vst [vmem:[#allocation8 + $0x38] sm:$0xff] %v1645_v47 }
 0x4c2   :  { %1686 = vmatmul.bf16.gmra.mxu3 %v1546_v48 }
 0x4c3   :  { %v1487_v49 = vpop.f32.mrf.mxu2 }
 0x4c4   :  { %v1488_v52 = vadd.f32 %v2711_v17, %v1487_v49 }
 0x4c5   :  { %v1647_v50 = vpop.f32.mrf.mxu3 }
 0x4c6   :  { %v1648_v51 = vadd.f32 %v2745_v0, %v1647_v50  ;;  %v1528_v54 = vmax.f32 %v1488_v52, 0.0 }
 0x4c8   :  { %1715 = vst [vmem:[#allocation8 + $0x40] sm:$0xff] %v1648_v51 }
 0x4cb   :  { %v1489_v6 = vpop.f32.mrf.mxu2 }
 0x4cc   :  { %v1490_v40 = vadd.f32 %v2711_v17, %v1489_v6 }
 0x4cd   :  { %v1649_v53 = vpop.f32.mrf.mxu3 }
 0x4ce   :  { %v1529_v55 = vmax.f32 %v1490_v40, 0.0  ;;  %v1650_v56 = vadd.f32 %v2745_v0, %v1649_v53 }
 0x4d0   :  { %v1547_v24 = vpack.c.bf16 %v1529_v55, %v1528_v54  ;;  %1716 = vst [vmem:[#allocation8 + $0x48] sm:$0xff] %v1650_v56 }
 0x4d2   :  { %1691 = vmatmul.bf16.gmra.mxu3 %v1547_v24 }
 0x4d3   :  { %v1492_v57 = vpop.f32.mrf.mxu2 }
 0x4d4   :  { %v1493_v60 = vadd.f32 %v2711_v17, %v1492_v57 }
 0x4d5   :  { %v1652_v58 = vpop.f32.mrf.mxu3 }
 0x4d6   :  { %v1653_v59 = vadd.f32 %v2745_v0, %v1652_v58  ;;  %v1530_v1 = vmax.f32 %v1493_v60, 0.0 }
 0x4d8   :  { %1717 = vst [vmem:[#allocation8 + $0x50] sm:$0xff] %v1653_v59 }
 0x4db   :  { %v1494_v61 = vpop.f32.mrf.mxu2 }
 0x4dc   :  { %v1495_v62 = vadd.f32 %v2711_v17, %v1494_v61 }
 0x4dd   :  { %v1654_v63 = vpop.f32.mrf.mxu3 }
 0x4de   :  { %v1531_v2 = vmax.f32 %v1495_v62, 0.0  ;;  %v1655_v3 = vadd.f32 %v2745_v0, %v1654_v63 }
 0x4e0   :  { %v1548_v5 = vpack.c.bf16 %v1531_v2, %v1530_v1  ;;  %1718 = vst [vmem:[#allocation8 + $0x58] sm:$0xff] %v1655_v3 }
 0x4e2   :  { %1696 = vmatmul.bf16.gmra.mxu3 %v1548_v5 }
 0x4e3   :  { %v1497_v7 = vpop.f32.mrf.mxu2 }
 0x4e4   :  { %v1498_v11 = vadd.f32 %v2711_v17, %v1497_v7 }
 0x4e5   :  { %v1657_v9 = vpop.f32.mrf.mxu3 }
 0x4e6   :  { %v1658_v10 = vadd.f32 %v2745_v0, %v1657_v9  ;;  %v1532_v14 = vmax.f32 %v1498_v11, 0.0 }
 0x4e8   :  { %1719 = vst [vmem:[#allocation8 + $0x60] sm:$0xff] %v1658_v10 }
 0x4eb   :  { %v1499_v44 = vpop.f32.mrf.mxu2 }
 0x4ec   :  { %v1500_v12 = vadd.f32 %v2711_v17, %v1499_v44 }
 0x4ed   :  { %v1659_v13 = vpop.f32.mrf.mxu3 }
 0x4ee   :  { %v1533_v15 = vmax.f32 %v1500_v12, 0.0  ;;  %v1660_v16 = vadd.f32 %v2745_v0, %v1659_v13 }
 0x4f0   :  { %v1549_v18 = vpack.c.bf16 %v1533_v15, %v1532_v14  ;;  %1720 = vst [vmem:[#allocation8 + $0x68] sm:$0xff] %v1660_v16 }
 0x4f2   :  { %1701 = vmatmul.bf16.gmra.mxu3 %v1549_v18 }
 0x4f5   :  { %v1662_v19 = vpop.f32.mrf.mxu3 }
 0x4f6   :  { %v1663_v4 = vadd.f32 %v2745_v0, %v1662_v19 }
 0x4f8   :  { %1721 = vst [vmem:[#allocation8 + $0x70] sm:$0xff] %v1663_v4 }
 0x4fd   :  { %v1664_v20 = vpop.f32.mrf.mxu3 }
 0x4fe   :  { %v1665_v21 = vadd.f32 %v2745_v0, %v1664_v20 }
 0x500   :  { %1722 = vst [vmem:[#allocation8 + $0x78] sm:$0xff] %v1665_v21 }
 0x505   :  { %v1667_v22 = vpop.f32.mrf.mxu3 }
 0x506   :  { %v1668_v23 = vadd.f32 %v2745_v0, %v1667_v22 }
 0x508   :  { %1723 = vst [vmem:[#allocation8 + $0x80] sm:$0xff] %v1668_v23 }
 0x50d   :  { %v1669_v17 = vpop.f32.mrf.mxu3 }
 0x50e   :  { %v1670_v25 = vadd.f32 %v2745_v0, %v1669_v17 }
 0x510   :  { %1724 = vst [vmem:[#allocation8 + $0x88] sm:$0xff] %v1670_v25 }
 0x515   :  { %v1672_v26 = vpop.f32.mrf.mxu3 }
 0x516   :  { %v1673_v27 = vadd.f32 %v2745_v0, %v1672_v26 }
 0x518   :  { %1725 = vst [vmem:[#allocation8 + $0x90] sm:$0xff] %v1673_v27 }
 0x51d   :  { %v1674_v28 = vpop.f32.mrf.mxu3 }
 0x51e   :  { %v1675_v29 = vadd.f32 %v2745_v0, %v1674_v28 }
 0x520   :  { %1726 = vst [vmem:[#allocation8 + $0x98] sm:$0xff] %v1675_v29 }
 0x525   :  { %v1677_v30 = vpop.f32.mrf.mxu3 }
 0x526   :  { %v1678_v31 = vadd.f32 %v2745_v0, %v1677_v30 }
 0x528   :  { %1727 = vst [vmem:[#allocation8 + $0xa0] sm:$0xff] %v1678_v31 }
 0x52d   :  { %v1679_v32 = vpop.f32.mrf.mxu3 }
 0x52e   :  { %v1680_v33 = vadd.f32 %v2745_v0, %v1679_v32 }
 0x530   :  { %1728 = vst [vmem:[#allocation8 + $0xa8] sm:$0xff] %v1680_v33 }
 0x535   :  { %v1682_v34 = vpop.f32.mrf.mxu3 }
 0x536   :  { %v1683_v35 = vadd.f32 %v2745_v0, %v1682_v34 }
 0x538   :  { %1729 = vst [vmem:[#allocation8 + $0xb0] sm:$0xff] %v1683_v35 }
 0x53d   :  { %v1684_v36 = vpop.f32.mrf.mxu3 }
 0x53e   :  { %v1685_v8 = vadd.f32 %v2745_v0, %v1684_v36 }
 0x540   :  { %1730 = vst [vmem:[#allocation8 + $0xb8] sm:$0xff] %v1685_v8 }
 0x545   :  { %v1687_v37 = vpop.f32.mrf.mxu3 }
 0x546   :  { %v1688_v38 = vadd.f32 %v2745_v0, %v1687_v37 }
 0x548   :  { %1731 = vst [vmem:[#allocation8 + $0xc0] sm:$0xff] %v1688_v38 }
 0x54d   :  { %v1689_v39 = vpop.f32.mrf.mxu3 }
 0x54e   :  { %v1690_v41 = vadd.f32 %v2745_v0, %v1689_v39 }
 0x550   :  { %1732 = vst [vmem:[#allocation8 + $0xc8] sm:$0xff] %v1690_v41 }
 0x555   :  { %v1692_v42 = vpop.f32.mrf.mxu3 }
 0x556   :  { %v1693_v43 = vadd.f32 %v2745_v0, %v1692_v42 }
 0x558   :  { %1733 = vst [vmem:[#allocation8 + $0xd0] sm:$0xff] %v1693_v43 }
 0x55d   :  { %v1694_v45 = vpop.f32.mrf.mxu3 }
 0x55e   :  { %v1695_v46 = vadd.f32 %v2745_v0, %v1694_v45 }
 0x560   :  { %1734 = vst [vmem:[#allocation8 + $0xd8] sm:$0xff] %v1695_v46 }
 0x565   :  { %v1697_v47 = vpop.f32.mrf.mxu3 }
 0x566   :  { %v1698_v48 = vadd.f32 %v2745_v0, %v1697_v47 }
 0x568   :  { %1735 = vst [vmem:[#allocation8 + $0xe0] sm:$0xff] %v1698_v48 }
 0x56d   :  { %v1699_v49 = vpop.f32.mrf.mxu3 }
 0x56e   :  { %v1700_v50 = vadd.f32 %v2745_v0, %v1699_v49 }
 0x570   :  { %1736 = vst [vmem:[#allocation8 + $0xe8] sm:$0xff] %v1700_v50 }
 0x575   :  { %v1702_v51 = vpop.f32.mrf.mxu3 }
 0x576   :  { %v1703_v52 = vadd.f32 %v2745_v0, %v1702_v51 }
 0x578   :  { %1737 = vst [vmem:[#allocation8 + $0xf0] sm:$0xff] %v1703_v52 }
 0x57d   :  { %v1704_v6 = vpop.f32.mrf.mxu3 }
 0x57e   :  { %v1705_v40 = vadd.f32 %v2745_v0, %v1704_v6 }
 0x580   :  { %1738 = vst [vmem:[#allocation8 + $0xf8] sm:$0xff] %v1705_v40 }
 0x581   :  { %1751 = dma.vmem_to_hbm [thread:$0]  %s1744_s14, 4096, %s1746_s17, [#allocation4], %s2199_s18, %s2199_s18, %s2200_s5  }
 0x582   :  { %2191 = dma.done.wait [#allocation4], 4096  }
 0x583   :  { %2192 = vsyncadd [#allocation4], 4294963200 }
 0x584   :  { %1756 = vsyncpa [#allocation3], 1 }
 0x585   :  { %1757 = vsyncpa [#allocation6], 1 }
 0x586   :  { %1758 = vsyncpa [#allocation4], 1 }

</bundles_post_ra>
